<compile_context>
chip_gen: v5e
topology: v5e:2x2
jax: 0.10.0
libtpu: 0.0.40
codegen_flags: <defaults>
</compile_context>

<pallas_src>
import math

import jax
import jax.numpy as jnp
from jax import lax
from jax.experimental import pallas as pl
from jax.experimental.pallas import tpu as pltpu

_LN_EPS = 1e-5
_BN_EPS = 1e-5
_HALF_LOG_2PI = 0.5 * math.log(2.0 * math.pi)
_LANE = 128
_ROW_TILE = 512          # ~85% of HBM roofline on v5e/v6e, still VMEM-safe on v7x


def _vmem_limit_bytes():
    # Half of physical VMEM (=> 64 MiB on v5e/v6e, 32 MiB on v7x), clamped.
    try:
        cap = pltpu.get_tpu_info().vmem_capacity_bytes
    except Exception:
        cap = 64 * 1024 * 1024
    return int(min(max(cap // 2, 32 * 1024 * 1024), 96 * 1024 * 1024))


_VMEM_LIMIT = _vmem_limit_bytes()


def _round_up(n, m):
    return ((n + m - 1) // m) * m


def _row_tile(m):
    return m if m <= _ROW_TILE else _ROW_TILE


def _apply_act(x, act):
    """Static activation selection (matches get_activation in the reference)."""
    if act == "relu":
        return jnp.maximum(x, 0.0)
    if act == "sigmoid":
        return jax.nn.sigmoid(x)
    if act == "tanh":
        return jnp.tanh(x)
    if act in ("identity", "none", None):
        return x
    raise ValueError(f"unsupported activation: {act}")


# ----------------------------------------------------------------------------
# Kernel 1: fused matmul + activation (+ per-column BN sum / sum-sq accumulation)
#           bf16 operands, f32 accumulate, bf16 lane-dense output
# ----------------------------------------------------------------------------
def _make_fused_matmul_kernel(act, nblocks, tail, with_stats):
    def kernel(x_ref, w_ref, o_ref, *stat_refs):
        y = jnp.dot(x_ref[...], w_ref[...], preferred_element_type=jnp.float32)
        a = _apply_act(y, act)
        o_ref[...] = a.astype(o_ref.dtype)
        if not with_stats:
            return
        sum_ref, sq_ref = stat_refs
        i = pl.program_id(0)

        @pl.when(i == 0)
        def _():
            sum_ref[...] = jnp.zeros_like(sum_ref)
            sq_ref[...] = jnp.zeros_like(sq_ref)

        if tail:
            # Only the last block carries padding rows -> mask only there.
            @pl.when(i < nblocks - 1)
            def _():
                sum_ref[...] += jnp.sum(a, axis=0, keepdims=True)
                sq_ref[...] += jnp.sum(a * a, axis=0, keepdims=True)

            @pl.when(i == nblocks - 1)
            def _():
                row = lax.broadcasted_iota(jnp.int32, a.shape, 0)
                am = jnp.where(row < tail, a, 0.0)
                sum_ref[...] += jnp.sum(am, axis=0, keepdims=True)
                sq_ref[...] += jnp.sum(am * am, axis=0, keepdims=True)
        else:
            sum_ref[...] += jnp.sum(a, axis=0, keepdims=True)
            sq_ref[...] += jnp.sum(a * a, axis=0, keepdims=True)

    return kernel


def fused_matmul_act(x_bf16, w_bf16, act, with_stats):
    """(M, K)bf16 @ (K, Npad)bf16 -> act applied -> bf16 (M, Npad) lane-dense.
    If with_stats: also returns (1, Npad) f32 column sum / sum-of-squares of act."""
    m, kdim = x_bf16.shape
    kdim2, n = w_bf16.shape
    assert kdim == kdim2 and n % _LANE == 0
    tm = _row_tile(m)
    nblocks = pl.cdiv(m, tm)
    tail = m - (nblocks - 1) * tm if m % tm else 0
    trans = m * n if act in ("sigmoid", "tanh") else 0
    cost = pl.CostEstimate(flops=2 * m * kdim * n, transcendentals=trans,
                           bytes_accessed=2 * m * kdim + 2 * kdim * n + 2 * m * n)
    in_specs = [pl.BlockSpec((tm, kdim), lambda i: (i, 0)),     # pipelined row tile
                pl.BlockSpec((kdim, n), lambda i: (0, 0))]      # resident weight
    if with_stats:
        out_shape = (jax.ShapeDtypeStruct((m, n), jnp.bfloat16),
                     jax.ShapeDtypeStruct((1, n), jnp.float32),
                     jax.ShapeDtypeStruct((1, n), jnp.float32))
        out_specs = (pl.BlockSpec((tm, n), lambda i: (i, 0)),
                     pl.BlockSpec((1, n), lambda i: (0, 0)),    # resident accumulators
                     pl.BlockSpec((1, n), lambda i: (0, 0)))
        semantics = ("arbitrary",)
    else:
        out_shape = jax.ShapeDtypeStruct((m, n), jnp.bfloat16)
        out_specs = pl.BlockSpec((tm, n), lambda i: (i, 0))
        semantics = ("parallel",)
    return pl.pallas_call(
        _make_fused_matmul_kernel(act, nblocks, tail, with_stats),
        out_shape=out_shape,
        grid=(nblocks,),
        in_specs=in_specs,
        out_specs=out_specs,
        compiler_params=pltpu.CompilerParams(dimension_semantics=semantics,
                                             vmem_limit_bytes=_VMEM_LIMIT),
        cost_estimate=cost,
    )(x_bf16, w_bf16)


# ----------------------------------------------------------------------------
# Kernel 2: per-channel affine (BatchNorm folded), lane-dense bf16 in / bf16 out
# ----------------------------------------------------------------------------
def _affine_kernel(x_ref, scale_ref, shift_ref, o_ref):
    o_ref[...] = (x_ref[...].astype(jnp.float32) * scale_ref[...]
                  + shift_ref[...]).astype(o_ref.dtype)


def affine_rows(x_bf16, scale_row, shift_row):
    m, n = x_bf16.shape
    tm = _row_tile(m)
    return pl.pallas_call(
        _affine_kernel,
        out_shape=jax.ShapeDtypeStruct((m, n), jnp.bfloat16),
        grid=(pl.cdiv(m, tm),),
        in_specs=[pl.BlockSpec((tm, n), lambda i: (i, 0)),
                  pl.BlockSpec((1, n), lambda i: (0, 0)),       # resident scale
                  pl.BlockSpec((1, n), lambda i: (0, 0))],      # resident shift
        out_specs=pl.BlockSpec((tm, n), lambda i: (i, 0)),
        compiler_params=pltpu.CompilerParams(dimension_semantics=("parallel",),
                                             vmem_limit_bytes=_VMEM_LIMIT),
    )(x_bf16, scale_row, shift_row)


# ----------------------------------------------------------------------------
# Kernel 3: fused fc stack (Linear + bias + LayerNorm + ReLU) x N, batch-row grid
# ----------------------------------------------------------------------------
def _make_fc_stack_kernel(num_layers):
    def kernel(*refs):
        x_ref = refs[0]
        o_ref = refs[1 + 4 * num_layers]
        h = x_ref[...]
        for layer in range(num_layers):
            w_ref, b_ref, g_ref, beta_ref = refs[1 + 4 * layer:5 + 4 * layer]
            y = jnp.dot(h.astype(jnp.bfloat16), w_ref[...],
                        preferred_element_type=jnp.float32)
            y = y + b_ref[...]
            mean = jnp.mean(y, axis=-1, keepdims=True)
            var = jnp.mean(jnp.square(y - mean), axis=-1, keepdims=True)
            y = (y - mean) * lax.rsqrt(var + _LN_EPS)
            y = y * g_ref[...] + beta_ref[...]
            h = jnp.maximum(y, 0.0)                              # ReLU
        o_ref[...] = h.astype(o_ref.dtype)
    return kernel


def fc_stack(x, layers, out_dtype=jnp.float32):
    """All fc layers fused in ONE pallas_call; intermediates never leave VMEM.
    Batch rows are tiled ('parallel') so v7x can shard across its two TCs."""
    num_layers = len(layers)
    flat = [t for layer in layers for t in layer]
    batch, d_in0 = x.shape
    d_out = layers[-1][0].shape[1]
    tm = _row_tile(batch)
    in_specs = [pl.BlockSpec((tm, d_in0), lambda i: (i, 0))]
    for (w, _b, _g, _bt) in layers:
        di, do = w.shape
        in_specs += [pl.BlockSpec((di, do), lambda i: (0, 0)),
                     pl.BlockSpec((1, do), lambda i: (0, 0)),
                     pl.BlockSpec((1, do), lambda i: (0, 0)),
                     pl.BlockSpec((1, do), lambda i: (0, 0))]
    return pl.pallas_call(
        _make_fc_stack_kernel(num_layers),
        out_shape=jax.ShapeDtypeStruct((batch, d_out), out_dtype),
        grid=(pl.cdiv(batch, tm),),
        in_specs=in_specs,
        out_specs=pl.BlockSpec((tm, d_out), lambda i: (i, 0)),
        compiler_params=pltpu.CompilerParams(dimension_semantics=("parallel",),
                                             vmem_limit_bytes=_VMEM_LIMIT),
    )(x, *flat)


# ----------------------------------------------------------------------------
# Kernel 4: reparameterization (mu/log_var matmuls + rsample + MC KL), fused
# ----------------------------------------------------------------------------
def _reparam_kernel(z_ref, wmu_ref, wlv_ref, eps_ref, zs_ref, kl_ref):
    z = z_ref[...]
    mu = jnp.dot(z, wmu_ref[...], preferred_element_type=jnp.float32)
    log_var = jnp.dot(z, wlv_ref[...], preferred_element_type=jnp.float32)
    sigma = jnp.exp(0.5 * log_var)
    eps = eps_ref[...]
    z_s = mu + sigma * eps                                       # q.rsample()
    # log q(z_s) - log p(z_s); use 0.5*log_var directly (no exp->log round trip)
    log_q = -0.5 * log_var - 0.5 * eps * eps - _HALF_LOG_2PI
    log_p = -0.5 * z_s * z_s - _HALF_LOG_2PI
    kl_ref[...] = jnp.sum(log_q - log_p, axis=-1, keepdims=True)
    zs_ref[...] = z_s


def reparameterize(z, w_mu, w_log_var, eps):
    batch, latent = z.shape
    tm = _row_tile(batch)
    z_s, kl = pl.pallas_call(
        _reparam_kernel,
        out_shape=(jax.ShapeDtypeStruct((batch, latent), jnp.float32),
                   jax.ShapeDtypeStruct((batch, 1), jnp.float32)),
        grid=(pl.cdiv(batch, tm),),
        in_specs=[pl.BlockSpec((tm, latent), lambda i: (i, 0)),
                  pl.BlockSpec((latent, latent), lambda i: (0, 0)),
                  pl.BlockSpec((latent, latent), lambda i: (0, 0)),
                  pl.BlockSpec((tm, latent), lambda i: (i, 0))],
        out_specs=(pl.BlockSpec((tm, latent), lambda i: (i, 0)),
                   pl.BlockSpec((tm, 1), lambda i: (i, 0))),
        compiler_params=pltpu.CompilerParams(dimension_semantics=("parallel",),
                                             vmem_limit_bytes=_VMEM_LIMIT),
    )(z, w_mu, w_log_var, eps)
    return z_s, kl[:, 0]


# ----------------------------------------------------------------------------
# BN helpers
# ----------------------------------------------------------------------------
def _bn_scale_shift(ch_sum, ch_sq, n_elems, gamma, beta):
    mean = ch_sum / n_elems
    var = jnp.maximum(ch_sq / n_elems - mean * mean, 0.0)        # biased var (train BN)
    scale = gamma * lax.rsqrt(var + _BN_EPS)
    return scale, beta - mean * scale


def _pad_row(v, width):
    return jnp.pad(v, (0, width - v.shape[0])).reshape(1, width)


# ----------------------------------------------------------------------------
# Conv2d: im2col (bf16) -> fused matmul(+act+stats) -> optional BN affine
# ----------------------------------------------------------------------------
def conv2d_layer(x, w_mat, k, s, cout, gamma, beta, act, use_bn):
    b, h, w, cin = x.shape
    oh = (h - k) // s + 1
    ow = (w - k) // s + 1
    cols = [x[:, kh:kh + (oh - 1) * s + 1:s, kw:kw + (ow - 1) * s + 1:s, :]
            for kh in range(k) for kw in range(k)]
    patches = jnp.stack(cols, axis=3).reshape(b * oh * ow, k * k * cin)
    npad = w_mat.shape[1]
    if use_bn:
        a, ssum, ssq = fused_matmul_act(patches, w_mat, act, with_stats=True)
        scale, shift = _bn_scale_shift(ssum[0, :cout], ssq[0, :cout],
                                       b * oh * ow, gamma, beta)
        a = affine_rows(a, _pad_row(scale, npad), _pad_row(shift, npad))
    else:
        a = fused_matmul_act(patches, w_mat, act, with_stats=False)
    return a[:, :cout].reshape(b, oh, ow, cout)


# ----------------------------------------------------------------------------
# ConvTranspose2d: for k % s == 0, ONE matmul over all stride phases + pixel-shuffle
# (no col2im scatter).  Fallback (k % s != 0): zero-dilated input + stride-1 conv.
# ----------------------------------------------------------------------------
def conv_transpose_layer(x, w_mat, k, s, cout, gamma, beta, act, use_bn):
    b, h, w, cin = x.shape
    if k % s == 0:
        t = k // s
        H2, W2 = h + t - 1, w + t - 1
        xp = jnp.pad(x, ((0, 0), (t - 1, t - 1), (t - 1, t - 1), (0, 0)))
        cols = [xp[:, mh:mh + H2, mw:mw + W2, :]
                for mh in range(t) for mw in range(t)]
        patches = jnp.stack(cols, axis=3).reshape(b * H2 * W2, t * t * cin)
        groups = s * s
    else:
        # TODO(synk): rarely-hit general path does k^2 work on the inserted zeros.
        hd, wd = (h - 1) * s + 1, (w - 1) * s + 1
        xd = jnp.zeros((b, hd, wd, cin), x.dtype).at[:, ::s, ::s, :].set(x)
        xd = jnp.pad(xd, ((0, 0), (k - 1, k - 1), (k - 1, k - 1), (0, 0)))
        H2, W2 = (h - 1) * s + k, (w - 1) * s + k
        cols = [xd[:, kh:kh + H2, kw:kw + W2, :]
                for kh in range(k) for kw in range(k)]
        patches = jnp.stack(cols, axis=3).reshape(b * H2 * W2, k * k * cin)
        groups = 1

    ncols = groups * cout
    npad = w_mat.shape[1]
    n_out = b * H2 * W2 * groups                                 # == b*oh*ow
    if use_bn:
        a, ssum, ssq = fused_matmul_act(patches, w_mat, act, with_stats=True)
        ch_sum = ssum[0, :ncols].reshape(groups, cout).sum(axis=0)
        ch_sq = ssq[0, :ncols].reshape(groups, cout).sum(axis=0)
        scale, shift = _bn_scale_shift(ch_sum, ch_sq, n_out, gamma, beta)
        scale_row = _pad_row(jnp.tile(scale, groups), npad)
        shift_row = _pad_row(jnp.tile(shift, groups), npad)
        a = affine_rows(a, scale_row, shift_row)
    else:
        a = fused_matmul_act(patches, w_mat, act, with_stats=False)

    if groups == 1:
        return a[:, :cout].reshape(b, H2, W2, cout)
    y = a[:, :ncols].reshape(b, H2, W2, s, s, cout)
    return jnp.transpose(y, (0, 1, 3, 2, 4, 5)).reshape(b, H2 * s, W2 * s, cout)


# ----------------------------------------------------------------------------
# Full VAE forward (mirrors VariationalAutoEncoder.forward)
# ----------------------------------------------------------------------------
def make_vae_forward(cfg):
    enc = cfg["model"]["encoder"]
    dec = cfg["model"]["decoder"]

    def forward(params, x_nchw, eps, y):
        # ---------------- Encoder ----------------
        x = jnp.transpose(x_nchw, (0, 2, 3, 1)).astype(jnp.bfloat16)   # NCHW -> NHWC
        for i, (w_mat, gamma, beta) in enumerate(params["enc_conv"]):
            x = conv2d_layer(x, w_mat, enc["kernels"][i], enc["strides"][i],
                             enc["conv_channels"][i], gamma, beta,
                             enc["activation"][i], enc["norm"][i])
        b = x.shape[0]
        x = jnp.transpose(x, (0, 3, 1, 2)).reshape(b, -1)              # flatten NCHW order
        z = fc_stack(x, params["enc_fc"], jnp.float32)

        # ------------- Reparameterization -------------
        z_s, kl = reparameterize(z, params["w_mu"], params["w_log_var"], eps)
        z_cat = jnp.concatenate([z_s, y], axis=1)                      # concat([z, y], dim=1)

        # ---------------- Decoder ----------------
        h = fc_stack(z_cat, params["dec_fc"], jnp.float32)
        c0 = enc["conv_channels"][-1]
        s0 = int(round(math.sqrt(h.shape[1] / c0)))
        h = h.reshape(b, c0, s0, s0)                                   # .view(b, C, S, S)
        h = jnp.transpose(h, (0, 2, 3, 1)).astype(jnp.bfloat16)        # NCHW -> NHWC
        for i, (w_mat, gamma, beta) in enumerate(params["dec_conv"]):
            h = conv_transpose_layer(h, w_mat, dec["kernels"][i], dec["strides"][i],
                                     dec["conv_channels"][i], gamma, beta,
                                     dec["activation"][i], dec["norm"][i])
        out = jnp.transpose(h, (0, 3, 1, 2)).astype(jnp.float32)       # NHWC -> NCHW
        return out, kl

    return jax.jit(forward)


# ----------------------------------------------------------------------------
# Deterministic parameter construction (same layer shapes as the nn.Module),
# weights packed matmul-ready with the output columns padded to a 128 multiple.
# ----------------------------------------------------------------------------
def init_params(cfg, key):
    enc = cfg["model"]["encoder"]
    dec = cfg["model"]["decoder"]
    latent = cfg["model"]["latent_dim"]
    num_classes = cfg["data"]["num_classes"]

    def norm_affine(c):
        return jnp.ones((c,), jnp.float32), jnp.zeros((c,), jnp.float32)

    # encoder Conv2d (bias=False): (Cout,Cin,K,K) -> (K*K*Cin, Cout) -> pad cols to 128n
    enc_conv = []
    shape = cfg["img_shape"]
    cin = 3
    for i, cout in enumerate(enc["conv_channels"]):
        k = enc["kernels"][i]
        key, sub = jax.random.split(key)
        w_pt = jax.random.normal(sub, (cout, cin, k, k), jnp.float32) / math.sqrt(cin * k * k)
        w_mat = jnp.transpose(w_pt, (2, 3, 1, 0)).reshape(k * k * cin, cout)
        w_mat = jnp.pad(w_mat, ((0, 0), (0, _round_up(cout, _LANE) - cout)))
        gamma, beta = norm_affine(cout)
        enc_conv.append((w_mat.astype(jnp.bfloat16), gamma, beta))
        cin = cout
        shape = (shape - k) // enc["strides"][i] + 1
    flatten_size = shape * shape * cin

    def make_fc(sizes, key):
        layers = []
        d_in = sizes[0]
        for d_out in sizes[1:]:
            key, k1, k2 = jax.random.split(key, 3)
            w = jax.random.normal(k1, (d_in, d_out), jnp.float32) / math.sqrt(d_in)
            bias = 0.01 * jax.random.normal(k2, (d_out,), jnp.float32)
            layers.append((w.astype(jnp.bfloat16),
                           bias.reshape(1, d_out),
                           jnp.ones((1, d_out), jnp.float32),
                           jnp.zeros((1, d_out), jnp.float32)))
            d_in = d_out
        return layers, key

    enc_fc, key = make_fc([flatten_size] + list(enc["fc"]), key)

    # mu / log_var linears (bias=False), stored pre-transposed (in, out)
    key, k1, k2 = jax.random.split(key, 3)
    w_mu = jax.random.normal(k1, (latent, latent), jnp.float32) / math.sqrt(latent)
    w_log_var = jax.random.normal(k2, (latent, latent), jnp.float32) / math.sqrt(latent)

    # decoder fc stack: encoder fc sizes walked backwards; first input = fc[-1]+num_classes.
    # TODO(synk): the reference sets _in=1 for intermediate decoder fc layers (a latent bug
    # that cannot run in PyTorch for len(fc)>1); we use the data-flow-consistent width.
    dec_sizes = [enc["fc"][-1] + num_classes]
    for i in range(len(enc["fc"]) - 1, -1, -1):
        dec_sizes.append(flatten_size if i == 0 else enc["fc"][i - 1])
    dec_fc, key = make_fc(dec_sizes, key)

    # decoder ConvTranspose2d (bias=False) weights:
    #  k % s == 0 -> phase-matmul packing (taps x phases), else flipped stride-1 conv packing
    dec_conv = []
    cin = enc["conv_channels"][-1]
    for i, cout in enumerate(dec["conv_channels"]):
        k = dec["kernels"][i]
        s = dec["strides"][i]
        key, sub = jax.random.split(key)
        w_pt = jax.random.normal(sub, (cin, cout, k, k), jnp.float32) / math.sqrt(cin * k * k)
        if k % s == 0:
            t = k // s
            w6 = w_pt.reshape(cin, cout, t, s, t, s)            # (cin, c, dh, ph, dw, pw)
            w6 = jnp.flip(w6, axis=(2, 4))                      # dh,dw -> t-1-mh, t-1-mw
            w_mat = jnp.transpose(w6, (2, 4, 0, 3, 5, 1)).reshape(t * t * cin, s * s * cout)
        else:
            w_mat = jnp.flip(jnp.transpose(w_pt, (2, 3, 0, 1)), axis=(0, 1))
            w_mat = w_mat.reshape(k * k * cin, cout)
        ncols = w_mat.shape[1]
        w_mat = jnp.pad(w_mat, ((0, 0), (0, _round_up(ncols, _LANE) - ncols)))
        gamma, beta = norm_affine(cout)
        dec_conv.append((w_mat.astype(jnp.bfloat16), gamma, beta))
        cin = cout

    params = {"enc_conv": enc_conv, "enc_fc": enc_fc, "w_mu": w_mu,
              "w_log_var": w_log_var, "dec_fc": dec_fc, "dec_conv": dec_conv}
    return params, flatten_size


if __name__ == "__main__":
    cfg = {
        "img_shape": 16,
        "data": {"num_classes": 16},
        "model": {
            "latent_dim": 16,
            "encoder": {
                "conv_channels": [8, 16],
                "kernels": [3, 4],
                "strides": [1, 2],
                "activation": ["relu", "relu"],
                "norm": [True, False],
                "fc": [32, 16],
            },
            "decoder": {
                "conv_channels": [8, 3],
                "kernels": [4, 4],
                "strides": [2, 2],
                "activation": ["relu", "sigmoid"],
                "norm": [True, False],
            },
        },
    }

    key = jax.random.PRNGKey(0)
    key, k_params, k_x, k_eps, k_y, k_a, k_b = jax.random.split(key, 7)
    params, flatten_size = init_params(cfg, k_params)

    batch = 2
    latent = cfg["model"]["latent_dim"]
    x = jax.random.normal(k_x, (batch, 3, cfg["img_shape"], cfg["img_shape"]), jnp.float32)
    eps = jax.random.normal(k_eps, (batch, latent), jnp.float32)   # N(0,1) for rsample
    y = jax.random.uniform(k_y, (batch, latent), jnp.float32)      # torch.rand_like(z)

    forward = make_vae_forward(cfg)
    out, kl = jax.block_until_ready(forward(params, x, eps, y))

    # encoder spatial: 16 -> 14 -> 6 (flatten 576); decoder: 6 -> 14 -> 30; channels -> 3
    assert flatten_size == 576, flatten_size
    assert out.shape == (batch, 3, 30, 30), out.shape
    assert kl.shape == (batch,), kl.shape
    assert bool(jnp.all(jnp.isfinite(out))) and bool(jnp.all(jnp.isfinite(kl)))

    # Stand-alone check of the fused matmul+act+stats kernel on a ragged (M > row tile)
    # grid, exercising the masked last block and the resident stat accumulators.
    xm = jax.random.normal(k_a, (600, 64), jnp.float32).astype(jnp.bfloat16)
    wm = (jax.random.normal(k_b, (64, 128), jnp.float32) / 8.0).astype(jnp.bfloat16)
    a_out, ssum, ssq = jax.block_until_ready(fused_matmul_act(xm, wm, "sigmoid", True))
    ref = jax.nn.sigmoid(jnp.dot(xm.astype(jnp.float32), wm.astype(jnp.float32),
                                 precision=lax.Precision.HIGHEST))
    assert float(jnp.max(jnp.abs(a_out.astype(jnp.float32) - ref))) < 3e-2
    assert float(jnp.max(jnp.abs(ssum[0] - ref.sum(0)))) < 1.0
    assert float(jnp.max(jnp.abs(ssq[0] - (ref * ref).sum(0)))) < 1.0

    print("KERNEL_OK")
</pallas_src>

<mosaic_0001>
module attributes {stable_mosaic.version = 11 : i64} {
  func.func @kernel(%arg0: i32, %arg1: memref<392x27xbf16, #tpu.memory_space<vmem>>, %arg2: memref<27x128xbf16, #tpu.memory_space<vmem>>, %arg3: memref<392x128xbf16, #tpu.memory_space<vmem>>, %arg4: memref<1x128xf32, #tpu.memory_space<vmem>>, %arg5: memref<1x128xf32, #tpu.memory_space<vmem>>) attributes {dimension_semantics = [#tpu.dimension_semantics<arbitrary>], iteration_bounds = array<i64: 1>, scalar_prefetch = 0 : i64, scratch_operands = 0 : i64, tpu.core_type = #tpu.core_type<tc>, window_params = [{transform_indices = @transform_0, window_bounds = array<i64: 392, 27>}, {pipeline_mode = #tpu.pipeline_mode<synchronous>, transform_indices = @transform_1, window_bounds = array<i64: 27, 128>}, {transform_indices = @transform_2, window_bounds = array<i64: 392, 128>}, {pipeline_mode = #tpu.pipeline_mode<synchronous>, transform_indices = @transform_3, window_bounds = array<i64: 1, 128>}, {pipeline_mode = #tpu.pipeline_mode<synchronous>, transform_indices = @transform_4, window_bounds = array<i64: 1, 128>}]} {
    %c0 = arith.constant 0 : index
    %c0_0 = arith.constant 0 : index
    %0 = vector.load %arg1[%c0, %c0_0] : memref<392x27xbf16, #tpu.memory_space<vmem>>, vector<392x27xbf16>
    %c0_1 = arith.constant 0 : index
    %c0_2 = arith.constant 0 : index
    %1 = vector.load %arg2[%c0_1, %c0_2] : memref<27x128xbf16, #tpu.memory_space<vmem>>, vector<27x128xbf16>
    %cst = arith.constant dense<0.000000e+00> : vector<392x128xf32>
    %2 = tpu.matmul %0, %1, %cst {dimension_numbers = #tpu.dot_dimension_numbers<[1], [0], [0], [1], [0, 0, 1, 1], [], []>} : vector<392x27xbf16>, vector<27x128xbf16>, vector<392x128xf32> -> vector<392x128xf32>
    %cst_3 = arith.constant 0.000000e+00 : f32
    %3 = vector.broadcast %cst_3 : f32 to vector<392x128xf32>
    %4 = arith.maximumf %2, %3 : vector<392x128xf32>
    %5 = arith.truncf %4 : vector<392x128xf32> to vector<392x128xbf16>
    %c0_4 = arith.constant 0 : index
    %c0_5 = arith.constant 0 : index
    %6 = vector.load %arg3[%c0_4, %c0_5] : memref<392x128xbf16, #tpu.memory_space<vmem>>, vector<392x128xbf16>
    tpu.vector_store %arg3[%c0_4, %c0_5], %5 {strides = array<i32>} : memref<392x128xbf16, #tpu.memory_space<vmem>>, vector<392x128xbf16>,
    %c0_i32 = arith.constant 0 : i32
    %7 = arith.cmpi eq, %arg0, %c0_i32 : i32
    %8 = arith.extui %7 : i1 to i32
    %c0_i32_6 = arith.constant 0 : i32
    %9 = arith.cmpi ne, %8, %c0_i32_6 : i32
    scf.if %9 {
      %cst_17 = arith.constant 0.000000e+00 : f32
      %21 = vector.broadcast %cst_17 : f32 to vector<1x128xf32>
      %c0_18 = arith.constant 0 : index
      %c0_19 = arith.constant 0 : index
      %22 = vector.load %arg4[%c0_18, %c0_19] : memref<1x128xf32, #tpu.memory_space<vmem>>, vector<1x128xf32>
      tpu.vector_store %arg4[%c0_18, %c0_19], %21 {strides = array<i32>} : memref<1x128xf32, #tpu.memory_space<vmem>>, vector<1x128xf32>,
      %cst_20 = arith.constant 0.000000e+00 : f32
      %23 = vector.broadcast %cst_20 : f32 to vector<1x128xf32>
      %c0_21 = arith.constant 0 : index
      %c0_22 = arith.constant 0 : index
      %24 = vector.load %arg5[%c0_21, %c0_22] : memref<1x128xf32, #tpu.memory_space<vmem>>, vector<1x128xf32>
      tpu.vector_store %arg5[%c0_21, %c0_22], %23 {strides = array<i32>} : memref<1x128xf32, #tpu.memory_space<vmem>>, vector<1x128xf32>,
    } else {
    }
    %c0_7 = arith.constant 0 : index
    %c0_8 = arith.constant 0 : index
    %10 = vector.load %arg4[%c0_7, %c0_8] : memref<1x128xf32, #tpu.memory_space<vmem>>, vector<1x128xf32>
    %cst_9 = arith.constant dense<0.000000e+00> : vector<128xf32>
    %11 = vector.multi_reduction <add>, %4, %cst_9 [0] : vector<392x128xf32> to vector<128xf32>
    %12 = vector.shape_cast %11 : vector<128xf32> to vector<1x128xf32>
    %13 = arith.addf %10, %12 : vector<1x128xf32>
    %c0_10 = arith.constant 0 : index
    %c0_11 = arith.constant 0 : index
    %14 = vector.load %arg4[%c0_10, %c0_11] : memref<1x128xf32, #tpu.memory_space<vmem>>, vector<1x128xf32>
    tpu.vector_store %arg4[%c0_10, %c0_11], %13 {strides = array<i32>} : memref<1x128xf32, #tpu.memory_space<vmem>>, vector<1x128xf32>,
    %c0_12 = arith.constant 0 : index
    %c0_13 = arith.constant 0 : index
    %15 = vector.load %arg5[%c0_12, %c0_13] : memref<1x128xf32, #tpu.memory_space<vmem>>, vector<1x128xf32>
    %16 = arith.mulf %4, %4 : vector<392x128xf32>
    %cst_14 = arith.constant dense<0.000000e+00> : vector<128xf32>
    %17 = vector.multi_reduction <add>, %16, %cst_14 [0] : vector<392x128xf32> to vector<128xf32>
    %18 = vector.shape_cast %17 : vector<128xf32> to vector<1x128xf32>
    %19 = arith.addf %15, %18 : vector<1x128xf32>
    %c0_15 = arith.constant 0 : index
    %c0_16 = arith.constant 0 : index
    %20 = vector.load %arg5[%c0_15, %c0_16] : memref<1x128xf32, #tpu.memory_space<vmem>>, vector<1x128xf32>
    tpu.vector_store %arg5[%c0_15, %c0_16], %19 {strides = array<i32>} : memref<1x128xf32, #tpu.memory_space<vmem>>, vector<1x128xf32>,
    return
  }
  func.func @transform_0(%arg0: i32) -> (i32, i32) {
    %c0_i32 = arith.constant 0 : i32
    %c0_i32_0 = arith.constant 0 : i32
    return %arg0, %c0_i32 : i32, i32
  }
  func.func @transform_1(%arg0: i32) -> (i32, i32) {
    %c0_i32 = arith.constant 0 : i32
    %c0_i32_0 = arith.constant 0 : i32
    %c0_i32_1 = arith.constant 0 : i32
    return %c0_i32, %c0_i32_0 : i32, i32
  }
  func.func @transform_2(%arg0: i32) -> (i32, i32) {
    %c0_i32 = arith.constant 0 : i32
    %c0_i32_0 = arith.constant 0 : i32
    return %arg0, %c0_i32 : i32, i32
  }
  func.func @transform_3(%arg0: i32) -> (i32, i32) {
    %c0_i32 = arith.constant 0 : i32
    %c0_i32_0 = arith.constant 0 : i32
    %c0_i32_1 = arith.constant 0 : i32
    return %c0_i32, %c0_i32_0 : i32, i32
  }
  func.func @transform_4(%arg0: i32) -> (i32, i32) {
    %c0_i32 = arith.constant 0 : i32
    %c0_i32_0 = arith.constant 0 : i32
    %c0_i32_1 = arith.constant 0 : i32
    return %c0_i32, %c0_i32_0 : i32, i32
  }
}

module attributes {stable_mosaic.version = 11 : i64} {
  func.func @_affine_kernel(%arg0: i32, %arg1: memref<392x128xbf16, #tpu.memory_space<vmem>>, %arg2: memref<1x128xf32, #tpu.memory_space<vmem>>, %arg3: memref<1x128xf32, #tpu.memory_space<vmem>>, %arg4: memref<392x128xbf16, #tpu.memory_space<vmem>>) attributes {dimension_semantics = [#tpu.dimension_semantics<parallel>], iteration_bounds = array<i64: 1>, scalar_prefetch = 0 : i64, scratch_operands = 0 : i64, tpu.core_type = #tpu.core_type<tc>, window_params = [{transform_indices = @transform_0, window_bounds = array<i64: 392, 128>}, {pipeline_mode = #tpu.pipeline_mode<synchronous>, transform_indices = @transform_1, window_bounds = array<i64: 1, 128>}, {pipeline_mode = #tpu.pipeline_mode<synchronous>, transform_indices = @transform_2, window_bounds = array<i64: 1, 128>}, {transform_indices = @transform_3, window_bounds = array<i64: 392, 128>}]} {
    %c0 = arith.constant 0 : index
    %c0_0 = arith.constant 0 : index
    %0 = vector.load %arg1[%c0, %c0_0] : memref<392x128xbf16, #tpu.memory_space<vmem>>, vector<392x128xbf16>
    %1 = arith.extf %0 : vector<392x128xbf16> to vector<392x128xf32>
    %c0_1 = arith.constant 0 : index
    %c0_2 = arith.constant 0 : index
    %2 = vector.load %arg2[%c0_1, %c0_2] : memref<1x128xf32, #tpu.memory_space<vmem>>, vector<1x128xf32>
    %3 = vector.broadcast %2 : vector<1x128xf32> to vector<392x128xf32>
    %4 = arith.mulf %1, %3 : vector<392x128xf32>
    %c0_3 = arith.constant 0 : index
    %c0_4 = arith.constant 0 : index
    %5 = vector.load %arg3[%c0_3, %c0_4] : memref<1x128xf32, #tpu.memory_space<vmem>>, vector<1x128xf32>
    %6 = vector.broadcast %5 : vector<1x128xf32> to vector<392x128xf32>
    %7 = arith.addf %4, %6 : vector<392x128xf32>
    %8 = arith.truncf %7 : vector<392x128xf32> to vector<392x128xbf16>
    %c0_5 = arith.constant 0 : index
    %c0_6 = arith.constant 0 : index
    %9 = vector.load %arg4[%c0_5, %c0_6] : memref<392x128xbf16, #tpu.memory_space<vmem>>, vector<392x128xbf16>
    tpu.vector_store %arg4[%c0_5, %c0_6], %8 {strides = array<i32>} : memref<392x128xbf16, #tpu.memory_space<vmem>>, vector<392x128xbf16>,
    return
  }
  func.func @transform_0(%arg0: i32) -> (i32, i32) {
    %c0_i32 = arith.constant 0 : i32
    %c0_i32_0 = arith.constant 0 : i32
    return %arg0, %c0_i32 : i32, i32
  }
  func.func @transform_1(%arg0: i32) -> (i32, i32) {
    %c0_i32 = arith.constant 0 : i32
    %c0_i32_0 = arith.constant 0 : i32
    %c0_i32_1 = arith.constant 0 : i32
    return %c0_i32, %c0_i32_0 : i32, i32
  }
  func.func @transform_2(%arg0: i32) -> (i32, i32) {
    %c0_i32 = arith.constant 0 : i32
    %c0_i32_0 = arith.constant 0 : i32
    %c0_i32_1 = arith.constant 0 : i32
    return %c0_i32, %c0_i32_0 : i32, i32
  }
  func.func @transform_3(%arg0: i32) -> (i32, i32) {
    %c0_i32 = arith.constant 0 : i32
    %c0_i32_0 = arith.constant 0 : i32
    return %arg0, %c0_i32 : i32, i32
  }
}

module attributes {stable_mosaic.version = 11 : i64} {
  func.func @kernel(%arg0: i32, %arg1: memref<72x128xbf16, #tpu.memory_space<vmem>>, %arg2: memref<128x128xbf16, #tpu.memory_space<vmem>>, %arg3: memref<72x128xbf16, #tpu.memory_space<vmem>>) attributes {dimension_semantics = [#tpu.dimension_semantics<parallel>], iteration_bounds = array<i64: 1>, scalar_prefetch = 0 : i64, scratch_operands = 0 : i64, tpu.core_type = #tpu.core_type<tc>, window_params = [{transform_indices = @transform_0, window_bounds = array<i64: 72, 128>}, {pipeline_mode = #tpu.pipeline_mode<synchronous>, transform_indices = @transform_1, window_bounds = array<i64: 128, 128>}, {transform_indices = @transform_2, window_bounds = array<i64: 72, 128>}]} {
    %c0 = arith.constant 0 : index
    %c0_0 = arith.constant 0 : index
    %0 = vector.load %arg1[%c0, %c0_0] : memref<72x128xbf16, #tpu.memory_space<vmem>>, vector<72x128xbf16>
    %c0_1 = arith.constant 0 : index
    %c0_2 = arith.constant 0 : index
    %1 = vector.load %arg2[%c0_1, %c0_2] : memref<128x128xbf16, #tpu.memory_space<vmem>>, vector<128x128xbf16>
    %cst = arith.constant dense<0.000000e+00> : vector<72x128xf32>
    %2 = tpu.matmul %0, %1, %cst {dimension_numbers = #tpu.dot_dimension_numbers<[1], [0], [0], [1], [0, 0, 1, 1], [], []>} : vector<72x128xbf16>, vector<128x128xbf16>, vector<72x128xf32> -> vector<72x128xf32>
    %cst_3 = arith.constant 0.000000e+00 : f32
    %3 = vector.broadcast %cst_3 : f32 to vector<72x128xf32>
    %4 = arith.maximumf %2, %3 : vector<72x128xf32>
    %5 = arith.truncf %4 : vector<72x128xf32> to vector<72x128xbf16>
    %c0_4 = arith.constant 0 : index
    %c0_5 = arith.constant 0 : index
    %6 = vector.load %arg3[%c0_4, %c0_5] : memref<72x128xbf16, #tpu.memory_space<vmem>>, vector<72x128xbf16>
    tpu.vector_store %arg3[%c0_4, %c0_5], %5 {strides = array<i32>} : memref<72x128xbf16, #tpu.memory_space<vmem>>, vector<72x128xbf16>,
    return
  }
  func.func @transform_0(%arg0: i32) -> (i32, i32) {
    %c0_i32 = arith.constant 0 : i32
    %c0_i32_0 = arith.constant 0 : i32
    return %arg0, %c0_i32 : i32, i32
  }
  func.func @transform_1(%arg0: i32) -> (i32, i32) {
    %c0_i32 = arith.constant 0 : i32
    %c0_i32_0 = arith.constant 0 : i32
    %c0_i32_1 = arith.constant 0 : i32
    return %c0_i32, %c0_i32_0 : i32, i32
  }
  func.func @transform_2(%arg0: i32) -> (i32, i32) {
    %c0_i32 = arith.constant 0 : i32
    %c0_i32_0 = arith.constant 0 : i32
    return %arg0, %c0_i32 : i32, i32
  }
}

module attributes {stable_mosaic.version = 11 : i64} {
  func.func @kernel(%arg0: i32, %arg1: memref<2x576xbf16, #tpu.memory_space<vmem>>, %arg2: memref<576x32xbf16, #tpu.memory_space<vmem>>, %arg3: memref<1x32xf32, #tpu.memory_space<vmem>>, %arg4: memref<1x32xf32, #tpu.memory_space<vmem>>, %arg5: memref<1x32xf32, #tpu.memory_space<vmem>>, %arg6: memref<32x16xbf16, #tpu.memory_space<vmem>>, %arg7: memref<1x16xf32, #tpu.memory_space<vmem>>, %arg8: memref<1x16xf32, #tpu.memory_space<vmem>>, %arg9: memref<1x16xf32, #tpu.memory_space<vmem>>, %arg10: memref<2x16xf32, #tpu.memory_space<vmem>>) attributes {dimension_semantics = [#tpu.dimension_semantics<parallel>], iteration_bounds = array<i64: 1>, scalar_prefetch = 0 : i64, scratch_operands = 0 : i64, tpu.core_type = #tpu.core_type<tc>, window_params = [{transform_indices = @transform_0, window_bounds = array<i64: 2, 576>}, {pipeline_mode = #tpu.pipeline_mode<synchronous>, transform_indices = @transform_1, window_bounds = array<i64: 576, 32>}, {pipeline_mode = #tpu.pipeline_mode<synchronous>, transform_indices = @transform_2, window_bounds = array<i64: 1, 32>}, {pipeline_mode = #tpu.pipeline_mode<synchronous>, transform_indices = @transform_3, window_bounds = array<i64: 1, 32>}, {pipeline_mode = #tpu.pipeline_mode<synchronous>, transform_indices = @transform_4, window_bounds = array<i64: 1, 32>}, {pipeline_mode = #tpu.pipeline_mode<synchronous>, transform_indices = @transform_5, window_bounds = array<i64: 32, 16>}, {pipeline_mode = #tpu.pipeline_mode<synchronous>, transform_indices = @transform_6, window_bounds = array<i64: 1, 16>}, {pipeline_mode = #tpu.pipeline_mode<synchronous>, transform_indices = @transform_7, window_bounds = array<i64: 1, 16>}, {pipeline_mode = #tpu.pipeline_mode<synchronous>, transform_indices = @transform_8, window_bounds = array<i64: 1, 16>}, {transform_indices = @transform_9, window_bounds = array<i64: 2, 16>}]} {
    %c0 = arith.constant 0 : index
    %c0_0 = arith.constant 0 : index
    %0 = vector.load %arg1[%c0, %c0_0] : memref<2x576xbf16, #tpu.memory_space<vmem>>, vector<2x576xbf16>
    %c0_1 = arith.constant 0 : index
    %c0_2 = arith.constant 0 : index
    %1 = vector.load %arg2[%c0_1, %c0_2] : memref<576x32xbf16, #tpu.memory_space<vmem>>, vector<576x32xbf16>
    %cst = arith.constant dense<0.000000e+00> : vector<2x32xf32>
    %2 = tpu.matmul %0, %1, %cst {dimension_numbers = #tpu.dot_dimension_numbers<[1], [0], [0], [1], [0, 0, 1, 1], [], []>} : vector<2x576xbf16>, vector<576x32xbf16>, vector<2x32xf32> -> vector<2x32xf32>
    %c0_3 = arith.constant 0 : index
    %c0_4 = arith.constant 0 : index
    %3 = vector.load %arg3[%c0_3, %c0_4] : memref<1x32xf32, #tpu.memory_space<vmem>>, vector<1x32xf32>
    %4 = vector.broadcast %3 : vector<1x32xf32> to vector<2x32xf32>
    %5 = arith.addf %2, %4 : vector<2x32xf32>
    %cst_5 = arith.constant dense<0.000000e+00> : vector<2xf32>
    %6 = vector.multi_reduction <add>, %5, %cst_5 [1] : vector<2x32xf32> to vector<2xf32>
    %7 = vector.shape_cast %6 : vector<2xf32> to vector<2x1xf32>
    %cst_6 = arith.constant 3.200000e+01 : f32
    %8 = vector.broadcast %cst_6 : f32 to vector<2x1xf32>
    %9 = arith.divf %7, %8 : vector<2x1xf32>
    %10 = vector.broadcast %9 : vector<2x1xf32> to vector<2x32xf32>
    %11 = arith.subf %5, %10 : vector<2x32xf32>
    %12 = arith.mulf %11, %11 : vector<2x32xf32>
    %cst_7 = arith.constant dense<0.000000e+00> : vector<2xf32>
    %13 = vector.multi_reduction <add>, %12, %cst_7 [1] : vector<2x32xf32> to vector<2xf32>
    %14 = vector.shape_cast %13 : vector<2xf32> to vector<2x1xf32>
    %cst_8 = arith.constant 3.200000e+01 : f32
    %15 = vector.broadcast %cst_8 : f32 to vector<2x1xf32>
    %16 = arith.divf %14, %15 : vector<2x1xf32>
    %17 = vector.broadcast %9 : vector<2x1xf32> to vector<2x32xf32>
    %18 = arith.subf %5, %17 : vector<2x32xf32>
    %cst_9 = arith.constant 9.99999974E-6 : f32
    %19 = vector.broadcast %cst_9 : f32 to vector<2x1xf32>
    %20 = arith.addf %16, %19 : vector<2x1xf32>
    %21 = math.rsqrt %20 : vector<2x1xf32>
    %22 = vector.broadcast %21 : vector<2x1xf32> to vector<2x32xf32>
    %23 = arith.mulf %18, %22 : vector<2x32xf32>
    %c0_10 = arith.constant 0 : index
    %c0_11 = arith.constant 0 : index
    %24 = vector.load %arg4[%c0_10, %c0_11] : memref<1x32xf32, #tpu.memory_space<vmem>>, vector<1x32xf32>
    %25 = vector.broadcast %24 : vector<1x32xf32> to vector<2x32xf32>
    %26 = arith.mulf %23, %25 : vector<2x32xf32>
    %c0_12 = arith.constant 0 : index
    %c0_13 = arith.constant 0 : index
    %27 = vector.load %arg5[%c0_12, %c0_13] : memref<1x32xf32, #tpu.memory_space<vmem>>, vector<1x32xf32>
    %28 = vector.broadcast %27 : vector<1x32xf32> to vector<2x32xf32>
    %29 = arith.addf %26, %28 : vector<2x32xf32>
    %cst_14 = arith.constant 0.000000e+00 : f32
    %30 = vector.broadcast %cst_14 : f32 to vector<2x32xf32>
    %31 = arith.maximumf %29, %30 : vector<2x32xf32>
    %32 = arith.truncf %31 : vector<2x32xf32> to vector<2x32xbf16>
    %c0_15 = arith.constant 0 : index
    %c0_16 = arith.constant 0 : index
    %33 = vector.load %arg6[%c0_15, %c0_16] : memref<32x16xbf16, #tpu.memory_space<vmem>>, vector<32x16xbf16>
    %cst_17 = arith.constant dense<0.000000e+00> : vector<2x16xf32>
    %34 = tpu.matmul %32, %33, %cst_17 {dimension_numbers = #tpu.dot_dimension_numbers<[1], [0], [0], [1], [0, 0, 1, 1], [], []>} : vector<2x32xbf16>, vector<32x16xbf16>, vector<2x16xf32> -> vector<2x16xf32>
    %c0_18 = arith.constant 0 : index
    %c0_19 = arith.constant 0 : index
    %35 = vector.load %arg7[%c0_18, %c0_19] : memref<1x16xf32, #tpu.memory_space<vmem>>, vector<1x16xf32>
    %36 = vector.broadcast %35 : vector<1x16xf32> to vector<2x16xf32>
    %37 = arith.addf %34, %36 : vector<2x16xf32>
    %cst_20 = arith.constant dense<0.000000e+00> : vector<2xf32>
    %38 = vector.multi_reduction <add>, %37, %cst_20 [1] : vector<2x16xf32> to vector<2xf32>
    %39 = vector.shape_cast %38 : vector<2xf32> to vector<2x1xf32>
    %cst_21 = arith.constant 1.600000e+01 : f32
    %40 = vector.broadcast %cst_21 : f32 to vector<2x1xf32>
    %41 = arith.divf %39, %40 : vector<2x1xf32>
    %42 = vector.broadcast %41 : vector<2x1xf32> to vector<2x16xf32>
    %43 = arith.subf %37, %42 : vector<2x16xf32>
    %44 = arith.mulf %43, %43 : vector<2x16xf32>
    %cst_22 = arith.constant dense<0.000000e+00> : vector<2xf32>
    %45 = vector.multi_reduction <add>, %44, %cst_22 [1] : vector<2x16xf32> to vector<2xf32>
    %46 = vector.shape_cast %45 : vector<2xf32> to vector<2x1xf32>
    %cst_23 = arith.constant 1.600000e+01 : f32
    %47 = vector.broadcast %cst_23 : f32 to vector<2x1xf32>
    %48 = arith.divf %46, %47 : vector<2x1xf32>
    %49 = vector.broadcast %41 : vector<2x1xf32> to vector<2x16xf32>
    %50 = arith.subf %37, %49 : vector<2x16xf32>
    %cst_24 = arith.constant 9.99999974E-6 : f32
    %51 = vector.broadcast %cst_24 : f32 to vector<2x1xf32>
    %52 = arith.addf %48, %51 : vector<2x1xf32>
    %53 = math.rsqrt %52 : vector<2x1xf32>
    %54 = vector.broadcast %53 : vector<2x1xf32> to vector<2x16xf32>
    %55 = arith.mulf %50, %54 : vector<2x16xf32>
    %c0_25 = arith.constant 0 : index
    %c0_26 = arith.constant 0 : index
    %56 = vector.load %arg8[%c0_25, %c0_26] : memref<1x16xf32, #tpu.memory_space<vmem>>, vector<1x16xf32>
    %57 = vector.broadcast %56 : vector<1x16xf32> to vector<2x16xf32>
    %58 = arith.mulf %55, %57 : vector<2x16xf32>
    %c0_27 = arith.constant 0 : index
    %c0_28 = arith.constant 0 : index
    %59 = vector.load %arg9[%c0_27, %c0_28] : memref<1x16xf32, #tpu.memory_space<vmem>>, vector<1x16xf32>
    %60 = vector.broadcast %59 : vector<1x16xf32> to vector<2x16xf32>
    %61 = arith.addf %58, %60 : vector<2x16xf32>
    %cst_29 = arith.constant 0.000000e+00 : f32
    %62 = vector.broadcast %cst_29 : f32 to vector<2x16xf32>
    %63 = arith.maximumf %61, %62 : vector<2x16xf32>
    %c0_30 = arith.constant 0 : index
    %c0_31 = arith.constant 0 : index
    %64 = vector.load %arg10[%c0_30, %c0_31] : memref<2x16xf32, #tpu.memory_space<vmem>>, vector<2x16xf32>
    tpu.vector_store %arg10[%c0_30, %c0_31], %63 {strides = array<i32>} : memref<2x16xf32, #tpu.memory_space<vmem>>, vector<2x16xf32>,
    return
  }
  func.func @transform_0(%arg0: i32) -> (i32, i32) {
    %c0_i32 = arith.constant 0 : i32
    %c0_i32_0 = arith.constant 0 : i32
    return %arg0, %c0_i32 : i32, i32
  }
  func.func @transform_1(%arg0: i32) -> (i32, i32) {
    %c0_i32 = arith.constant 0 : i32
    %c0_i32_0 = arith.constant 0 : i32
    %c0_i32_1 = arith.constant 0 : i32
    return %c0_i32, %c0_i32_0 : i32, i32
  }
  func.func @transform_2(%arg0: i32) -> (i32, i32) {
    %c0_i32 = arith.constant 0 : i32
    %c0_i32_0 = arith.constant 0 : i32
    %c0_i32_1 = arith.constant 0 : i32
    return %c0_i32, %c0_i32_0 : i32, i32
  }
  func.func @transform_3(%arg0: i32) -> (i32, i32) {
    %c0_i32 = arith.constant 0 : i32
    %c0_i32_0 = arith.constant 0 : i32
    %c0_i32_1 = arith.constant 0 : i32
    return %c0_i32, %c0_i32_0 : i32, i32
  }
  func.func @transform_4(%arg0: i32) -> (i32, i32) {
    %c0_i32 = arith.constant 0 : i32
    %c0_i32_0 = arith.constant 0 : i32
    %c0_i32_1 = arith.constant 0 : i32
    return %c0_i32, %c0_i32_0 : i32, i32
  }
  func.func @transform_5(%arg0: i32) -> (i32, i32) {
    %c0_i32 = arith.constant 0 : i32
    %c0_i32_0 = arith.constant 0 : i32
    %c0_i32_1 = arith.constant 0 : i32
    return %c0_i32, %c0_i32_0 : i32, i32
  }
  func.func @transform_6(%arg0: i32) -> (i32, i32) {
    %c0_i32 = arith.constant 0 : i32
    %c0_i32_0 = arith.constant 0 : i32
    %c0_i32_1 = arith.constant 0 : i32
    return %c0_i32, %c0_i32_0 : i32, i32
  }
  func.func @transform_7(%arg0: i32) -> (i32, i32) {
    %c0_i32 = arith.constant 0 : i32
    %c0_i32_0 = arith.constant 0 : i32
    %c0_i32_1 = arith.constant 0 : i32
    return %c0_i32, %c0_i32_0 : i32, i32
  }
  func.func @transform_8(%arg0: i32) -> (i32, i32) {
    %c0_i32 = arith.constant 0 : i32
    %c0_i32_0 = arith.constant 0 : i32
    %c0_i32_1 = arith.constant 0 : i32
    return %c0_i32, %c0_i32_0 : i32, i32
  }
  func.func @transform_9(%arg0: i32) -> (i32, i32) {
    %c0_i32 = arith.constant 0 : i32
    %c0_i32_0 = arith.constant 0 : i32
    return %arg0, %c0_i32 : i32, i32
  }
}

module attributes {stable_mosaic.version = 11 : i64} {
  func.func @_reparam_kernel(%arg0: i32, %arg1: memref<2x16xf32, #tpu.memory_space<vmem>>, %arg2: memref<16x16xf32, #tpu.memory_space<vmem>>, %arg3: memref<16x16xf32, #tpu.memory_space<vmem>>, %arg4: memref<2x16xf32, #tpu.memory_space<vmem>>, %arg5: memref<2x16xf32, #tpu.memory_space<vmem>>, %arg6: memref<2x1xf32, #tpu.memory_space<vmem>>) attributes {dimension_semantics = [#tpu.dimension_semantics<parallel>], iteration_bounds = array<i64: 1>, scalar_prefetch = 0 : i64, scratch_operands = 0 : i64, tpu.core_type = #tpu.core_type<tc>, window_params = [{transform_indices = @transform_0, window_bounds = array<i64: 2, 16>}, {pipeline_mode = #tpu.pipeline_mode<synchronous>, transform_indices = @transform_1, window_bounds = array<i64: 16, 16>}, {pipeline_mode = #tpu.pipeline_mode<synchronous>, transform_indices = @transform_2, window_bounds = array<i64: 16, 16>}, {transform_indices = @transform_3, window_bounds = array<i64: 2, 16>}, {transform_indices = @transform_4, window_bounds = array<i64: 2, 16>}, {transform_indices = @transform_5, window_bounds = array<i64: 2, 1>}]} {
    %c0 = arith.constant 0 : index
    %c0_0 = arith.constant 0 : index
    %0 = vector.load %arg1[%c0, %c0_0] : memref<2x16xf32, #tpu.memory_space<vmem>>, vector<2x16xf32>
    %c0_1 = arith.constant 0 : index
    %c0_2 = arith.constant 0 : index
    %1 = vector.load %arg2[%c0_1, %c0_2] : memref<16x16xf32, #tpu.memory_space<vmem>>, vector<16x16xf32>
    %cst = arith.constant dense<0.000000e+00> : vector<2x16xf32>
    %2 = tpu.matmul %0, %1, %cst {dimension_numbers = #tpu.dot_dimension_numbers<[1], [0], [0], [1], [0, 0, 1, 1], [], []>} : vector<2x16xf32>, vector<16x16xf32>, vector<2x16xf32> -> vector<2x16xf32>
    %c0_3 = arith.constant 0 : index
    %c0_4 = arith.constant 0 : index
    %3 = vector.load %arg3[%c0_3, %c0_4] : memref<16x16xf32, #tpu.memory_space<vmem>>, vector<16x16xf32>
    %cst_5 = arith.constant dense<0.000000e+00> : vector<2x16xf32>
    %4 = tpu.matmul %0, %3, %cst_5 {dimension_numbers = #tpu.dot_dimension_numbers<[1], [0], [0], [1], [0, 0, 1, 1], [], []>} : vector<2x16xf32>, vector<16x16xf32>, vector<2x16xf32> -> vector<2x16xf32>
    %cst_6 = arith.constant 5.000000e-01 : f32
    %5 = vector.broadcast %cst_6 : f32 to vector<2x16xf32>
    %6 = arith.mulf %5, %4 : vector<2x16xf32>
    %7 = math.exp %6 : vector<2x16xf32>
    %c0_7 = arith.constant 0 : index
    %c0_8 = arith.constant 0 : index
    %8 = vector.load %arg4[%c0_7, %c0_8] : memref<2x16xf32, #tpu.memory_space<vmem>>, vector<2x16xf32>
    %9 = arith.mulf %7, %8 : vector<2x16xf32>
    %10 = arith.addf %2, %9 : vector<2x16xf32>
    %cst_9 = arith.constant -5.000000e-01 : f32
    %11 = vector.broadcast %cst_9 : f32 to vector<2x16xf32>
    %12 = arith.mulf %11, %4 : vector<2x16xf32>
    %cst_10 = arith.constant 5.000000e-01 : f32
    %13 = vector.broadcast %cst_10 : f32 to vector<2x16xf32>
    %14 = arith.mulf %13, %8 : vector<2x16xf32>
    %15 = arith.mulf %14, %8 : vector<2x16xf32>
    %16 = arith.subf %12, %15 : vector<2x16xf32>
    %cst_11 = arith.constant 0.918938517 : f32
    %17 = vector.broadcast %cst_11 : f32 to vector<2x16xf32>
    %18 = arith.subf %16, %17 : vector<2x16xf32>
    %cst_12 = arith.constant -5.000000e-01 : f32
    %19 = vector.broadcast %cst_12 : f32 to vector<2x16xf32>
    %20 = arith.mulf %19, %10 : vector<2x16xf32>
    %21 = arith.mulf %20, %10 : vector<2x16xf32>
    %cst_13 = arith.constant 0.918938517 : f32
    %22 = vector.broadcast %cst_13 : f32 to vector<2x16xf32>
    %23 = arith.subf %21, %22 : vector<2x16xf32>
    %24 = arith.subf %18, %23 : vector<2x16xf32>
    %cst_14 = arith.constant dense<0.000000e+00> : vector<2xf32>
    %25 = vector.multi_reduction <add>, %24, %cst_14 [1] : vector<2x16xf32> to vector<2xf32>
    %26 = vector.shape_cast %25 : vector<2xf32> to vector<2x1xf32>
    %c0_15 = arith.constant 0 : index
    %c0_16 = arith.constant 0 : index
    %27 = vector.load %arg6[%c0_15, %c0_16] : memref<2x1xf32, #tpu.memory_space<vmem>>, vector<2x1xf32>
    tpu.vector_store %arg6[%c0_15, %c0_16], %26 {strides = array<i32>} : memref<2x1xf32, #tpu.memory_space<vmem>>, vector<2x1xf32>,
    %c0_17 = arith.constant 0 : index
    %c0_18 = arith.constant 0 : index
    %28 = vector.load %arg5[%c0_17, %c0_18] : memref<2x16xf32, #tpu.memory_space<vmem>>, vector<2x16xf32>
    tpu.vector_store %arg5[%c0_17, %c0_18], %10 {strides = array<i32>} : memref<2x16xf32, #tpu.memory_space<vmem>>, vector<2x16xf32>,
    return
  }
  func.func @transform_0(%arg0: i32) -> (i32, i32) {
    %c0_i32 = arith.constant 0 : i32
    %c0_i32_0 = arith.constant 0 : i32
    return %arg0, %c0_i32 : i32, i32
  }
  func.func @transform_1(%arg0: i32) -> (i32, i32) {
    %c0_i32 = arith.constant 0 : i32
    %c0_i32_0 = arith.constant 0 : i32
    %c0_i32_1 = arith.constant 0 : i32
    return %c0_i32, %c0_i32_0 : i32, i32
  }
  func.func @transform_2(%arg0: i32) -> (i32, i32) {
    %c0_i32 = arith.constant 0 : i32
    %c0_i32_0 = arith.constant 0 : i32
    %c0_i32_1 = arith.constant 0 : i32
    return %c0_i32, %c0_i32_0 : i32, i32
  }
  func.func @transform_3(%arg0: i32) -> (i32, i32) {
    %c0_i32 = arith.constant 0 : i32
    %c0_i32_0 = arith.constant 0 : i32
    return %arg0, %c0_i32 : i32, i32
  }
  func.func @transform_4(%arg0: i32) -> (i32, i32) {
    %c0_i32 = arith.constant 0 : i32
    %c0_i32_0 = arith.constant 0 : i32
    return %arg0, %c0_i32 : i32, i32
  }
  func.func @transform_5(%arg0: i32) -> (i32, i32) {
    %c0_i32 = arith.constant 0 : i32
    %c0_i32_0 = arith.constant 0 : i32
    return %arg0, %c0_i32 : i32, i32
  }
}

module attributes {stable_mosaic.version = 11 : i64} {
  func.func @kernel(%arg0: i32, %arg1: memref<2x32xf32, #tpu.memory_space<vmem>>, %arg2: memref<32x32xbf16, #tpu.memory_space<vmem>>, %arg3: memref<1x32xf32, #tpu.memory_space<vmem>>, %arg4: memref<1x32xf32, #tpu.memory_space<vmem>>, %arg5: memref<1x32xf32, #tpu.memory_space<vmem>>, %arg6: memref<32x576xbf16, #tpu.memory_space<vmem>>, %arg7: memref<1x576xf32, #tpu.memory_space<vmem>>, %arg8: memref<1x576xf32, #tpu.memory_space<vmem>>, %arg9: memref<1x576xf32, #tpu.memory_space<vmem>>, %arg10: memref<2x576xf32, #tpu.memory_space<vmem>>) attributes {dimension_semantics = [#tpu.dimension_semantics<parallel>], iteration_bounds = array<i64: 1>, scalar_prefetch = 0 : i64, scratch_operands = 0 : i64, tpu.core_type = #tpu.core_type<tc>, window_params = [{transform_indices = @transform_0, window_bounds = array<i64: 2, 32>}, {pipeline_mode = #tpu.pipeline_mode<synchronous>, transform_indices = @transform_1, window_bounds = array<i64: 32, 32>}, {pipeline_mode = #tpu.pipeline_mode<synchronous>, transform_indices = @transform_2, window_bounds = array<i64: 1, 32>}, {pipeline_mode = #tpu.pipeline_mode<synchronous>, transform_indices = @transform_3, window_bounds = array<i64: 1, 32>}, {pipeline_mode = #tpu.pipeline_mode<synchronous>, transform_indices = @transform_4, window_bounds = array<i64: 1, 32>}, {pipeline_mode = #tpu.pipeline_mode<synchronous>, transform_indices = @transform_5, window_bounds = array<i64: 32, 576>}, {pipeline_mode = #tpu.pipeline_mode<synchronous>, transform_indices = @transform_6, window_bounds = array<i64: 1, 576>}, {pipeline_mode = #tpu.pipeline_mode<synchronous>, transform_indices = @transform_7, window_bounds = array<i64: 1, 576>}, {pipeline_mode = #tpu.pipeline_mode<synchronous>, transform_indices = @transform_8, window_bounds = array<i64: 1, 576>}, {transform_indices = @transform_9, window_bounds = array<i64: 2, 576>}]} {
    %c0 = arith.constant 0 : index
    %c0_0 = arith.constant 0 : index
    %0 = vector.load %arg1[%c0, %c0_0] : memref<2x32xf32, #tpu.memory_space<vmem>>, vector<2x32xf32>
    %1 = arith.truncf %0 : vector<2x32xf32> to vector<2x32xbf16>
    %c0_1 = arith.constant 0 : index
    %c0_2 = arith.constant 0 : index
    %2 = vector.load %arg2[%c0_1, %c0_2] : memref<32x32xbf16, #tpu.memory_space<vmem>>, vector<32x32xbf16>
    %cst = arith.constant dense<0.000000e+00> : vector<2x32xf32>
    %3 = tpu.matmul %1, %2, %cst {dimension_numbers = #tpu.dot_dimension_numbers<[1], [0], [0], [1], [0, 0, 1, 1], [], []>} : vector<2x32xbf16>, vector<32x32xbf16>, vector<2x32xf32> -> vector<2x32xf32>
    %c0_3 = arith.constant 0 : index
    %c0_4 = arith.constant 0 : index
    %4 = vector.load %arg3[%c0_3, %c0_4] : memref<1x32xf32, #tpu.memory_space<vmem>>, vector<1x32xf32>
    %5 = vector.broadcast %4 : vector<1x32xf32> to vector<2x32xf32>
    %6 = arith.addf %3, %5 : vector<2x32xf32>
    %cst_5 = arith.constant dense<0.000000e+00> : vector<2xf32>
    %7 = vector.multi_reduction <add>, %6, %cst_5 [1] : vector<2x32xf32> to vector<2xf32>
    %8 = vector.shape_cast %7 : vector<2xf32> to vector<2x1xf32>
    %cst_6 = arith.constant 3.200000e+01 : f32
    %9 = vector.broadcast %cst_6 : f32 to vector<2x1xf32>
    %10 = arith.divf %8, %9 : vector<2x1xf32>
    %11 = vector.broadcast %10 : vector<2x1xf32> to vector<2x32xf32>
    %12 = arith.subf %6, %11 : vector<2x32xf32>
    %13 = arith.mulf %12, %12 : vector<2x32xf32>
    %cst_7 = arith.constant dense<0.000000e+00> : vector<2xf32>
    %14 = vector.multi_reduction <add>, %13, %cst_7 [1] : vector<2x32xf32> to vector<2xf32>
    %15 = vector.shape_cast %14 : vector<2xf32> to vector<2x1xf32>
    %cst_8 = arith.constant 3.200000e+01 : f32
    %16 = vector.broadcast %cst_8 : f32 to vector<2x1xf32>
    %17 = arith.divf %15, %16 : vector<2x1xf32>
    %18 = vector.broadcast %10 : vector<2x1xf32> to vector<2x32xf32>
    %19 = arith.subf %6, %18 : vector<2x32xf32>
    %cst_9 = arith.constant 9.99999974E-6 : f32
    %20 = vector.broadcast %cst_9 : f32 to vector<2x1xf32>
    %21 = arith.addf %17, %20 : vector<2x1xf32>
    %22 = math.rsqrt %21 : vector<2x1xf32>
    %23 = vector.broadcast %22 : vector<2x1xf32> to vector<2x32xf32>
    %24 = arith.mulf %19, %23 : vector<2x32xf32>
    %c0_10 = arith.constant 0 : index
    %c0_11 = arith.constant 0 : index
    %25 = vector.load %arg4[%c0_10, %c0_11] : memref<1x32xf32, #tpu.memory_space<vmem>>, vector<1x32xf32>
    %26 = vector.broadcast %25 : vector<1x32xf32> to vector<2x32xf32>
    %27 = arith.mulf %24, %26 : vector<2x32xf32>
    %c0_12 = arith.constant 0 : index
    %c0_13 = arith.constant 0 : index
    %28 = vector.load %arg5[%c0_12, %c0_13] : memref<1x32xf32, #tpu.memory_space<vmem>>, vector<1x32xf32>
    %29 = vector.broadcast %28 : vector<1x32xf32> to vector<2x32xf32>
    %30 = arith.addf %27, %29 : vector<2x32xf32>
    %cst_14 = arith.constant 0.000000e+00 : f32
    %31 = vector.broadcast %cst_14 : f32 to vector<2x32xf32>
    %32 = arith.maximumf %30, %31 : vector<2x32xf32>
    %33 = arith.truncf %32 : vector<2x32xf32> to vector<2x32xbf16>
    %c0_15 = arith.constant 0 : index
    %c0_16 = arith.constant 0 : index
    %34 = vector.load %arg6[%c0_15, %c0_16] : memref<32x576xbf16, #tpu.memory_space<vmem>>, vector<32x576xbf16>
    %cst_17 = arith.constant dense<0.000000e+00> : vector<2x576xf32>
    %35 = tpu.matmul %33, %34, %cst_17 {dimension_numbers = #tpu.dot_dimension_numbers<[1], [0], [0], [1], [0, 0, 1, 1], [], []>} : vector<2x32xbf16>, vector<32x576xbf16>, vector<2x576xf32> -> vector<2x576xf32>
    %c0_18 = arith.constant 0 : index
    %c0_19 = arith.constant 0 : index
    %36 = vector.load %arg7[%c0_18, %c0_19] : memref<1x576xf32, #tpu.memory_space<vmem>>, vector<1x576xf32>
    %37 = vector.broadcast %36 : vector<1x576xf32> to vector<2x576xf32>
    %38 = arith.addf %35, %37 : vector<2x576xf32>
    %cst_20 = arith.constant dense<0.000000e+00> : vector<2xf32>
    %39 = vector.multi_reduction <add>, %38, %cst_20 [1] : vector<2x576xf32> to vector<2xf32>
    %40 = vector.shape_cast %39 : vector<2xf32> to vector<2x1xf32>
    %cst_21 = arith.constant 5.760000e+02 : f32
    %41 = vector.broadcast %cst_21 : f32 to vector<2x1xf32>
    %42 = arith.divf %40, %41 : vector<2x1xf32>
    %43 = vector.broadcast %42 : vector<2x1xf32> to vector<2x576xf32>
    %44 = arith.subf %38, %43 : vector<2x576xf32>
    %45 = arith.mulf %44, %44 : vector<2x576xf32>
    %cst_22 = arith.constant dense<0.000000e+00> : vector<2xf32>
    %46 = vector.multi_reduction <add>, %45, %cst_22 [1] : vector<2x576xf32> to vector<2xf32>
    %47 = vector.shape_cast %46 : vector<2xf32> to vector<2x1xf32>
    %cst_23 = arith.constant 5.760000e+02 : f32
    %48 = vector.broadcast %cst_23 : f32 to vector<2x1xf32>
    %49 = arith.divf %47, %48 : vector<2x1xf32>
    %50 = vector.broadcast %42 : vector<2x1xf32> to vector<2x576xf32>
    %51 = arith.subf %38, %50 : vector<2x576xf32>
    %cst_24 = arith.constant 9.99999974E-6 : f32
    %52 = vector.broadcast %cst_24 : f32 to vector<2x1xf32>
    %53 = arith.addf %49, %52 : vector<2x1xf32>
    %54 = math.rsqrt %53 : vector<2x1xf32>
    %55 = vector.broadcast %54 : vector<2x1xf32> to vector<2x576xf32>
    %56 = arith.mulf %51, %55 : vector<2x576xf32>
    %c0_25 = arith.constant 0 : index
    %c0_26 = arith.constant 0 : index
    %57 = vector.load %arg8[%c0_25, %c0_26] : memref<1x576xf32, #tpu.memory_space<vmem>>, vector<1x576xf32>
    %58 = vector.broadcast %57 : vector<1x576xf32> to vector<2x576xf32>
    %59 = arith.mulf %56, %58 : vector<2x576xf32>
    %c0_27 = arith.constant 0 : index
    %c0_28 = arith.constant 0 : index
    %60 = vector.load %arg9[%c0_27, %c0_28] : memref<1x576xf32, #tpu.memory_space<vmem>>, vector<1x576xf32>
    %61 = vector.broadcast %60 : vector<1x576xf32> to vector<2x576xf32>
    %62 = arith.addf %59, %61 : vector<2x576xf32>
    %cst_29 = arith.constant 0.000000e+00 : f32
    %63 = vector.broadcast %cst_29 : f32 to vector<2x576xf32>
    %64 = arith.maximumf %62, %63 : vector<2x576xf32>
    %c0_30 = arith.constant 0 : index
    %c0_31 = arith.constant 0 : index
    %65 = vector.load %arg10[%c0_30, %c0_31] : memref<2x576xf32, #tpu.memory_space<vmem>>, vector<2x576xf32>
    tpu.vector_store %arg10[%c0_30, %c0_31], %64 {strides = array<i32>} : memref<2x576xf32, #tpu.memory_space<vmem>>, vector<2x576xf32>,
    return
  }
  func.func @transform_0(%arg0: i32) -> (i32, i32) {
    %c0_i32 = arith.constant 0 : i32
    %c0_i32_0 = arith.constant 0 : i32
    return %arg0, %c0_i32 : i32, i32
  }
  func.func @transform_1(%arg0: i32) -> (i32, i32) {
    %c0_i32 = arith.constant 0 : i32
    %c0_i32_0 = arith.constant 0 : i32
    %c0_i32_1 = arith.constant 0 : i32
    return %c0_i32, %c0_i32_0 : i32, i32
  }
  func.func @transform_2(%arg0: i32) -> (i32, i32) {
    %c0_i32 = arith.constant 0 : i32
    %c0_i32_0 = arith.constant 0 : i32
    %c0_i32_1 = arith.constant 0 : i32
    return %c0_i32, %c0_i32_0 : i32, i32
  }
  func.func @transform_3(%arg0: i32) -> (i32, i32) {
    %c0_i32 = arith.constant 0 : i32
    %c0_i32_0 = arith.constant 0 : i32
    %c0_i32_1 = arith.constant 0 : i32
    return %c0_i32, %c0_i32_0 : i32, i32
  }
  func.func @transform_4(%arg0: i32) -> (i32, i32) {
    %c0_i32 = arith.constant 0 : i32
    %c0_i32_0 = arith.constant 0 : i32
    %c0_i32_1 = arith.constant 0 : i32
    return %c0_i32, %c0_i32_0 : i32, i32
  }
  func.func @transform_5(%arg0: i32) -> (i32, i32) {
    %c0_i32 = arith.constant 0 : i32
    %c0_i32_0 = arith.constant 0 : i32
    %c0_i32_1 = arith.constant 0 : i32
    return %c0_i32, %c0_i32_0 : i32, i32
  }
  func.func @transform_6(%arg0: i32) -> (i32, i32) {
    %c0_i32 = arith.constant 0 : i32
    %c0_i32_0 = arith.constant 0 : i32
    %c0_i32_1 = arith.constant 0 : i32
    return %c0_i32, %c0_i32_0 : i32, i32
  }
  func.func @transform_7(%arg0: i32) -> (i32, i32) {
    %c0_i32 = arith.constant 0 : i32
    %c0_i32_0 = arith.constant 0 : i32
    %c0_i32_1 = arith.constant 0 : i32
    return %c0_i32, %c0_i32_0 : i32, i32
  }
  func.func @transform_8(%arg0: i32) -> (i32, i32) {
    %c0_i32 = arith.constant 0 : i32
    %c0_i32_0 = arith.constant 0 : i32
    %c0_i32_1 = arith.constant 0 : i32
    return %c0_i32, %c0_i32_0 : i32, i32
  }
  func.func @transform_9(%arg0: i32) -> (i32, i32) {
    %c0_i32 = arith.constant 0 : i32
    %c0_i32_0 = arith.constant 0 : i32
    return %arg0, %c0_i32 : i32, i32
  }
}

module attributes {stable_mosaic.version = 11 : i64} {
  func.func @kernel(%arg0: i32, %arg1: memref<98x64xbf16, #tpu.memory_space<vmem>>, %arg2: memref<64x128xbf16, #tpu.memory_space<vmem>>, %arg3: memref<98x128xbf16, #tpu.memory_space<vmem>>, %arg4: memref<1x128xf32, #tpu.memory_space<vmem>>, %arg5: memref<1x128xf32, #tpu.memory_space<vmem>>) attributes {dimension_semantics = [#tpu.dimension_semantics<arbitrary>], iteration_bounds = array<i64: 1>, scalar_prefetch = 0 : i64, scratch_operands = 0 : i64, tpu.core_type = #tpu.core_type<tc>, window_params = [{transform_indices = @transform_0, window_bounds = array<i64: 98, 64>}, {pipeline_mode = #tpu.pipeline_mode<synchronous>, transform_indices = @transform_1, window_bounds = array<i64: 64, 128>}, {transform_indices = @transform_2, window_bounds = array<i64: 98, 128>}, {pipeline_mode = #tpu.pipeline_mode<synchronous>, transform_indices = @transform_3, window_bounds = array<i64: 1, 128>}, {pipeline_mode = #tpu.pipeline_mode<synchronous>, transform_indices = @transform_4, window_bounds = array<i64: 1, 128>}]} {
    %c0 = arith.constant 0 : index
    %c0_0 = arith.constant 0 : index
    %0 = vector.load %arg1[%c0, %c0_0] : memref<98x64xbf16, #tpu.memory_space<vmem>>, vector<98x64xbf16>
    %c0_1 = arith.constant 0 : index
    %c0_2 = arith.constant 0 : index
    %1 = vector.load %arg2[%c0_1, %c0_2] : memref<64x128xbf16, #tpu.memory_space<vmem>>, vector<64x128xbf16>
    %cst = arith.constant dense<0.000000e+00> : vector<98x128xf32>
    %2 = tpu.matmul %0, %1, %cst {dimension_numbers = #tpu.dot_dimension_numbers<[1], [0], [0], [1], [0, 0, 1, 1], [], []>} : vector<98x64xbf16>, vector<64x128xbf16>, vector<98x128xf32> -> vector<98x128xf32>
    %cst_3 = arith.constant 0.000000e+00 : f32
    %3 = vector.broadcast %cst_3 : f32 to vector<98x128xf32>
    %4 = arith.maximumf %2, %3 : vector<98x128xf32>
    %5 = arith.truncf %4 : vector<98x128xf32> to vector<98x128xbf16>
    %c0_4 = arith.constant 0 : index
    %c0_5 = arith.constant 0 : index
    %6 = vector.load %arg3[%c0_4, %c0_5] : memref<98x128xbf16, #tpu.memory_space<vmem>>, vector<98x128xbf16>
    tpu.vector_store %arg3[%c0_4, %c0_5], %5 {strides = array<i32>} : memref<98x128xbf16, #tpu.memory_space<vmem>>, vector<98x128xbf16>,
    %c0_i32 = arith.constant 0 : i32
    %7 = arith.cmpi eq, %arg0, %c0_i32 : i32
    %8 = arith.extui %7 : i1 to i32
    %c0_i32_6 = arith.constant 0 : i32
    %9 = arith.cmpi ne, %8, %c0_i32_6 : i32
    scf.if %9 {
      %cst_17 = arith.constant 0.000000e+00 : f32
      %21 = vector.broadcast %cst_17 : f32 to vector<1x128xf32>
      %c0_18 = arith.constant 0 : index
      %c0_19 = arith.constant 0 : index
      %22 = vector.load %arg4[%c0_18, %c0_19] : memref<1x128xf32, #tpu.memory_space<vmem>>, vector<1x128xf32>
      tpu.vector_store %arg4[%c0_18, %c0_19], %21 {strides = array<i32>} : memref<1x128xf32, #tpu.memory_space<vmem>>, vector<1x128xf32>,
      %cst_20 = arith.constant 0.000000e+00 : f32
      %23 = vector.broadcast %cst_20 : f32 to vector<1x128xf32>
      %c0_21 = arith.constant 0 : index
      %c0_22 = arith.constant 0 : index
      %24 = vector.load %arg5[%c0_21, %c0_22] : memref<1x128xf32, #tpu.memory_space<vmem>>, vector<1x128xf32>
      tpu.vector_store %arg5[%c0_21, %c0_22], %23 {strides = array<i32>} : memref<1x128xf32, #tpu.memory_space<vmem>>, vector<1x128xf32>,
    } else {
    }
    %c0_7 = arith.constant 0 : index
    %c0_8 = arith.constant 0 : index
    %10 = vector.load %arg4[%c0_7, %c0_8] : memref<1x128xf32, #tpu.memory_space<vmem>>, vector<1x128xf32>
    %cst_9 = arith.constant dense<0.000000e+00> : vector<128xf32>
    %11 = vector.multi_reduction <add>, %4, %cst_9 [0] : vector<98x128xf32> to vector<128xf32>
    %12 = vector.shape_cast %11 : vector<128xf32> to vector<1x128xf32>
    %13 = arith.addf %10, %12 : vector<1x128xf32>
    %c0_10 = arith.constant 0 : index
    %c0_11 = arith.constant 0 : index
    %14 = vector.load %arg4[%c0_10, %c0_11] : memref<1x128xf32, #tpu.memory_space<vmem>>, vector<1x128xf32>
    tpu.vector_store %arg4[%c0_10, %c0_11], %13 {strides = array<i32>} : memref<1x128xf32, #tpu.memory_space<vmem>>, vector<1x128xf32>,
    %c0_12 = arith.constant 0 : index
    %c0_13 = arith.constant 0 : index
    %15 = vector.load %arg5[%c0_12, %c0_13] : memref<1x128xf32, #tpu.memory_space<vmem>>, vector<1x128xf32>
    %16 = arith.mulf %4, %4 : vector<98x128xf32>
    %cst_14 = arith.constant dense<0.000000e+00> : vector<128xf32>
    %17 = vector.multi_reduction <add>, %16, %cst_14 [0] : vector<98x128xf32> to vector<128xf32>
    %18 = vector.shape_cast %17 : vector<128xf32> to vector<1x128xf32>
    %19 = arith.addf %15, %18 : vector<1x128xf32>
    %c0_15 = arith.constant 0 : index
    %c0_16 = arith.constant 0 : index
    %20 = vector.load %arg5[%c0_15, %c0_16] : memref<1x128xf32, #tpu.memory_space<vmem>>, vector<1x128xf32>
    tpu.vector_store %arg5[%c0_15, %c0_16], %19 {strides = array<i32>} : memref<1x128xf32, #tpu.memory_space<vmem>>, vector<1x128xf32>,
    return
  }
  func.func @transform_0(%arg0: i32) -> (i32, i32) {
    %c0_i32 = arith.constant 0 : i32
    %c0_i32_0 = arith.constant 0 : i32
    return %arg0, %c0_i32 : i32, i32
  }
  func.func @transform_1(%arg0: i32) -> (i32, i32) {
    %c0_i32 = arith.constant 0 : i32
    %c0_i32_0 = arith.constant 0 : i32
    %c0_i32_1 = arith.constant 0 : i32
    return %c0_i32, %c0_i32_0 : i32, i32
  }
  func.func @transform_2(%arg0: i32) -> (i32, i32) {
    %c0_i32 = arith.constant 0 : i32
    %c0_i32_0 = arith.constant 0 : i32
    return %arg0, %c0_i32 : i32, i32
  }
  func.func @transform_3(%arg0: i32) -> (i32, i32) {
    %c0_i32 = arith.constant 0 : i32
    %c0_i32_0 = arith.constant 0 : i32
    %c0_i32_1 = arith.constant 0 : i32
    return %c0_i32, %c0_i32_0 : i32, i32
  }
  func.func @transform_4(%arg0: i32) -> (i32, i32) {
    %c0_i32 = arith.constant 0 : i32
    %c0_i32_0 = arith.constant 0 : i32
    %c0_i32_1 = arith.constant 0 : i32
    return %c0_i32, %c0_i32_0 : i32, i32
  }
}

module attributes {stable_mosaic.version = 11 : i64} {
  func.func @_affine_kernel(%arg0: i32, %arg1: memref<98x128xbf16, #tpu.memory_space<vmem>>, %arg2: memref<1x128xf32, #tpu.memory_space<vmem>>, %arg3: memref<1x128xf32, #tpu.memory_space<vmem>>, %arg4: memref<98x128xbf16, #tpu.memory_space<vmem>>) attributes {dimension_semantics = [#tpu.dimension_semantics<parallel>], iteration_bounds = array<i64: 1>, scalar_prefetch = 0 : i64, scratch_operands = 0 : i64, tpu.core_type = #tpu.core_type<tc>, window_params = [{transform_indices = @transform_0, window_bounds = array<i64: 98, 128>}, {pipeline_mode = #tpu.pipeline_mode<synchronous>, transform_indices = @transform_1, window_bounds = array<i64: 1, 128>}, {pipeline_mode = #tpu.pipeline_mode<synchronous>, transform_indices = @transform_2, window_bounds = array<i64: 1, 128>}, {transform_indices = @transform_3, window_bounds = array<i64: 98, 128>}]} {
    %c0 = arith.constant 0 : index
    %c0_0 = arith.constant 0 : index
    %0 = vector.load %arg1[%c0, %c0_0] : memref<98x128xbf16, #tpu.memory_space<vmem>>, vector<98x128xbf16>
    %1 = arith.extf %0 : vector<98x128xbf16> to vector<98x128xf32>
    %c0_1 = arith.constant 0 : index
    %c0_2 = arith.constant 0 : index
    %2 = vector.load %arg2[%c0_1, %c0_2] : memref<1x128xf32, #tpu.memory_space<vmem>>, vector<1x128xf32>
    %3 = vector.broadcast %2 : vector<1x128xf32> to vector<98x128xf32>
    %4 = arith.mulf %1, %3 : vector<98x128xf32>
    %c0_3 = arith.constant 0 : index
    %c0_4 = arith.constant 0 : index
    %5 = vector.load %arg3[%c0_3, %c0_4] : memref<1x128xf32, #tpu.memory_space<vmem>>, vector<1x128xf32>
    %6 = vector.broadcast %5 : vector<1x128xf32> to vector<98x128xf32>
    %7 = arith.addf %4, %6 : vector<98x128xf32>
    %8 = arith.truncf %7 : vector<98x128xf32> to vector<98x128xbf16>
    %c0_5 = arith.constant 0 : index
    %c0_6 = arith.constant 0 : index
    %9 = vector.load %arg4[%c0_5, %c0_6] : memref<98x128xbf16, #tpu.memory_space<vmem>>, vector<98x128xbf16>
    tpu.vector_store %arg4[%c0_5, %c0_6], %8 {strides = array<i32>} : memref<98x128xbf16, #tpu.memory_space<vmem>>, vector<98x128xbf16>,
    return
  }
  func.func @transform_0(%arg0: i32) -> (i32, i32) {
    %c0_i32 = arith.constant 0 : i32
    %c0_i32_0 = arith.constant 0 : i32
    return %arg0, %c0_i32 : i32, i32
  }
  func.func @transform_1(%arg0: i32) -> (i32, i32) {
    %c0_i32 = arith.constant 0 : i32
    %c0_i32_0 = arith.constant 0 : i32
    %c0_i32_1 = arith.constant 0 : i32
    return %c0_i32, %c0_i32_0 : i32, i32
  }
  func.func @transform_2(%arg0: i32) -> (i32, i32) {
    %c0_i32 = arith.constant 0 : i32
    %c0_i32_0 = arith.constant 0 : i32
    %c0_i32_1 = arith.constant 0 : i32
    return %c0_i32, %c0_i32_0 : i32, i32
  }
  func.func @transform_3(%arg0: i32) -> (i32, i32) {
    %c0_i32 = arith.constant 0 : i32
    %c0_i32_0 = arith.constant 0 : i32
    return %arg0, %c0_i32 : i32, i32
  }
}

module attributes {stable_mosaic.version = 11 : i64} {
  func.func @kernel(%arg0: i32, %arg1: memref<450x32xbf16, #tpu.memory_space<vmem>>, %arg2: memref<32x128xbf16, #tpu.memory_space<vmem>>, %arg3: memref<450x128xbf16, #tpu.memory_space<vmem>>) attributes {dimension_semantics = [#tpu.dimension_semantics<parallel>], iteration_bounds = array<i64: 1>, scalar_prefetch = 0 : i64, scratch_operands = 0 : i64, tpu.core_type = #tpu.core_type<tc>, window_params = [{transform_indices = @transform_0, window_bounds = array<i64: 450, 32>}, {pipeline_mode = #tpu.pipeline_mode<synchronous>, transform_indices = @transform_1, window_bounds = array<i64: 32, 128>}, {transform_indices = @transform_2, window_bounds = array<i64: 450, 128>}]} {
    %c0 = arith.constant 0 : index
    %c0_0 = arith.constant 0 : index
    %0 = vector.load %arg1[%c0, %c0_0] : memref<450x32xbf16, #tpu.memory_space<vmem>>, vector<450x32xbf16>
    %c0_1 = arith.constant 0 : index
    %c0_2 = arith.constant 0 : index
    %1 = vector.load %arg2[%c0_1, %c0_2] : memref<32x128xbf16, #tpu.memory_space<vmem>>, vector<32x128xbf16>
    %cst = arith.constant dense<0.000000e+00> : vector<450x128xf32>
    %2 = tpu.matmul %0, %1, %cst {dimension_numbers = #tpu.dot_dimension_numbers<[1], [0], [0], [1], [0, 0, 1, 1], [], []>} : vector<450x32xbf16>, vector<32x128xbf16>, vector<450x128xf32> -> vector<450x128xf32>
    %3 = arith.negf %2 : vector<450x128xf32>
    %4 = math.exp %3 : vector<450x128xf32>
    %cst_3 = arith.constant 1.000000e+00 : f32
    %5 = vector.broadcast %cst_3 : f32 to vector<450x128xf32>
    %6 = arith.addf %5, %4 : vector<450x128xf32>
    %7 = arith.divf %5, %6 : vector<450x128xf32>
    %8 = arith.truncf %7 : vector<450x128xf32> to vector<450x128xbf16>
    %c0_4 = arith.constant 0 : index
    %c0_5 = arith.constant 0 : index
    %9 = vector.load %arg3[%c0_4, %c0_5] : memref<450x128xbf16, #tpu.memory_space<vmem>>, vector<450x128xbf16>
    tpu.vector_store %arg3[%c0_4, %c0_5], %8 {strides = array<i32>} : memref<450x128xbf16, #tpu.memory_space<vmem>>, vector<450x128xbf16>,
    return
  }
  func.func @transform_0(%arg0: i32) -> (i32, i32) {
    %c0_i32 = arith.constant 0 : i32
    %c0_i32_0 = arith.constant 0 : i32
    return %arg0, %c0_i32 : i32, i32
  }
  func.func @transform_1(%arg0: i32) -> (i32, i32) {
    %c0_i32 = arith.constant 0 : i32
    %c0_i32_0 = arith.constant 0 : i32
    %c0_i32_1 = arith.constant 0 : i32
    return %c0_i32, %c0_i32_0 : i32, i32
  }
  func.func @transform_2(%arg0: i32) -> (i32, i32) {
    %c0_i32 = arith.constant 0 : i32
    %c0_i32_0 = arith.constant 0 : i32
    return %arg0, %c0_i32 : i32, i32
  }
}

</mosaic_0001>

<bundles_post_ra>
// kernel: forward.10
= control target key start
LH: loop header
LB: loop body
LE: loop exit
PB: predicated region body
PF: predicated region fallthrough
CT: control target
= control target key end

     0   :  { %s862_s0 = inlined_call_operand.vmem [shape: bf16[392,128], index: 0, kind: input, shape index: {}]   ;;  %s863_s1 = inlined_call_operand.vmem [shape: f32[1,128], index: 1, kind: input, shape index: {}]   ;;  %s864_s2 = inlined_call_operand.vmem [shape: f32[1,128], index: 2, kind: input, shape index: {}]   ;;  %s865_s3 = inlined_call_operand.vmem [shape: bf16[392,128], index: 3, kind: output, shape index: {}]  }
   0x1   :  { %v321_v0 = vld [vmem:[%s862_s0] sm:$0xff]   ;;  %v536_v5 = vld [vmem:[%s862_s0 + $0x8] sm:$0xff]   ;;  %v537_v8 = vld [vmem:[%s862_s0 + $0x10] sm:$0xff]  }
   0x2   :  { %v610_v1 = vld [vmem:[%s863_s1] ss:$0 sm:$0xff]  ;;  %v322_v2 = vunpack.c.l.bf16 %v321_v0  ;;  %v323_v3 = vunpack.c.h.bf16 %v321_v0  ;;  %v326_v6 = vunpack.c.l.bf16 %v536_v5  ;;  %v327_v7 = vunpack.c.h.bf16 %v536_v5  ;;  %v538_v9 = vld [vmem:[%s862_s0 + $0x18] sm:$0xff]   ;;  %v540_v27 = vld [vmem:[%s862_s0 + $0x28] sm:$0xff]  }
   0x3   :  { %v615_v4 = vld [vmem:[%s864_s2] ss:$0 sm:$0xff]  ;;  %v330_v12 = vunpack.c.l.bf16 %v537_v8  ;;  %v331_v13 = vunpack.c.h.bf16 %v537_v8  ;;  %v334_v16 = vunpack.c.l.bf16 %v538_v9  ;;  %v335_v17 = vunpack.c.h.bf16 %v538_v9  ;;  %v541_v32 = vld [vmem:[%s862_s0 + $0x30] sm:$0xff]   ;;  %v542_v37 = vld [vmem:[%s862_s0 + $0x38] sm:$0xff]  }
   0x4   :  { %v116_v10 = vmul.f32 %v610_v1, %v322_v2  ;;  %v117_v11 = vmul.f32 %v610_v1, %v323_v3  ;;  %v118_v14 = vmul.f32 %v610_v1, %v326_v6  ;;  %v119_v15 = vmul.f32 %v610_v1, %v327_v7  ;;  %v539_v18 = vld [vmem:[%s862_s0 + $0x20] sm:$0xff]   ;;  %v544_v59 = vld [vmem:[%s862_s0 + $0x48] sm:$0xff]   ;;  %v545_v0 = vld [vmem:[%s862_s0 + $0x50] sm:$0xff]  }
   0x5   :  { %v120_v21 = vmul.f32 %v610_v1, %v330_v12  ;;  %v121_v22 = vmul.f32 %v610_v1, %v331_v13  ;;  %v122_v25 = vmul.f32 %v610_v1, %v334_v16  ;;  %v123_v26 = vmul.f32 %v610_v1, %v335_v17  ;;  %v543_v46 = vld [vmem:[%s862_s0 + $0x40] sm:$0xff]   ;;  %v546_v7 = vld [vmem:[%s862_s0 + $0x58] sm:$0xff]  }
   0x6   :  { %v169_v19 = vadd.f32 %v615_v4, %v116_v10  ;;  %v170_v20 = vadd.f32 %v615_v4, %v117_v11  ;;  %v171_v23 = vadd.f32 %v615_v4, %v118_v14  ;;  %v172_v24 = vadd.f32 %v615_v4, %v119_v15  ;;  %v547_v16 = vld [vmem:[%s862_s0 + $0x60] sm:$0xff]  }
   0x7   :  { %v173_v29 = vadd.f32 %v615_v4, %v120_v21  ;;  %v174_v30 = vadd.f32 %v615_v4, %v121_v22  ;;  %v338_v31 = vunpack.c.l.bf16 %v539_v18  ;;  %v175_v34 = vadd.f32 %v615_v4, %v122_v25 }
   0x8   :  { %v419_v28 = vpack.c.bf16 %v170_v20, %v169_v19  ;;  %v424_v33 = vpack.c.bf16 %v172_v24, %v171_v23  ;;  %v176_v35 = vadd.f32 %v615_v4, %v123_v26  ;;  %v339_v36 = vunpack.c.h.bf16 %v539_v18 }
   0x9   :  { %v429_v38 = vpack.c.bf16 %v174_v30, %v173_v29  ;;  %v124_v39 = vmul.f32 %v610_v1, %v338_v31  ;;  %v342_v40 = vunpack.c.l.bf16 %v540_v27  ;;  %v343_v41 = vunpack.c.h.bf16 %v540_v27  ;;  %v548_v29 = vld [vmem:[%s862_s0 + $0x68] sm:$0xff]  }
   0xa   :  { %420 = vst [vmem:[%s865_s3] sm:$0xff] %v419_v28   ;;  %v434_v42 = vpack.c.bf16 %v176_v35, %v175_v34  ;;  %v125_v43 = vmul.f32 %v610_v1, %v339_v36  ;;  %v346_v44 = vunpack.c.l.bf16 %v541_v32  ;;  %v347_v45 = vunpack.c.h.bf16 %v541_v32  ;;  %v549_v34 = vld [vmem:[%s862_s0 + $0x70] sm:$0xff]  }
   0xb   :  { %559 = vst [vmem:[%s865_s3 + $0x8] sm:$0xff] %v424_v33   ;;  %v177_v47 = vadd.f32 %v615_v4, %v124_v39  ;;  %v126_v48 = vmul.f32 %v610_v1, %v342_v40  ;;  %v127_v49 = vmul.f32 %v610_v1, %v343_v41  ;;  %v350_v50 = vunpack.c.l.bf16 %v542_v37  ;;  %v550_v39 = vld [vmem:[%s862_s0 + $0x78] sm:$0xff]  }
   0xc   :  { %560 = vst [vmem:[%s865_s3 + $0x10] sm:$0xff] %v429_v38   ;;  %v178_v51 = vadd.f32 %v615_v4, %v125_v43  ;;  %v128_v52 = vmul.f32 %v610_v1, %v346_v44  ;;  %v129_v53 = vmul.f32 %v610_v1, %v347_v45  ;;  %v351_v54 = vunpack.c.h.bf16 %v542_v37 }
   0xd   :  { %561 = vst [vmem:[%s865_s3 + $0x18] sm:$0xff] %v434_v42   ;;  %v179_v55 = vadd.f32 %v615_v4, %v126_v48  ;;  %v180_v56 = vadd.f32 %v615_v4, %v127_v49  ;;  %v130_v57 = vmul.f32 %v610_v1, %v350_v50  ;;  %v354_v58 = vunpack.c.l.bf16 %v543_v46  ;;  %v551_v48 = vld [vmem:[%s862_s0 + $0x80] sm:$0xff]  }
   0xe   :  { %v439_v60 = vpack.c.bf16 %v178_v51, %v177_v47  ;;  %v181_v61 = vadd.f32 %v615_v4, %v128_v52  ;;  %v182_v62 = vadd.f32 %v615_v4, %v129_v53  ;;  %v131_v63 = vmul.f32 %v610_v1, %v351_v54 }
   0xf   :  { %v444_v2 = vpack.c.bf16 %v180_v56, %v179_v55  ;;  %v183_v3 = vadd.f32 %v615_v4, %v130_v57  ;;  %v355_v5 = vunpack.c.h.bf16 %v543_v46  ;;  %v132_v6 = vmul.f32 %v610_v1, %v354_v58 }
  0x10   :  { %562 = vst [vmem:[%s865_s3 + $0x20] sm:$0xff] %v439_v60   ;;  %v449_v8 = vpack.c.bf16 %v182_v62, %v181_v61  ;;  %v184_v9 = vadd.f32 %v615_v4, %v131_v63  ;;  %v358_v10 = vunpack.c.l.bf16 %v544_v59  ;;  %v359_v11 = vunpack.c.h.bf16 %v544_v59  ;;  %v552_v61 = vld [vmem:[%s862_s0 + $0x88] sm:$0xff]  }
  0x11   :  { %563 = vst [vmem:[%s865_s3 + $0x28] sm:$0xff] %v444_v2   ;;  %v133_v12 = vmul.f32 %v610_v1, %v355_v5  ;;  %v185_v13 = vadd.f32 %v615_v4, %v132_v6  ;;  %v362_v14 = vunpack.c.l.bf16 %v545_v0  ;;  %v363_v15 = vunpack.c.h.bf16 %v545_v0 }
  0x12   :  { %564 = vst [vmem:[%s865_s3 + $0x30] sm:$0xff] %v449_v8   ;;  %v454_v17 = vpack.c.bf16 %v184_v9, %v183_v3  ;;  %v134_v18 = vmul.f32 %v610_v1, %v358_v10  ;;  %v135_v19 = vmul.f32 %v610_v1, %v359_v11  ;;  %v366_v20 = vunpack.c.l.bf16 %v546_v7  ;;  %v553_v3 = vld [vmem:[%s862_s0 + $0x90] sm:$0xff]   ;;  %v554_v9 = vld [vmem:[%s862_s0 + $0x98] sm:$0xff]  }
  0x13   :  { %v186_v21 = vadd.f32 %v615_v4, %v133_v12  ;;  %v136_v22 = vmul.f32 %v610_v1, %v362_v14  ;;  %v137_v23 = vmul.f32 %v610_v1, %v363_v15  ;;  %v367_v24 = vunpack.c.h.bf16 %v546_v7 }
  0x14   :  { %565 = vst [vmem:[%s865_s3 + $0x38] sm:$0xff] %v454_v17   ;;  %v187_v25 = vadd.f32 %v615_v4, %v134_v18  ;;  %v188_v26 = vadd.f32 %v615_v4, %v135_v19  ;;  %v138_v27 = vmul.f32 %v610_v1, %v366_v20  ;;  %v370_v28 = vunpack.c.l.bf16 %v547_v16  ;;  %v555_v18 = vld [vmem:[%s862_s0 + $0xa0] sm:$0xff]  }
  0x15   :  { %v459_v30 = vpack.c.bf16 %v186_v21, %v185_v13  ;;  %v189_v31 = vadd.f32 %v615_v4, %v136_v22  ;;  %v190_v32 = vadd.f32 %v615_v4, %v137_v23  ;;  %v139_v33 = vmul.f32 %v610_v1, %v367_v24 }
  0x16   :  { %v464_v35 = vpack.c.bf16 %v188_v26, %v187_v25  ;;  %v191_v36 = vadd.f32 %v615_v4, %v138_v27  ;;  %v371_v37 = vunpack.c.h.bf16 %v547_v16  ;;  %v140_v38 = vmul.f32 %v610_v1, %v370_v28 }
  0x17   :  { %566 = vst [vmem:[%s865_s3 + $0x40] sm:$0xff] %v459_v30   ;;  %v469_v40 = vpack.c.bf16 %v190_v32, %v189_v31  ;;  %v192_v41 = vadd.f32 %v615_v4, %v139_v33  ;;  %v374_v42 = vunpack.c.l.bf16 %v548_v29  ;;  %v375_v43 = vunpack.c.h.bf16 %v548_v29  ;;  %v556_v31 = vld [vmem:[%s862_s0 + $0xa8] sm:$0xff]  }
  0x18   :  { %567 = vst [vmem:[%s865_s3 + $0x48] sm:$0xff] %v464_v35   ;;  %v141_v44 = vmul.f32 %v610_v1, %v371_v37  ;;  %v193_v45 = vadd.f32 %v615_v4, %v140_v38  ;;  %v378_v46 = vunpack.c.l.bf16 %v549_v34  ;;  %v379_v47 = vunpack.c.h.bf16 %v549_v34 }
  0x19   :  { %568 = vst [vmem:[%s865_s3 + $0x50] sm:$0xff] %v469_v40   ;;  %v474_v49 = vpack.c.bf16 %v192_v41, %v191_v36  ;;  %v142_v50 = vmul.f32 %v610_v1, %v374_v42  ;;  %v143_v51 = vmul.f32 %v610_v1, %v375_v43  ;;  %v382_v52 = vunpack.c.l.bf16 %v550_v39  ;;  %v557_v36 = vld [vmem:[%s862_s0 + $0xb0] sm:$0xff]   ;;  %v558_v41 = vld [vmem:[%s862_s0 + $0xb8] sm:$0xff]  }
  0x1a   :  { %v194_v53 = vadd.f32 %v615_v4, %v141_v44  ;;  %v144_v54 = vmul.f32 %v610_v1, %v378_v46  ;;  %v145_v55 = vmul.f32 %v610_v1, %v379_v47  ;;  %v383_v56 = vunpack.c.h.bf16 %v550_v39 }
  0x1b   :  { %569 = vst [vmem:[%s865_s3 + $0x58] sm:$0xff] %v474_v49   ;;  %v195_v57 = vadd.f32 %v615_v4, %v142_v50  ;;  %v196_v58 = vadd.f32 %v615_v4, %v143_v51  ;;  %v146_v59 = vmul.f32 %v610_v1, %v382_v52  ;;  %v386_v60 = vunpack.c.l.bf16 %v551_v48  ;;  %v62_v50 = vld [vmem:[%s862_s0 + $0xc0] sm:$0xf] }
  0x1c   :  { %v479_v62 = vpack.c.bf16 %v194_v53, %v193_v45  ;;  %v197_v63 = vadd.f32 %v615_v4, %v144_v54  ;;  %v198_v0 = vadd.f32 %v615_v4, %v145_v55  ;;  %v147_v2 = vmul.f32 %v610_v1, %v383_v56 }
  0x1d   :  { %v484_v5 = vpack.c.bf16 %v196_v58, %v195_v57  ;;  %v199_v6 = vadd.f32 %v615_v4, %v146_v59  ;;  %v387_v7 = vunpack.c.h.bf16 %v551_v48  ;;  %v148_v8 = vmul.f32 %v610_v1, %v386_v60 }
  0x1e   :  { %570 = vst [vmem:[%s865_s3 + $0x60] sm:$0xff] %v479_v62   ;;  %v489_v10 = vpack.c.bf16 %v198_v0, %v197_v63  ;;  %v200_v11 = vadd.f32 %v615_v4, %v147_v2  ;;  %v390_v12 = vunpack.c.l.bf16 %v552_v61  ;;  %v391_v13 = vunpack.c.h.bf16 %v552_v61 }
  0x1f   :  { %571 = vst [vmem:[%s865_s3 + $0x68] sm:$0xff] %v484_v5   ;;  %v149_v14 = vmul.f32 %v610_v1, %v387_v7  ;;  %v201_v15 = vadd.f32 %v615_v4, %v148_v8  ;;  %v394_v16 = vunpack.c.l.bf16 %v553_v3  ;;  %v395_v17 = vunpack.c.h.bf16 %v553_v3 }
  0x20   :  { %572 = vst [vmem:[%s865_s3 + $0x70] sm:$0xff] %v489_v10   ;;  %v494_v19 = vpack.c.bf16 %v200_v11, %v199_v6  ;;  %v150_v20 = vmul.f32 %v610_v1, %v390_v12  ;;  %v151_v21 = vmul.f32 %v610_v1, %v391_v13  ;;  %v398_v22 = vunpack.c.l.bf16 %v554_v9 }
  0x21   :  { %v202_v23 = vadd.f32 %v615_v4, %v149_v14  ;;  %v152_v24 = vmul.f32 %v610_v1, %v394_v16  ;;  %v153_v25 = vmul.f32 %v610_v1, %v395_v17  ;;  %v399_v26 = vunpack.c.h.bf16 %v554_v9 }
  0x22   :  { %573 = vst [vmem:[%s865_s3 + $0x78] sm:$0xff] %v494_v19   ;;  %v203_v27 = vadd.f32 %v615_v4, %v150_v20  ;;  %v204_v28 = vadd.f32 %v615_v4, %v151_v21  ;;  %v154_v29 = vmul.f32 %v610_v1, %v398_v22  ;;  %v402_v30 = vunpack.c.l.bf16 %v555_v18 }
  0x23   :  { %v499_v32 = vpack.c.bf16 %v202_v23, %v201_v15  ;;  %v205_v33 = vadd.f32 %v615_v4, %v152_v24  ;;  %v206_v34 = vadd.f32 %v615_v4, %v153_v25  ;;  %v155_v35 = vmul.f32 %v610_v1, %v399_v26 }
  0x24   :  { %v504_v37 = vpack.c.bf16 %v204_v28, %v203_v27  ;;  %v207_v38 = vadd.f32 %v615_v4, %v154_v29  ;;  %v403_v39 = vunpack.c.h.bf16 %v555_v18  ;;  %v156_v40 = vmul.f32 %v610_v1, %v402_v30 }
  0x25   :  { %574 = vst [vmem:[%s865_s3 + $0x80] sm:$0xff] %v499_v32   ;;  %v509_v42 = vpack.c.bf16 %v206_v34, %v205_v33  ;;  %v208_v43 = vadd.f32 %v615_v4, %v155_v35  ;;  %v406_v44 = vunpack.c.l.bf16 %v556_v31  ;;  %v407_v45 = vunpack.c.h.bf16 %v556_v31 }
  0x26   :  { %575 = vst [vmem:[%s865_s3 + $0x88] sm:$0xff] %v504_v37   ;;  %v157_v46 = vmul.f32 %v610_v1, %v403_v39  ;;  %v209_v47 = vadd.f32 %v615_v4, %v156_v40  ;;  %v410_v48 = vunpack.c.l.bf16 %v557_v36  ;;  %v411_v49 = vunpack.c.h.bf16 %v557_v36 }
  0x27   :  { %576 = vst [vmem:[%s865_s3 + $0x90] sm:$0xff] %v509_v42   ;;  %v514_v51 = vpack.c.bf16 %v208_v43, %v207_v38  ;;  %v158_v52 = vmul.f32 %v610_v1, %v406_v44  ;;  %v159_v53 = vmul.f32 %v610_v1, %v407_v45  ;;  %v414_v54 = vunpack.c.l.bf16 %v558_v41 }
  0x28   :  { %v210_v55 = vadd.f32 %v615_v4, %v157_v46  ;;  %v160_v56 = vmul.f32 %v610_v1, %v410_v48  ;;  %v161_v57 = vmul.f32 %v610_v1, %v411_v49  ;;  %v415_v58 = vunpack.c.h.bf16 %v558_v41 }
  0x29   :  { %577 = vst [vmem:[%s865_s3 + $0x98] sm:$0xff] %v514_v51   ;;  %v211_v59 = vadd.f32 %v615_v4, %v158_v52  ;;  %v212_v60 = vadd.f32 %v615_v4, %v159_v53  ;;  %v162_v61 = vmul.f32 %v610_v1, %v414_v54  ;;  %v111_v62 = vunpack.c.l.bf16 %v62_v50 }
  0x2a   :  { %v519_v63 = vpack.c.bf16 %v210_v55, %v209_v47  ;;  %v213_v0 = vadd.f32 %v615_v4, %v160_v56  ;;  %v214_v2 = vadd.f32 %v615_v4, %v161_v57  ;;  %v163_v3 = vmul.f32 %v610_v1, %v415_v58 }
  0x2b   :  { %v524_v5 = vpack.c.bf16 %v212_v60, %v211_v59  ;;  %v215_v6 = vadd.f32 %v615_v4, %v162_v61  ;;  %v164_v7 = vmul.f32 %v610_v1, %v111_v62 }
  0x2c   :  { %578 = vst [vmem:[%s865_s3 + $0xa0] sm:$0xff] %v519_v63   ;;  %v529_v8 = vpack.c.bf16 %v214_v2, %v213_v0  ;;  %v216_v9 = vadd.f32 %v615_v4, %v163_v3 }
  0x2d   :  { %579 = vst [vmem:[%s865_s3 + $0xa8] sm:$0xff] %v524_v5   ;;  %v217_v10 = vadd.f32 %v615_v4, %v164_v7 }
  0x2e   :  { %580 = vst [vmem:[%s865_s3 + $0xb0] sm:$0xff] %v529_v8   ;;  %v534_v11 = vpack.c.bf16 %v216_v9, %v215_v6 }
  0x2f   :  { %v266_v12 = vpack.c.bf16 %v217_v10, %v217_v10 }
  0x30   :  { %581 = vst [vmem:[%s865_s3 + $0xb8] sm:$0xff] %v534_v11  }
  0x31   :  { %315 = vst [vmem:[%s865_s3 + $0xc0] sm:$0xf] %v266_v12 }

// kernel: forward.9
= control target key start
LH: loop header
LB: loop body
LE: loop exit
PB: predicated region body
PF: predicated region fallthrough
CT: control target
= control target key end

     0   :  { %10 = vsyncpa [#allocation3], 0  ;;  %s1098_s18 = smov [#allocation2]   ;;  %s1099_s20 = smov 64   ;;  %s1558_s0 = inlined_call_operand.vmem [shape: bf16[392,27], index: 0, kind: input, shape index: {}]   ;;  %s1559_s1 = inlined_call_operand.hbm [shape: bf16[27,128], index: 1, kind: input, shape index: {}]   ;;  %s1560_s2 = inlined_call_operand.vmem [shape: bf16[392,128], index: 2, kind: output, shape index: {0}]   ;;  %s1561_s3 = inlined_call_operand.vmem [shape: f32[1,128], index: 3, kind: output, shape index: {1}]   ;;  %s1562_s4 = inlined_call_operand.vmem [shape: f32[1,128], index: 4, kind: output, shape index: {2}]  }
   0x1   :  { %s17_s17 = sshll.u32 %s1559_s1, 4  ;;  %s19_s19 = sshll.u32 %s1098_s18, 4  ;;  %s18_s17 = int_to_ptr.hbm [resolvable:$true] %s17_s17  ;;  %s20_s19 = int_to_ptr.vmem [resolvable:$true] %s19_s19 }
   0x2   :  { %s1100_s21 = smov 4  }
   0x3   :  { %25 = dma.hbm_to_vmem [thread:$0]  %s18_s17, 256, %s20_s19, [#allocation3], %s1099_s20, %s1099_s20, %s1100_s21  }
   0x4   :  { %1096 = dma.done.wait [#allocation3], 256  }
   0x5   :  { %1097 = vsyncadd [#allocation3], 4294967040  ;;  %vm294_vm0 = vcmask 1044480   ;;  %vm295_vm1 = vcmask 1045504   ;;  %v1101_v0 = vmov 65535   ;;  %v916_v7 = vld [vmem:[#allocation2] sm:$0xff] }
   0x6   :  { %v296_v1 = vsel %vm294_vm0, 4294967295, %v1101_v0  ;;  %v865_v2 = vld [vmem:[#allocation2 + $0x8] sm:$0xf]  ;;  %v917_v3 = vld [vmem:[#allocation2 + $0x8] sm:$0x30]  ;;  %v892_v8 = vld [vmem:[%s1558_s0] sm:$0xff] }
   0x7   :  { %v297_v4 = vsel %vm295_vm1, %v296_v1, 0  ;;  %v866_v5 = vor.u32 %v917_v3, %v865_v2  ;;  %v898_v9 = vld [vmem:[%s1558_s0 + $0x30] sm:$0xff]  ;;  %vm218_vm2 = vcmask 220160   ;;  %v905_v10 = vld [vmem:[%s1558_s0 + $0x68] sm:$0xff]  ;;  %v899_v12 = vld [vmem:[%s1558_s0 + $0x38] sm:$0xff] }
   0x8   :  { %v893_v11 = vld [vmem:[%s1558_s0 + $0x8] sm:$0xff]  ;;  %v906_v13 = vld [vmem:[%s1558_s0 + $0x70] sm:$0xff]  ;;  %v900_v15 = vld [vmem:[%s1558_s0 + $0x40] sm:$0xff] }
   0x9   :  { %v299_v6 = vand.u32 %v866_v5, %v297_v4  ;;  %v894_v14 = vld [vmem:[%s1558_s0 + $0x10] sm:$0xff]  ;;  %v907_v16 = vld [vmem:[%s1558_s0 + $0x78] sm:$0xff]  ;;  %v901_v18 = vld [vmem:[%s1558_s0 + $0x48] sm:$0xff] }
   0xa   :  { %v895_v17 = vld [vmem:[%s1558_s0 + $0x18] sm:$0xff]  ;;  %v908_v19 = vld [vmem:[%s1558_s0 + $0x80] sm:$0xff]  ;;  %v902_v22 = vld [vmem:[%s1558_s0 + $0x50] sm:$0xff] }
   0xb   :  { %307 = vmatpush.bf16.msra.mxu0 %v299_v6  ;;  %1061 = vmatpush.bf16.msra.mxu1 %v299_v6  ;;  %v912_v20 = vld [vmem:[%s1558_s0 + $0xa0] sm:$0xff]  ;;  %v909_v23 = vld [vmem:[%s1558_s0 + $0x88] sm:$0xff]  ;;  %v903_v26 = vld [vmem:[%s1558_s0 + $0x58] sm:$0xff] }
   0xc   :  { %1062 = vmatpush.bf16.msra.mxu2 %v299_v6  ;;  %1063 = vmatpush.bf16.msra.mxu3 %v299_v6  ;;  %v896_v21 = vld [vmem:[%s1558_s0 + $0x20] sm:$0xff]  ;;  %v913_v24 = vld [vmem:[%s1558_s0 + $0xa8] sm:$0xff]  ;;  %v910_v27 = vld [vmem:[%s1558_s0 + $0x90] sm:$0xff] }
   0xd   :  { %v897_v25 = vld [vmem:[%s1558_s0 + $0x28] sm:$0xff]  ;;  %v914_v28 = vld [vmem:[%s1558_s0 + $0xb0] sm:$0xff]  ;;  %v904_v29 = vld [vmem:[%s1558_s0 + $0x60] sm:$0xff] }
   0xe   :  { %v911_v30 = vld [vmem:[%s1558_s0 + $0x98] sm:$0xff]  ;;  %v79_v32 = vld [vmem:[%s1558_s0 + $0xc0] sm:$0xf] }
   0xf   :  { %308 = vmatpush.bf16.msra.mxu0 %v916_v7  ;;  %1064 = vmatpush.bf16.msra.mxu1 %v916_v7  ;;  %v915_v31 = vld [vmem:[%s1558_s0 + $0xb8] sm:$0xff]  ;;  %v181_v33 = vunpack.c.l.b16 %v79_v32 }
  0x10   :  { %1065 = vmatpush.bf16.msra.mxu2 %v916_v7  ;;  %1066 = vmatpush.bf16.msra.mxu3 %v916_v7 }
  0x11   :  { %v206_v34 = vpack.c.b16 %v181_v33, %v181_v33 }
  0x12   :  { %867 = vmatmul.msk.bf16.vlgmr.msra.gmra.mxu0 %vm218_vm2, %v892_v8  ;;  %873 = vmatmul.msk.bf16.vlgmr.msra.gmra.mxu1 %vm218_vm2, %v898_v9 }
  0x13   :  { %880 = vmatmul.msk.bf16.vlgmr.msra.gmra.mxu2 %vm218_vm2, %v905_v10  ;;  %887 = vmatmul.msk.bf16.vlgmr.msra.gmra.mxu3 %vm218_vm2, %v912_v20 }
  0x22   :  { %868 = vmatmul.msk.bf16.gmra.mxu0 %vm218_vm2, %v893_v11  ;;  %874 = vmatmul.msk.bf16.gmra.mxu1 %vm218_vm2, %v899_v12 }
  0x23   :  { %881 = vmatmul.msk.bf16.gmra.mxu2 %vm218_vm2, %v906_v13  ;;  %888 = vmatmul.msk.bf16.gmra.mxu3 %vm218_vm2, %v913_v24 }
  0x32   :  { %869 = vmatmul.msk.bf16.gmra.mxu0 %vm218_vm2, %v894_v14  ;;  %875 = vmatmul.msk.bf16.gmra.mxu1 %vm218_vm2, %v900_v15 }
  0x33   :  { %882 = vmatmul.msk.bf16.gmra.mxu2 %vm218_vm2, %v907_v16  ;;  %889 = vmatmul.msk.bf16.gmra.mxu3 %vm218_vm2, %v914_v28 }
  0x42   :  { %870 = vmatmul.msk.bf16.gmra.mxu0 %vm218_vm2, %v895_v17  ;;  %876 = vmatmul.msk.bf16.gmra.mxu1 %vm218_vm2, %v901_v18 }
  0x43   :  { %883 = vmatmul.msk.bf16.gmra.mxu2 %vm218_vm2, %v908_v19  ;;  %890 = vmatmul.msk.bf16.gmra.mxu3 %vm218_vm2, %v915_v31 }
  0x52   :  { %871 = vmatmul.msk.bf16.gmra.mxu0 %vm218_vm2, %v896_v21  ;;  %877 = vmatmul.msk.bf16.gmra.mxu1 %vm218_vm2, %v902_v22 }
  0x53   :  { %884 = vmatmul.msk.bf16.gmra.mxu2 %vm218_vm2, %v909_v23  ;;  %891 = vmatmul.msk.bf16.gmra.mxu3 %vm218_vm2, %v206_v34 }
  0x62   :  { %872 = vmatmul.msk.bf16.gmra.mxu0 %vm218_vm2, %v897_v25  ;;  %878 = vmatmul.msk.bf16.gmra.mxu1 %vm218_vm2, %v903_v26 }
  0x63   :  { %885 = vmatmul.msk.bf16.gmra.mxu2 %vm218_vm2, %v910_v27 }
  0x72   :  { %879 = vmatmul.msk.bf16.gmra.mxu1 %vm218_vm2, %v904_v29 }
  0x73   :  { %886 = vmatmul.msk.bf16.gmra.mxu2 %vm218_vm2, %v911_v30 }
  0x8f   :  { %v310_v35 = vpop.f32.mrf.mxu0  ;;  %v340_v36 = vpop.f32.mrf.mxu1 }
  0x90   :  { %v1231_v37 = vmax.f32 %v340_v36, 0.0  ;;  %v1233_v41 = vmax.f32 %v310_v35, 0.0 }
  0x96   :  { %v375_v38 = vpop.f32.mrf.mxu2  ;;  %v410_v25 = vpop.f32.mrf.mxu3 }
  0x97   :  { %v312_v39 = vpop.f32.mrf.mxu0  ;;  %v342_v40 = vpop.f32.mrf.mxu1  ;;  %v1249_v46 = vmax.f32 %v375_v38, 0.0  ;;  %v1327_v35 = vmax.f32 %v410_v25, 0.0 }
  0x98   :  { %v1235_v42 = vmax.f32 %v312_v39, 0.0  ;;  %v1237_v43 = vmax.f32 %v342_v40, 0.0  ;;  %v645_v39 = vmul.f32 %v1233_v41, %v1233_v41 }
  0x9a   :  { %v921_v44 = vpack.c.bf16 %v1235_v42, %v1233_v41  ;;  %v951_v45 = vpack.c.bf16 %v1237_v43, %v1231_v37  ;;  %v646_v36 = vmul.f32 %v1235_v42, %v1235_v42 }
  0x9c   :  { %922 = vst [vmem:[%s1560_s2] sm:$0xff] %v921_v44  }
  0x9d   :  { %1043 = vst [vmem:[%s1560_s2 + $0x30] sm:$0xff] %v951_v45   ;;  %v588_v45 = vadd.f32 %v1235_v42, %v1233_v41 }
  0x9e   :  { %v377_v47 = vpop.f32.mrf.mxu2  ;;  %v412_v34 = vpop.f32.mrf.mxu3 }
  0x9f   :  { %v315_v48 = vpop.f32.mrf.mxu0  ;;  %v345_v49 = vpop.f32.mrf.mxu1  ;;  %v1251_v50 = vmax.f32 %v377_v47, 0.0  ;;  %v1334_v38 = vmax.f32 %v412_v34, 0.0 }
  0xa0   :  { %v1258_v52 = vmax.f32 %v345_v49, 0.0  ;;  %v1260_v56 = vmax.f32 %v315_v48, 0.0  ;;  %v694_v49 = vadd.f32 %v646_v36, %v645_v39 }
  0xa1   :  { %v986_v51 = vpack.c.bf16 %v1251_v50, %v1249_v46  ;;  %v1021_v44 = vpack.c.bf16 %v1334_v38, %v1327_v35 }
  0xa2   :  { %v647_v40 = vmul.f32 %v1260_v56, %v1260_v56 }
  0xa3   :  { %1050 = vst [vmem:[%s1560_s2 + $0x68] sm:$0xff] %v986_v51  }
  0xa4   :  { %1057 = vst [vmem:[%s1560_s2 + $0xa0] sm:$0xff] %v1021_v44   ;;  %v695_v41 = vadd.f32 %v694_v49, %v647_v40 }
  0xa6   :  { %v380_v53 = vpop.f32.mrf.mxu2 }
  0xa7   :  { %v317_v54 = vpop.f32.mrf.mxu0  ;;  %v347_v55 = vpop.f32.mrf.mxu1  ;;  %v1276_v61 = vmax.f32 %v380_v53, 0.0 }
  0xa8   :  { %v1262_v57 = vmax.f32 %v317_v54, 0.0  ;;  %v1264_v58 = vmax.f32 %v347_v55, 0.0  ;;  %v589_v55 = vadd.f32 %v588_v45, %v1260_v56 }
  0xaa   :  { %v926_v59 = vpack.c.bf16 %v1262_v57, %v1260_v56  ;;  %v956_v60 = vpack.c.bf16 %v1264_v58, %v1258_v52  ;;  %v648_v51 = vmul.f32 %v1262_v57, %v1262_v57 }
  0xac   :  { %1038 = vst [vmem:[%s1560_s2 + $0x8] sm:$0xff] %v926_v59  }
  0xad   :  { %1044 = vst [vmem:[%s1560_s2 + $0x38] sm:$0xff] %v956_v60  }
  0xae   :  { %v382_v62 = vpop.f32.mrf.mxu2 }
  0xaf   :  { %v320_v63 = vpop.f32.mrf.mxu0  ;;  %v350_v0 = vpop.f32.mrf.mxu1  ;;  %v1278_v1 = vmax.f32 %v382_v62, 0.0 }
  0xb0   :  { %v1285_v3 = vmax.f32 %v350_v0, 0.0  ;;  %v438_v7 = vmax.f32 %v320_v63, 0.0  ;;  %v415_v63 = vpop.f32.mrf.mxu3  ;;  %v590_v0 = vadd.f32 %v589_v55, %v1262_v57 }
  0xb1   :  { %v991_v2 = vpack.c.bf16 %v1278_v1, %v1276_v61 }
  0xb2   :  { %v649_v42 = vmul.f32 %v438_v7, %v438_v7 }
  0xb3   :  { %1051 = vst [vmem:[%s1560_s2 + $0x70] sm:$0xff] %v991_v2  }
  0xb6   :  { %v385_v4 = vpop.f32.mrf.mxu2 }
  0xb7   :  { %v322_v5 = vpop.f32.mrf.mxu0  ;;  %v352_v6 = vpop.f32.mrf.mxu1  ;;  %v1300_v12 = vmax.f32 %v385_v4, 0.0 }
  0xb8   :  { %v1287_v8 = vmax.f32 %v322_v5, 0.0  ;;  %v1289_v9 = vmax.f32 %v352_v6, 0.0  ;;  %v696_v5 = vadd.f32 %v695_v41, %v648_v51 }
  0xba   :  { %v931_v10 = vpack.c.bf16 %v1287_v8, %v438_v7  ;;  %v961_v11 = vpack.c.bf16 %v1289_v9, %v1285_v3  ;;  %v650_v6 = vmul.f32 %v1287_v8, %v1287_v8  ;;  %v697_v56 = vadd.f32 %v696_v5, %v649_v42 }
  0xbc   :  { %1039 = vst [vmem:[%s1560_s2 + $0x10] sm:$0xff] %v931_v10   ;;  %v591_v10 = vadd.f32 %v590_v0, %v438_v7 }
  0xbd   :  { %1045 = vst [vmem:[%s1560_s2 + $0x40] sm:$0xff] %v961_v11  }
  0xbe   :  { %v387_v13 = vpop.f32.mrf.mxu2 }
  0xbf   :  { %v325_v14 = vpop.f32.mrf.mxu0  ;;  %v355_v15 = vpop.f32.mrf.mxu1  ;;  %v1302_v16 = vmax.f32 %v387_v13, 0.0  ;;  %v592_v13 = vadd.f32 %v591_v10, %v1287_v8 }
  0xc0   :  { %v1309_v18 = vmax.f32 %v355_v15, 0.0  ;;  %v440_v22 = vmax.f32 %v325_v14, 0.0  ;;  %v698_v15 = vadd.f32 %v697_v56, %v650_v6  ;;  %v658_v56 = vmul.f32 %v1237_v43, %v1237_v43 }
  0xc1   :  { %v996_v17 = vpack.c.bf16 %v1302_v16, %v1300_v12 }
  0xc2   :  { %v651_v11 = vmul.f32 %v440_v22, %v440_v22 }
  0xc3   :  { %1052 = vst [vmem:[%s1560_s2 + $0x78] sm:$0xff] %v996_v17  }
  0xc4   :  { %v699_v25 = vadd.f32 %v698_v15, %v651_v11 }
  0xc6   :  { %v390_v19 = vpop.f32.mrf.mxu2 }
  0xc7   :  { %v327_v20 = vpop.f32.mrf.mxu0  ;;  %v357_v21 = vpop.f32.mrf.mxu1  ;;  %v1321_v28 = vmax.f32 %v390_v19, 0.0 }
  0xc8   :  { %v441_v23 = vmax.f32 %v327_v20, 0.0  ;;  %v1311_v24 = vmax.f32 %v357_v21, 0.0  ;;  %v593_v21 = vadd.f32 %v592_v13, %v440_v22 }
  0xca   :  { %v936_v26 = vpack.c.bf16 %v441_v23, %v440_v22  ;;  %v966_v27 = vpack.c.bf16 %v1311_v24, %v1309_v18  ;;  %v652_v17 = vmul.f32 %v441_v23, %v441_v23 }
  0xcc   :  { %1040 = vst [vmem:[%s1560_s2 + $0x18] sm:$0xff] %v936_v26   ;;  %v700_v34 = vadd.f32 %v699_v25, %v652_v17 }
  0xcd   :  { %1046 = vst [vmem:[%s1560_s2 + $0x48] sm:$0xff] %v966_v27  }
  0xce   :  { %v392_v29 = vpop.f32.mrf.mxu2 }
  0xcf   :  { %v330_v30 = vpop.f32.mrf.mxu0  ;;  %v360_v31 = vpop.f32.mrf.mxu1  ;;  %v1323_v32 = vmax.f32 %v392_v29, 0.0 }
  0xd0   :  { %v1344_v47 = vmax.f32 %v360_v31, 0.0  ;;  %v442_v59 = vmax.f32 %v330_v30, 0.0  ;;  %v417_v30 = vpop.f32.mrf.mxu3  ;;  %v594_v31 = vadd.f32 %v593_v21, %v441_v23 }
  0xd1   :  { %v1001_v33 = vpack.c.bf16 %v1323_v32, %v1321_v28  ;;  %v1377_v36 = vmax.f32 %v417_v30, 0.0 }
  0xd2   :  { %v653_v26 = vmul.f32 %v442_v59, %v442_v59  ;;  %v595_v39 = vadd.f32 %v594_v31, %v442_v59 }
  0xd3   :  { %1053 = vst [vmem:[%s1560_s2 + $0x80] sm:$0xff] %v1001_v33   ;;  %v1372_v33 = vmax.f32 %v415_v63, 0.0 }
  0xd4   :  { %v701_v22 = vadd.f32 %v700_v34, %v653_v26  ;;  %v660_v26 = vmul.f32 %v1264_v58, %v1264_v58 }
  0xd5   :  { %v1026_v44 = vpack.c.bf16 %v1377_v36, %v1372_v33 }
  0xd6   :  { %v395_v48 = vpop.f32.mrf.mxu2 }
  0xd7   :  { %v332_v53 = vpop.f32.mrf.mxu0  ;;  %v362_v54 = vpop.f32.mrf.mxu1  ;;  %v1365_v57 = vmax.f32 %v395_v48, 0.0  ;;  %1058 = vst [vmem:[%s1560_s2 + $0xa8] sm:$0xff] %v1026_v44  }
  0xd8   :  { %v443_v60 = vmax.f32 %v332_v53, 0.0  ;;  %v1352_v62 = vmax.f32 %v362_v54, 0.0  ;;  %v420_v42 = vpop.f32.mrf.mxu3 }
  0xda   :  { %v941_v2 = vpack.c.bf16 %v443_v60, %v442_v59  ;;  %v971_v4 = vpack.c.bf16 %v1352_v62, %v1344_v47  ;;  %v654_v8 = vmul.f32 %v443_v60, %v443_v60  ;;  %v596_v45 = vadd.f32 %v595_v39, %v443_v60 }
  0xdc   :  { %1041 = vst [vmem:[%s1560_s2 + $0x20] sm:$0xff] %v941_v2   ;;  %v702_v49 = vadd.f32 %v701_v22, %v654_v8 }
  0xdd   :  { %1047 = vst [vmem:[%s1560_s2 + $0x50] sm:$0xff] %v971_v4   ;;  %v657_v4 = vmul.f32 %v1231_v37, %v1231_v37 }
  0xde   :  { %v397_v14 = vpop.f32.mrf.mxu2 }
  0xdf   :  { %v335_v19 = vpop.f32.mrf.mxu0  ;;  %v365_v20 = vpop.f32.mrf.mxu1  ;;  %v1368_v7 = vmax.f32 %v397_v14, 0.0 }
  0xe0   :  { %v444_v27 = vmax.f32 %v335_v19, 0.0  ;;  %v1381_v48 = vmax.f32 %v365_v20, 0.0  ;;  %v422_v25 = vpop.f32.mrf.mxu3 }
  0xe1   :  { %v1006_v29 = vpack.c.bf16 %v1368_v7, %v1365_v57  ;;  %v1419_v30 = vmax.f32 %v422_v25, 0.0 }
  0xe2   :  { %v655_v40 = vmul.f32 %v444_v27, %v444_v27  ;;  %v597_v54 = vadd.f32 %v596_v45, %v444_v27 }
  0xe3   :  { %1054 = vst [vmem:[%s1560_s2 + $0x88] sm:$0xff] %v1006_v29   ;;  %v1414_v29 = vmax.f32 %v420_v42, 0.0  ;;  %v665_v42 = vmul.f32 %v1344_v47, %v1344_v47 }
  0xe4   :  { %v703_v59 = vadd.f32 %v702_v49, %v655_v40 }
  0xe5   :  { %v1031_v8 = vpack.c.bf16 %v1419_v30, %v1414_v29 }
  0xe6   :  { %v400_v23 = vpop.f32.mrf.mxu2 }
  0xe7   :  { %v337_v51 = vpop.f32.mrf.mxu0  ;;  %v367_v53 = vpop.f32.mrf.mxu1  ;;  %v1399_v10 = vmax.f32 %v400_v23, 0.0  ;;  %1059 = vst [vmem:[%s1560_s2 + $0xb0] sm:$0xff] %v1031_v8   ;;  %v672_v8 = vmul.f32 %v1251_v50, %v1251_v50 }
  0xe8   :  { %v445_v55 = vmax.f32 %v337_v51, 0.0  ;;  %v1386_v41 = vmax.f32 %v367_v53, 0.0  ;;  %v425_v53 = vpop.f32.mrf.mxu3 }
  0xea   :  { %v946_v63 = vpack.c.bf16 %v445_v55, %v444_v27  ;;  %v598_v0 = vadd.f32 %v597_v54, %v445_v55  ;;  %v656_v2 = vmul.f32 %v445_v55, %v445_v55  ;;  %v976_v60 = vpack.c.bf16 %v1386_v41, %v1381_v48 }
  0xeb   :  { %v664_v54 = vmul.f32 %v1311_v24, %v1311_v24 }
  0xec   :  { %1042 = vst [vmem:[%s1560_s2 + $0x28] sm:$0xff] %v946_v63   ;;  %v599_v5 = vadd.f32 %v598_v0, %v1231_v37  ;;  %v704_v6 = vadd.f32 %v703_v59, %v656_v2  ;;  %v659_v37 = vmul.f32 %v1258_v52, %v1258_v52  ;;  %v666_v2 = vmul.f32 %v1352_v62, %v1352_v62 }
  0xed   :  { %1048 = vst [vmem:[%s1560_s2 + $0x58] sm:$0xff] %v976_v60  }
  0xee   :  { %v600_v11 = vadd.f32 %v599_v5, %v1237_v43  ;;  %v705_v13 = vadd.f32 %v704_v6, %v657_v4  ;;  %v402_v14 = vpop.f32.mrf.mxu2  ;;  %v667_v6 = vmul.f32 %v1381_v48, %v1381_v48 }
  0xef   :  { %v370_v15 = vpop.f32.mrf.mxu1  ;;  %v1404_v17 = vmax.f32 %v402_v14, 0.0 }
  0xf0   :  { %v601_v19 = vadd.f32 %v600_v11, %v1258_v52  ;;  %v706_v20 = vadd.f32 %v705_v13, %v658_v56  ;;  %v661_v52 = vmul.f32 %v1285_v3, %v1285_v3  ;;  %v458_v40 = vmax.f32 %v370_v15, 0.0  ;;  %v427_v14 = vpop.f32.mrf.mxu3 }
  0xf1   :  { %v1011_v21 = vpack.c.bf16 %v1404_v17, %v1399_v10  ;;  %v668_v11 = vmul.f32 %v1386_v41, %v1386_v41 }
  0xf2   :  { %v602_v43 = vadd.f32 %v601_v19, %v1264_v58  ;;  %v707_v27 = vadd.f32 %v706_v20, %v659_v37  ;;  %v662_v58 = vmul.f32 %v1289_v9, %v1289_v9  ;;  %v1459_v37 = vmax.f32 %v425_v53, 0.0 }
  0xf3   :  { %1055 = vst [vmem:[%s1560_s2 + $0x90] sm:$0xff] %v1011_v21   ;;  %v1461_v19 = vmax.f32 %v427_v14, 0.0  ;;  %v669_v21 = vmul.f32 %v458_v40, %v458_v40  ;;  %v676_v53 = vmul.f32 %v1302_v16, %v1302_v16  ;;  %v682_v14 = vmul.f32 %v1404_v17, %v1404_v17 }
  0xf4   :  { %v603_v31 = vadd.f32 %v602_v43, %v1285_v3  ;;  %v708_v34 = vadd.f32 %v707_v27, %v660_v26  ;;  %v663_v3 = vmul.f32 %v1309_v18, %v1309_v18 }
  0xf5   :  { %v1036_v25 = vpack.c.bf16 %v1461_v19, %v1459_v37 }
  0xf6   :  { %v604_v39 = vadd.f32 %v603_v31, %v1289_v9  ;;  %v709_v22 = vadd.f32 %v708_v34, %v661_v52  ;;  %v405_v44 = vpop.f32.mrf.mxu2 }
  0xf7   :  { %v372_v45 = vpop.f32.mrf.mxu1  ;;  %1060 = vst [vmem:[%s1560_s2 + $0xb8] sm:$0xff] %v1036_v25  }
  0xf8   :  { %v710_v23 = vadd.f32 %v709_v22, %v662_v58  ;;  %v605_v49 = vadd.f32 %v604_v39, %v1309_v18  ;;  %v459_v51 = vmax.f32 %v372_v45, 0.0  ;;  %v1444_v18 = vmax.f32 %v405_v44, 0.0  ;;  %v430_v34 = vpop.f32.mrf.mxu3 }
  0xf9   :  { %v673_v22 = vmul.f32 %v1276_v61, %v1276_v61  ;;  %v674_v45 = vmul.f32 %v1278_v1, %v1278_v1 }
  0xfa   :  { %v606_v9 = vadd.f32 %v605_v49, %v1311_v24  ;;  %v711_v55 = vadd.f32 %v710_v23, %v663_v3  ;;  %v981_v59 = vpack.c.bf16 %v459_v51, %v458_v40  ;;  %v670_v27 = vmul.f32 %v459_v51, %v459_v51 }
  0xfb   :  { %v675_v23 = vmul.f32 %v1300_v12, %v1300_v12 }
  0xfc   :  { %v607_v63 = vadd.f32 %v606_v9, %v1344_v47  ;;  %v712_v0 = vadd.f32 %v711_v55, %v664_v54  ;;  %1049 = vst [vmem:[%s1560_s2 + $0x60] sm:$0xff] %v981_v59   ;;  %v482_v9 = vmax.f32 %v430_v34, 0.0  ;;  %v677_v55 = vmul.f32 %v1321_v28, %v1321_v28 }
  0xfe   :  { %v608_v60 = vadd.f32 %v607_v63, %v1352_v62  ;;  %v713_v24 = vadd.f32 %v712_v0, %v665_v42  ;;  %v407_v4 = vpop.f32.mrf.mxu2  ;;  %v531_v42 = vpack.c.bf16 %v482_v9, %v482_v9  ;;  %v1102_v63 = vmov 0.0  }
  0xff   :  { %v1449_v5 = vmax.f32 %v407_v4, 0.0  ;;  %585 = vst [vmem:[%s1561_s3] sm:$0x1] %v1102_v63 }
 0x100   :  { %v609_v47 = vadd.f32 %v608_v60, %v1381_v48  ;;  %v714_v56 = vadd.f32 %v713_v24, %v666_v2  ;;  %580 = vst [vmem:[%s1560_s2 + $0xc0] sm:$0xf] %v531_v42  ;;  %v680_v24 = vmul.f32 %v1368_v7, %v1368_v7 }
 0x101   :  { %v1016_v13 = vpack.c.bf16 %v1449_v5, %v1444_v18  ;;  %586 = vst [vmem:[%s1562_s4] sm:$0x1] %v1102_v63 }
 0x102   :  { %v610_v15 = vadd.f32 %v609_v47, %v1386_v41  ;;  %v715_v62 = vadd.f32 %v714_v56, %v667_v6  ;;  %v671_v41 = vmul.f32 %v1249_v46, %v1249_v46  ;;  %v681_v47 = vmul.f32 %v1399_v10, %v1399_v10 }
 0x103   :  { %1056 = vst [vmem:[%s1560_s2 + $0x98] sm:$0xff] %v1016_v13  }
 0x104   :  { %v716_v48 = vadd.f32 %v715_v62, %v668_v11  ;;  %v611_v20 = vadd.f32 %v610_v15, %v458_v40  ;;  %v683_v62 = vmul.f32 %v1444_v18, %v1444_v18 }
 0x106   :  { %v717_v26 = vadd.f32 %v716_v48, %v669_v21  ;;  %v612_v43 = vadd.f32 %v611_v20, %v459_v51  ;;  %v684_v20 = vmul.f32 %v1449_v5, %v1449_v5 }
 0x108   :  { %v613_v52 = vadd.f32 %v612_v43, %v1249_v46  ;;  %v718_v31 = vadd.f32 %v717_v26, %v670_v27 }
 0x10a   :  { %v614_v58 = vadd.f32 %v613_v52, %v1251_v50  ;;  %v719_v39 = vadd.f32 %v718_v31, %v671_v41  ;;  %v432_v50 = vpop.f32.mrf.mxu3 }
 0x10c   :  { %v615_v40 = vadd.f32 %v614_v58, %v1276_v61  ;;  %v720_v44 = vadd.f32 %v719_v39, %v672_v8 }
 0x10e   :  { %v616_v3 = vadd.f32 %v615_v40, %v1278_v1  ;;  %v721_v46 = vadd.f32 %v720_v44, %v673_v22  ;;  %v691_v22 = vmul.f32 %v1459_v37, %v1459_v37 }
 0x110   :  { %v617_v49 = vadd.f32 %v616_v3, %v1300_v12  ;;  %v722_v51 = vadd.f32 %v721_v46, %v674_v45  ;;  %v678_v12 = vmul.f32 %v1323_v32, %v1323_v32  ;;  %v692_v45 = vmul.f32 %v1461_v19, %v1461_v19 }
 0x112   :  { %v723_v54 = vadd.f32 %v722_v51, %v675_v23  ;;  %v618_v61 = vadd.f32 %v617_v49, %v1302_v16  ;;  %v679_v16 = vmul.f32 %v1365_v57, %v1365_v57 }
 0x114   :  { %v619_v1 = vadd.f32 %v618_v61, %v1321_v28  ;;  %v724_v59 = vadd.f32 %v723_v54, %v676_v53 }
 0x116   :  { %v620_v0 = vadd.f32 %v619_v1, %v1323_v32  ;;  %v725_v2 = vadd.f32 %v724_v59, %v677_v55  ;;  %v587_v1 = vld [vmem:[%s1561_s3] sm:$0x1] }
 0x118   :  { %v621_v28 = vadd.f32 %v620_v0, %v1365_v57  ;;  %v726_v60 = vadd.f32 %v725_v2, %v678_v12 }
 0x11a   :  { %v622_v32 = vadd.f32 %v621_v28, %v1368_v7  ;;  %v727_v4 = vadd.f32 %v726_v60, %v679_v16 }
 0x11c   :  { %v623_v6 = vadd.f32 %v622_v32, %v1399_v10  ;;  %v728_v56 = vadd.f32 %v727_v4, %v680_v24  ;;  %v685_v10 = vmul.f32 %v1327_v35, %v1327_v35 }
 0x11e   :  { %v729_v11 = vadd.f32 %v728_v56, %v681_v47  ;;  %v624_v13 = vadd.f32 %v623_v6, %v1404_v17  ;;  %v686_v17 = vmul.f32 %v1334_v38, %v1334_v38 }
 0x120   :  { %v730_v57 = vadd.f32 %v729_v11, %v682_v14  ;;  %v625_v15 = vadd.f32 %v624_v13, %v1444_v18  ;;  %v687_v18 = vmul.f32 %v1372_v33, %v1372_v33 }
 0x122   :  { %v731_v7 = vadd.f32 %v730_v57, %v683_v62  ;;  %v626_v48 = vadd.f32 %v625_v15, %v1449_v5  ;;  %v688_v5 = vmul.f32 %v1377_v36, %v1377_v36 }
 0x124   :  { %v627_v21 = vadd.f32 %v626_v48, %v1327_v35  ;;  %v732_v25 = vadd.f32 %v731_v7, %v684_v20  ;;  %v689_v35 = vmul.f32 %v1414_v29, %v1414_v29 }
 0x126   :  { %v628_v26 = vadd.f32 %v627_v21, %v1334_v38  ;;  %v733_v43 = vadd.f32 %v732_v25, %v685_v10  ;;  %v690_v38 = vmul.f32 %v1419_v30, %v1419_v30 }
 0x128   :  { %v629_v27 = vadd.f32 %v628_v26, %v1372_v33  ;;  %v734_v41 = vadd.f32 %v733_v43, %v686_v17 }
 0x12a   :  { %v735_v52 = vadd.f32 %v734_v41, %v687_v18  ;;  %v630_v31 = vadd.f32 %v629_v27, %v1377_v36 }
 0x12c   :  { %v631_v34 = vadd.f32 %v630_v31, %v1414_v29  ;;  %v736_v8 = vadd.f32 %v735_v52, %v688_v5  ;;  %v693_v29 = vmul.f32 %v482_v9, %v482_v9 }
 0x12e   :  { %v632_v58 = vadd.f32 %v631_v34, %v1419_v30  ;;  %v737_v39 = vadd.f32 %v736_v8, %v689_v35 }
 0x130   :  { %v633_v33 = vadd.f32 %v632_v58, %v1459_v37  ;;  %v738_v40 = vadd.f32 %v737_v39, %v690_v38 }
 0x132   :  { %v739_v44 = vadd.f32 %v738_v40, %v691_v22  ;;  %v634_v36 = vadd.f32 %v633_v33, %v1461_v19  ;;  %v644_v19 = vld [vmem:[%s1562_s4] sm:$0x1] }
 0x134   :  { %v740_v3 = vadd.f32 %v739_v44, %v692_v45  ;;  %v635_v46 = vadd.f32 %v634_v36, %v482_v9 }
 0x136   :  { %v636_v23 = vrot.slane %v635_v46, 4  ;;  %v741_v49 = vadd.f32 %v740_v3, %v693_v29 }
 0x138   :  { %v637_v51 = vadd.f32 %v636_v23, %v635_v46  ;;  %v742_v30 = vrot.slane %v741_v49, 4 }
 0x13a   :  { %v638_v50 = vrot.slane %v637_v51, 2  ;;  %v743_v53 = vadd.f32 %v742_v30, %v741_v49 }
 0x13c   :  { %v639_v54 = vadd.f32 %v638_v50, %v637_v51  ;;  %v744_v61 = vrot.slane %v743_v53, 2 }
 0x13e   :  { %v640_v55 = vrot.slane %v639_v54, 1  ;;  %v745_v37 = vadd.f32 %v744_v61, %v743_v53 }
 0x140   :  { %v641_v59 = vadd.f32 %v640_v55, %v639_v54  ;;  %v746_v42 = vrot.slane %v745_v37, 1 }
 0x142   :  { %v642_v9 = vadd.f32 %v641_v59, %v587_v1  ;;  %v747_v63 = vadd.f32 %v746_v42, %v745_v37 }
 0x144   :  { %643 = vst [vmem:[%s1561_s3] sm:$0x1] %v642_v9  ;;  %v748_v12 = vadd.f32 %v747_v63, %v644_v19 }
 0x146   :  { %749 = vst [vmem:[%s1562_s4] sm:$0x1] %v748_v12 }
 0x147   :  { %762 = vsyncpa [#allocation3], 1 }

// kernel: forward.11
= control target key start
LH: loop header
LB: loop body
LE: loop exit
PB: predicated region body
PF: predicated region fallthrough
CT: control target
= control target key end

     0   :  { %s352_s1 = inlined_call_operand.vmem [shape: bf16[128,128], index: 1, kind: input, shape index: {}]   ;;  %s353_s0 = inlined_call_operand.vmem [shape: bf16[72,128], index: 0, kind: input, shape index: {}]   ;;  %s354_s2 = inlined_call_operand.vmem [shape: bf16[72,128], index: 2, kind: output, shape index: {}]  }
   0x1   :  { %v235_v0 = vld [vmem:[%s352_s1 + $0x38] sm:$0xff]  ;;  %v234_v1 = vld [vmem:[%s352_s1 + $0x30] sm:$0xff]  ;;  %v233_v2 = vld [vmem:[%s352_s1 + $0x28] sm:$0xff] }
   0x2   :  { %261 = vmatpush.bf16.msra.mxu3 %v235_v0  ;;  %260 = vmatpush.bf16.msra.mxu2 %v235_v0  ;;  %v232_v3 = vld [vmem:[%s352_s1 + $0x20] sm:$0xff]  ;;  %v231_v4 = vld [vmem:[%s352_s1 + $0x18] sm:$0xff]  ;;  %v230_v5 = vld [vmem:[%s352_s1 + $0x10] sm:$0xff] }
   0x3   :  { %112 = vmatpush.bf16.msra.mxu0 %v235_v0  ;;  %259 = vmatpush.bf16.msra.mxu1 %v235_v0  ;;  %v229_v6 = vld [vmem:[%s352_s1 + $0x8] sm:$0xff]  ;;  %v228_v7 = vld [vmem:[%s352_s1] sm:$0xff]  ;;  %v227_v8 = vld [vmem:[%s353_s0 + $0x18] sm:$0xff] }
   0x4   :  { %v226_v9 = vld [vmem:[%s353_s0 + $0x10] sm:$0xff]  ;;  %v224_v10 = vld [vmem:[%s353_s0] sm:$0xff]  ;;  %v225_v11 = vld [vmem:[%s353_s0 + $0x8] sm:$0xff] }
   0x5   :  { %v19_v12 = vld [vmem:[%s353_s0 + $0x20] sm:$0xf] }
   0x6   :  { %264 = vmatpush.bf16.msra.mxu3 %v234_v1  ;;  %263 = vmatpush.bf16.msra.mxu2 %v234_v1  ;;  %v53_v13 = vunpack.c.l.b16 %v19_v12 }
   0x7   :  { %113 = vmatpush.bf16.msra.mxu0 %v234_v1  ;;  %262 = vmatpush.bf16.msra.mxu1 %v234_v1 }
   0x8   :  { %v58_v14 = vpack.c.b16 %v53_v13, %v53_v13 }
   0xa   :  { %267 = vmatpush.bf16.msra.mxu3 %v233_v2  ;;  %266 = vmatpush.bf16.msra.mxu2 %v233_v2 }
   0xb   :  { %114 = vmatpush.bf16.msra.mxu0 %v233_v2  ;;  %265 = vmatpush.bf16.msra.mxu1 %v233_v2 }
   0xe   :  { %270 = vmatpush.bf16.msra.mxu3 %v232_v3  ;;  %269 = vmatpush.bf16.msra.mxu2 %v232_v3 }
   0xf   :  { %115 = vmatpush.bf16.msra.mxu0 %v232_v3  ;;  %268 = vmatpush.bf16.msra.mxu1 %v232_v3 }
  0x12   :  { %273 = vmatpush.bf16.msra.mxu3 %v231_v4  ;;  %272 = vmatpush.bf16.msra.mxu2 %v231_v4 }
  0x13   :  { %116 = vmatpush.bf16.msra.mxu0 %v231_v4  ;;  %271 = vmatpush.bf16.msra.mxu1 %v231_v4 }
  0x16   :  { %276 = vmatpush.bf16.msra.mxu3 %v230_v5  ;;  %275 = vmatpush.bf16.msra.mxu2 %v230_v5 }
  0x17   :  { %117 = vmatpush.bf16.msra.mxu0 %v230_v5  ;;  %274 = vmatpush.bf16.msra.mxu1 %v230_v5 }
  0x1a   :  { %279 = vmatpush.bf16.msra.mxu3 %v229_v6  ;;  %278 = vmatpush.bf16.msra.mxu2 %v229_v6 }
  0x1b   :  { %118 = vmatpush.bf16.msra.mxu0 %v229_v6  ;;  %277 = vmatpush.bf16.msra.mxu1 %v229_v6 }
  0x1e   :  { %282 = vmatpush.bf16.msra.mxu3 %v228_v7  ;;  %281 = vmatpush.bf16.msra.mxu2 %v228_v7 }
  0x1f   :  { %119 = vmatpush.bf16.msra.mxu0 %v228_v7  ;;  %280 = vmatpush.bf16.msra.mxu1 %v228_v7 }
  0x21   :  { %135 = vmatmul.bf16.vlgmr.msra.gmra.mxu3 %v227_v8  ;;  %130 = vmatmul.bf16.vlgmr.msra.gmra.mxu2 %v226_v9 }
  0x22   :  { %120 = vmatmul.bf16.vlgmr.msra.gmra.mxu0 %v224_v10  ;;  %125 = vmatmul.bf16.vlgmr.msra.gmra.mxu1 %v225_v11 }
  0x31   :  { %140 = vmatmul.bf16.gmra.mxu3 %v58_v14 }
  0x9f   :  { %v121_v15 = vpop.f32.mrf.mxu0  ;;  %v126_v16 = vpop.f32.mrf.mxu1 }
  0xa0   :  { %v145_v19 = vmax.f32 %v121_v15, 0.0  ;;  %v147_v20 = vmax.f32 %v126_v16, 0.0 }
  0xa4   :  { %v136_v17 = vpop.f32.mrf.mxu3  ;;  %v131_v18 = vpop.f32.mrf.mxu2 }
  0xa5   :  { %v149_v27 = vmax.f32 %v131_v18, 0.0  ;;  %v151_v30 = vmax.f32 %v136_v17, 0.0 }
  0xa7   :  { %v123_v21 = vpop.f32.mrf.mxu0  ;;  %v128_v22 = vpop.f32.mrf.mxu1 }
  0xa8   :  { %v146_v23 = vmax.f32 %v123_v21, 0.0  ;;  %v148_v24 = vmax.f32 %v128_v22, 0.0 }
  0xaa   :  { %v239_v25 = vpack.c.bf16 %v146_v23, %v145_v19  ;;  %v244_v26 = vpack.c.bf16 %v148_v24, %v147_v20 }
  0xac   :  { %v138_v28 = vpop.f32.mrf.mxu3  ;;  %240 = vst [vmem:[%s354_s2] sm:$0xff] %v239_v25   ;;  %v133_v29 = vpop.f32.mrf.mxu2 }
  0xad   :  { %v152_v31 = vmax.f32 %v138_v28, 0.0  ;;  %256 = vst [vmem:[%s354_s2 + $0x8] sm:$0xff] %v244_v26   ;;  %v150_v32 = vmax.f32 %v133_v29, 0.0 }
  0xaf   :  { %v254_v33 = vpack.c.bf16 %v152_v31, %v151_v30  ;;  %v249_v34 = vpack.c.bf16 %v150_v32, %v149_v27 }
  0xb1   :  { %258 = vst [vmem:[%s354_s2 + $0x18] sm:$0xff] %v254_v33  }
  0xb2   :  { %257 = vst [vmem:[%s354_s2 + $0x10] sm:$0xff] %v249_v34  }
  0xb4   :  { %v141_v35 = vpop.f32.mrf.mxu3 }
  0xb5   :  { %v153_v36 = vmax.f32 %v141_v35, 0.0 }
  0xb7   :  { %v162_v37 = vpack.c.bf16 %v153_v36, %v153_v36 }
  0xb9   :  { %171 = vst [vmem:[%s354_s2 + $0x20] sm:$0xf] %v162_v37 }
  0xbc   :  { %v143_v38 = vpop.f32.mrf.mxu3 }

// kernel: forward.13
= control target key start
LH: loop header
LB: loop body
LE: loop exit
PB: predicated region body
PF: predicated region fallthrough
CT: control target
= control target key end

     0   :  { %vm24_vm0 = vcmask 130048   ;;  %vm82_vm1 = vcmask 123904   ;;  %vm86_vm2 = vcmask 1024   ;;  %s157_s2 = inlined_call_operand.vmem [shape: f32[16,16], index: 2, kind: input, shape index: {}]   ;;  %s158_s0 = inlined_call_operand.vmem [shape: f32[2,16], index: 0, kind: input, shape index: {}]   ;;  %s159_s1 = inlined_call_operand.vmem [shape: f32[16,16], index: 1, kind: input, shape index: {}]   ;;  %s160_s3 = inlined_call_operand.vmem [shape: f32[2,16], index: 3, kind: input, shape index: {}]   ;;  %s161_s4 = inlined_call_operand.vmem [shape: f32[2,16], index: 4, kind: output, shape index: {0}]   ;;  %s162_s5 = inlined_call_operand.vmem [shape: f32[2,1], index: 5, kind: output, shape index: {1}]  }
   0x1   :  { %v23_v0 = vld [vmem:[%s157_s2 + $0x8] sm:$0xff]  ;;  %v22_v1 = vld [vmem:[%s157_s2] sm:$0xff] }
   0x2   :  { %42 = vmatpush.msra.mxu0 %v23_v0  ;;  %v19_v2 = vld [vmem:[%s158_s0] sm:$0x3]  ;;  %v21_v3 = vld [vmem:[%s159_s1 + $0x8] sm:$0xff] }
   0x3   :  { %v20_v4 = vld [vmem:[%s159_s1] sm:$0xff]  ;;  %67 = vmatpush.msra.mxu1 %v21_v3 }
   0x4   :  { %43 = vmatpush.msra.mxu0 %v22_v1  ;;  %v51_v8 = vld [vmem:[%s160_s3] sm:$0x3] }
   0x5   :  { %97 = vmatmul.msk.f32.vlgmr.msra.gmra.mxu0 %vm24_vm0, %v19_v2  ;;  %68 = vmatpush.msra.mxu1 %v20_v4  ;;  %v74_v9 = vmul.f32 0.5, %v51_v8 }
   0x6   :  { %98 = vmatmul.msk.f32.vlgmr.msra.gmra.mxu1 %vm24_vm0, %v19_v2 }
   0x7   :  { %v75_v13 = vmul.f32 %v74_v9, %v51_v8 }
  0x82   :  { %v45_v5 = vpop.f32.mrf.mxu0 }
  0x83   :  { %v48_v6 = vmul.f32 0.5, %v45_v5  ;;  %v70_v11 = vpop.f32.mrf.mxu1  ;;  %v73_v12 = vmul.f32 -0.5, %v45_v5 }
  0x85   :  { %v49_v7 = vmul.f32 1.442695, %v48_v6  ;;  %v76_v16 = vsub.f32 %v73_v12, %v75_v13 }
  0x87   :  { %101 = vpow2.f32 %v49_v7  ;;  %v99_v19 = vadd.f32 -0.9189385, %v76_v16 }
  0x8d   :  { %v102_v10 = vpop.eup %101 }
  0x8e   :  { %v52_v14 = vmul.f32 %v102_v10, %v51_v8 }
  0x90   :  { %v71_v15 = vadd.f32 %v70_v11, %v52_v14 }
  0x92   :  { %v78_v17 = vmul.f32 -0.5, %v71_v15  ;;  %88 = vst.msk [vmem:[%s161_s4] sm:$0x3] %vm82_vm1, %v71_v15 }
  0x94   :  { %v79_v18 = vmul.f32 %v78_v17, %v71_v15 }
  0x96   :  { %v100_v20 = vadd.f32 -0.9189385, %v79_v18 }
  0x98   :  { %v81_v21 = vsub.f32 %v99_v19, %v100_v20 }
  0x9a   :  { %v83_v22 = vsel %vm82_vm1, %v81_v21, 0.0 }
  0x9b   :  { %84 = vadd.xlane.f32.xlu0 %v83_v22 }
 0x10e   :  { %v85_v23 = vpop.xlane.xlu0 %84 }
 0x10f   :  { %87 = vst.msk [vmem:[%s162_s5] sm:$0x3] %vm86_vm2, %v85_v23 }

// kernel: forward.14
= control target key start
LH: loop header
LB: loop body
LE: loop exit
PB: predicated region body
PF: predicated region fallthrough
CT: control target
= control target key end

     0   :  { %vm55_vm0 = vcmask 261120   ;;  %vm72_vm1 = vcmask 254976   ;;  %v454_v9 = vmov 32.0   ;;  %vm258_vm6 = vcmask 1041408   ;;  %s619_s1 = inlined_call_operand.vmem [shape: bf16[32,32], index: 1, kind: input, shape index: {}]   ;;  %s620_s0 = inlined_call_operand.vmem [shape: f32[2,32], index: 0, kind: input, shape index: {}]   ;;  %s621_s2 = inlined_call_operand.vmem [shape: f32[1,32], index: 2, kind: input, shape index: {}]   ;;  %s622_s3 = inlined_call_operand.vmem [shape: f32[1,32], index: 3, kind: input, shape index: {}]   ;;  %s623_s4 = inlined_call_operand.vmem [shape: f32[1,32], index: 4, kind: input, shape index: {}]   ;;  %s624_s5 = inlined_call_operand.vmem [shape: bf16[32,576], index: 5, kind: input, shape index: {}]   ;;  %s625_s6 = inlined_call_operand.vmem [shape: f32[1,576], index: 6, kind: input, shape index: {}]   ;;  %s626_s7 = inlined_call_operand.vmem [shape: f32[1,576], index: 7, kind: input, shape index: {}]   ;;  %s627_s8 = inlined_call_operand.vmem [shape: f32[1,576], index: 8, kind: input, shape index: {}]   ;;  %s628_s9 = inlined_call_operand.vmem [shape: f32[2,576], index: 9, kind: output, shape index: {}]  }
   0x1   :  { %v430_v0 = vld [vmem:[%s619_s1 + $0x8] sm:$0xff]  ;;  %v429_v1 = vld [vmem:[%s619_s1] sm:$0xff]  ;;  %446 = vrcp.f32 %v454_v9  ;;  %v438_v22 = vld [vmem:[%s624_s5 + $0x38] sm:$0xf0]  ;;  %vm266_vm7 = vcmask 517120   ;;  %vm364_vm12 = vcmask 1045508  }
   0x2   :  { %65 = vmatpush.bf16.msra.mxu0 %v430_v0  ;;  %v33_v2 = vld [vmem:[%s620_s0] sm:$0x3]  ;;  %v406_v21 = vld [vmem:[%s624_s5 + $0x28] sm:$0xf]  ;;  %v436_v23 = vld [vmem:[%s624_s5 + $0x2c] sm:$0xf] }
   0x3   :  { %v34_v3 = vpack.c.bf16 %v33_v2, %v33_v2  ;;  %v443_v4 = vld [vmem:[%s621_s2] ss:$0 sm:$0xff]  ;;  %v407_v24 = vor.u32 %v438_v22, %v406_v21  ;;  %v414_v26 = vld [vmem:[%s624_s5 + $0x30] sm:$0xf]  ;;  %v439_v27 = vld [vmem:[%s624_s5 + $0x40] sm:$0xf0] }
   0x4   :  { %v408_v25 = vld [vmem:[%s624_s5 + $0x3c] sm:$0xf0]  ;;  %v415_v29 = vor.u32 %v439_v27, %v414_v26  ;;  %v437_v30 = vld [vmem:[%s624_s5 + $0x34] sm:$0xf]  ;;  %v416_v31 = vld [vmem:[%s624_s5 + $0x44] sm:$0xf0] }
   0x5   :  { %v411_v28 = vor.u32 %v436_v23, %v408_v25  ;;  %v386_v32 = vld [vmem:[%s624_s5] sm:$0xf]  ;;  %199 = vmatpush.bf16.msra.mxu1 %v407_v24  ;;  %v419_v33 = vor.u32 %v437_v30, %v416_v31  ;;  %v433_v34 = vld [vmem:[%s624_s5 + $0x10] sm:$0xf0]  ;;  %v431_v35 = vld [vmem:[%s624_s5 + $0x4] sm:$0xf] }
   0x6   :  { %66 = vmatpush.bf16.msra.mxu0 %v429_v1  ;;  %v388_v36 = vld [vmem:[%s624_s5 + $0x14] sm:$0xf0]  ;;  %225 = vmatpush.bf16.msra.mxu3 %v415_v29  ;;  %v387_v37 = vor.u32 %v433_v34, %v386_v32  ;;  %v394_v39 = vld [vmem:[%s624_s5 + $0x8] sm:$0xf]  ;;  %v434_v40 = vld [vmem:[%s624_s5 + $0x18] sm:$0xf0] }
   0x7   :  { %v447_v10 = vpop.eup %446  ;;  %212 = vmatpush.bf16.msra.mxu2 %v411_v28  ;;  %v391_v38 = vor.u32 %v431_v35, %v388_v36  ;;  %v432_v41 = vld [vmem:[%s624_s5 + $0xc] sm:$0xf]  ;;  %v395_v42 = vor.u32 %v434_v40, %v394_v39  ;;  %v396_v43 = vld [vmem:[%s624_s5 + $0x1c] sm:$0xf0]  ;;  %v422_v47 = vld [vmem:[%s624_s5 + $0x38] sm:$0xf] }
   0x8   :  { %v77_v11 = vmul.f32 32.0, %v447_v10  ;;  %vm81_vm2 = vweird.f32 %v447_v10  ;;  %v399_v44 = vor.u32 %v432_v41, %v396_v43  ;;  %v440_v48 = vld [vmem:[%s624_s5 + $0x48] sm:$0xf0]  ;;  %v402_v49 = vld [vmem:[%s624_s5 + $0x10] sm:$0xf]  ;;  %v455_v34 = vmov 576.0  }
   0x9   :  { %383 = vmatmul.msk.bf16.vlgmr.msra.gmra.mxu0 %vm55_vm0, %v34_v3  ;;  %200 = vmatpush.bf16.msra.mxu1 %v387_v37  ;;  %v423_v51 = vor.u32 %v440_v48, %v422_v47  ;;  %v435_v52 = vld [vmem:[%s624_s5 + $0x20] sm:$0xf0]  ;;  %v444_v60 = vld [vmem:[%s622_s3] ss:$0 sm:$0xff]  ;;  %vm366_vm13 = vcmask 1043456  }
   0xa   :  { %v78_v12 = vsub.f32 1.0, %v77_v11  ;;  %238 = vmatpush.bf16.msrb.mxu0 %v419_v33  ;;  %226 = vmatpush.bf16.msra.mxu3 %v395_v42  ;;  %v403_v53 = vor.u32 %v435_v52, %v402_v49  ;;  %v445_v63 = vld [vmem:[%s623_s4] ss:$0 sm:$0xff] }
   0xb   :  { %213 = vmatpush.bf16.msra.mxu2 %v391_v38 }
   0xc   :  { %v79_v13 = vmul.f32 %v447_v10, %v78_v12 }
   0xd   :  { %251 = vmatpush.bf16.msrb.mxu1 %v423_v51 }
   0xe   :  { %v80_v14 = vadd.f32 %v447_v10, %v79_v13  ;;  %239 = vmatpush.bf16.msrb.mxu0 %v399_v44 }
  0x10   :  { %v82_v15 = vsel %vm81_vm2, %v447_v10, %v80_v14 }
  0x11   :  { %252 = vmatpush.bf16.msrb.mxu1 %v403_v53 }
  0x86   :  { %v68_v5 = vpop.f32.mrf.mxu0 }
  0x87   :  { %v69_v6 = vadd.f32 %v443_v4, %v68_v5  ;;  %v126_v4 = vld [vmem:[%s625_s6] sm:$0x1f] }
  0x88   :  { %v130_v10 = vperm.slane %v126_v4, 2  ;;  %v132_v23 = vperm.slane %v126_v4, 4 }
  0x89   :  { %v73_v7 = vsel %vm72_vm1, %v69_v6, 0.0 }
  0x8a   :  { %74 = vadd.xlane.f32.xlu0 %v73_v7 }
  0x8e   :  { %v70_v8 = vpop.f32.mrf.mxu0 }
  0x8f   :  { %v129_v8 = vperm.slane %v126_v4, 1 }
  0xfd   :  { %v75_v16 = vpop.xlane.xlu0 %74 }
  0xfe   :  { %v83_v17 = vmul.f32 %v82_v15, %v75_v16  ;;  %v131_v16 = vperm.slane %v126_v4, 3 }
 0x100   :  { %v84_v18 = vsub.f32 %v69_v6, %v83_v17  ;;  %v128_v6 = vperm.slane %v126_v4, 0 }
 0x102   :  { %v85_v19 = vmul.f32 %v84_v18, %v84_v18 }
 0x104   :  { %v86_v20 = vsel %vm72_vm1, %v85_v19, 0.0 }
 0x105   :  { %87 = vadd.xlane.f32.xlu0 %v86_v20 }
 0x178   :  { %v88_v45 = vpop.xlane.xlu0 %87 }
 0x179   :  { %v89_v46 = vmul.f32 %v88_v45, %v82_v15 }
 0x17b   :  { %v90_v50 = vadd.f32 1e-05, %v89_v46 }
 0x17d   :  { %448 = vrsqrt.f32 %v90_v50  ;;  %vm97_vm4 = vweird.f32 %v90_v50 }
 0x17e   :  { %450 = vrcp.f32 %v455_v34 }
 0x183   :  { %v449_v54 = vpop.eup %448 }
 0x184   :  { %v92_v55 = vmul.f32 %v449_v54, %v90_v50  ;;  %vm98_vm3 = vweird.f32 %v449_v54  ;;  %v451_v35 = vpop.eup %450 }
 0x185   :  { %vm99_vm5 = vmor %vm97_vm4, %vm98_vm3  ;;  %v272_v36 = vmul.f32 576.0, %v451_v35  ;;  %vm276_vm8 = vweird.f32 %v451_v35 }
 0x186   :  { %v93_v56 = vmul.f32 %v449_v54, %v92_v55 }
 0x187   :  { %v273_v37 = vsub.f32 1.0, %v272_v36 }
 0x188   :  { %v94_v57 = vmul.f32 0.5, %v93_v56 }
 0x189   :  { %v274_v38 = vmul.f32 %v451_v35, %v273_v37 }
 0x18a   :  { %v95_v58 = vsub.f32 1.5, %v94_v57 }
 0x18b   :  { %v275_v39 = vadd.f32 %v451_v35, %v274_v38 }
 0x18c   :  { %v96_v59 = vmul.f32 %v449_v54, %v95_v58 }
 0x18d   :  { %v277_v40 = vsel %vm276_vm8, %v451_v35, %v275_v39 }
 0x18e   :  { %v100_v61 = vsel %vm99_vm5, %v449_v54, %v96_v59 }
 0x18f   :  { %v101_v62 = vmul.f32 %v100_v61, %v84_v18 }
 0x191   :  { %v106_v0 = vmul.f32 %v444_v60, %v101_v62 }
 0x193   :  { %v111_v1 = vadd.f32 %v445_v63, %v106_v0 }
 0x195   :  { %v112_v2 = vmax.f32 %v111_v1, 0.0 }
 0x197   :  { %v113_v3 = vpack.c.bf16 %v112_v2, %v112_v2 }
 0x199   :  { %424 = vmatmul.msk.bf16.vlgmr.msra.gmra.mxu1 %vm55_vm0, %v113_v3  ;;  %425 = vmatmul.msk.bf16.vlgmr.msra.gmra.mxu2 %vm55_vm0, %v113_v3 }
 0x19a   :  { %426 = vmatmul.msk.bf16.vlgmr.msra.gmra.mxu3 %vm55_vm0, %v113_v3  ;;  %427 = vmatmul.msk.bf16.vlgmr.msrb.gmra.mxu0 %vm55_vm0, %v113_v3 }
 0x1a9   :  { %428 = vmatmul.msk.bf16.vlgmr.msrb.gmra.mxu1 %vm55_vm0, %v113_v3 }
 0x216   :  { %v202_v5 = vpop.f32.mrf.mxu1 }
 0x217   :  { %v241_v7 = vpop.f32.mrf.mxu0  ;;  %v203_v9 = vadd.f32 %v202_v5, %v128_v6  ;;  %v317_v5 = vld [vmem:[%s626_s7] sm:$0x1f] }
 0x218   :  { %v242_v21 = vadd.f32 %v241_v7, %v131_v16  ;;  %v334_v6 = vld [vmem:[%s627_s8] sm:$0x1f] }
 0x219   :  { %v259_v15 = vsel %vm258_vm6, %v203_v9, 0.0  ;;  %v338_v16 = vperm.slane %v334_v6, 2 }
 0x21a   :  { %v264_v28 = vsel %vm258_vm6, %v242_v21, 0.0 }
 0x21c   :  { %v215_v11 = vpop.f32.mrf.mxu2 }
 0x21d   :  { %v216_v12 = vadd.f32 %v215_v11, %v129_v8  ;;  %v228_v13 = vpop.f32.mrf.mxu3  ;;  %v319_v8 = vperm.slane %v317_v5, 0  ;;  %v321_v11 = vperm.slane %v317_v5, 2 }
 0x21e   :  { %v204_v14 = vpop.f32.mrf.mxu1  ;;  %v229_v18 = vadd.f32 %v228_v13, %v130_v10  ;;  %v323_v13 = vperm.slane %v317_v5, 4 }
 0x21f   :  { %v260_v17 = vsel %vm258_vm6, %v216_v12, 0.0  ;;  %v243_v19 = vpop.f32.mrf.mxu0  ;;  %v336_v14 = vperm.slane %v334_v6, 0 }
 0x220   :  { %v261_v20 = vadd.f32 %v260_v17, %v259_v15  ;;  %v262_v22 = vsel %vm258_vm6, %v229_v18, 0.0  ;;  %v337_v15 = vperm.slane %v334_v6, 1  ;;  %v339_v17 = vperm.slane %v334_v6, 3 }
 0x222   :  { %v263_v24 = vadd.f32 %v262_v22, %v261_v20 }
 0x224   :  { %v217_v25 = vpop.f32.mrf.mxu2  ;;  %v265_v30 = vadd.f32 %v264_v28, %v263_v24 }
 0x225   :  { %v230_v26 = vpop.f32.mrf.mxu3 }
 0x226   :  { %v254_v27 = vpop.f32.mrf.mxu1 }
 0x227   :  { %v255_v29 = vadd.f32 %v254_v27, %v132_v23  ;;  %v340_v23 = vperm.slane %v334_v6, 4 }
 0x229   :  { %v267_v31 = vsel %vm266_vm7, %v255_v29, 0.0 }
 0x22a   :  { %v268_v32 = vadd.f32 %v267_v31, %v265_v30 }
 0x22c   :  { %269 = vadd.xlane.f32.xlu1 %v268_v32 }
 0x22e   :  { %v256_v33 = vpop.f32.mrf.mxu1 }
 0x29f   :  { %v270_v41 = vpop.xlane.xlu1 %269 }
 0x2a0   :  { %v278_v42 = vmul.f32 %v277_v40, %v270_v41 }
 0x2a2   :  { %v279_v43 = vsub.f32 %v203_v9, %v278_v42  ;;  %v280_v44 = vsub.f32 %v216_v12, %v278_v42  ;;  %v281_v45 = vsub.f32 %v229_v18, %v278_v42  ;;  %v282_v46 = vsub.f32 %v242_v21, %v278_v42 }
 0x2a3   :  { %v283_v47 = vsub.f32 %v255_v29, %v278_v42  ;;  %v320_v9 = vperm.slane %v317_v5, 1  ;;  %v322_v12 = vperm.slane %v317_v5, 3 }
 0x2a4   :  { %v284_v48 = vmul.f32 %v279_v43, %v279_v43  ;;  %v285_v49 = vmul.f32 %v280_v44, %v280_v44  ;;  %v286_v50 = vmul.f32 %v281_v45, %v281_v45  ;;  %v287_v51 = vmul.f32 %v282_v46, %v282_v46 }
 0x2a5   :  { %v288_v55 = vmul.f32 %v283_v47, %v283_v47 }
 0x2a6   :  { %v289_v52 = vsel %vm258_vm6, %v284_v48, 0.0  ;;  %v290_v53 = vsel %vm258_vm6, %v285_v49, 0.0  ;;  %v292_v56 = vsel %vm258_vm6, %v286_v50, 0.0  ;;  %v294_v58 = vsel %vm258_vm6, %v287_v51, 0.0 }
 0x2a7   :  { %v291_v54 = vadd.f32 %v290_v53, %v289_v52  ;;  %v296_v60 = vsel %vm266_vm7, %v288_v55, 0.0 }
 0x2a9   :  { %v293_v57 = vadd.f32 %v292_v56, %v291_v54 }
 0x2ab   :  { %v295_v59 = vadd.f32 %v294_v58, %v293_v57 }
 0x2ad   :  { %v297_v61 = vadd.f32 %v296_v60, %v295_v59 }
 0x2af   :  { %298 = vadd.xlane.f32.xlu1 %v297_v61 }
 0x322   :  { %v299_v62 = vpop.xlane.xlu1 %298 }
 0x323   :  { %v300_v63 = vmul.f32 %v299_v62, %v277_v40 }
 0x325   :  { %v301_v0 = vadd.f32 1e-05, %v300_v63 }
 0x327   :  { %452 = vrsqrt.f32 %v301_v0  ;;  %vm308_vm10 = vweird.f32 %v301_v0 }
 0x32d   :  { %v453_v1 = vpop.eup %452 }
 0x32e   :  { %v303_v2 = vmul.f32 %v453_v1, %v301_v0  ;;  %vm309_vm9 = vweird.f32 %v453_v1 }
 0x32f   :  { %vm310_vm11 = vmor %vm308_vm10, %vm309_vm9 }
 0x330   :  { %v304_v3 = vmul.f32 %v453_v1, %v303_v2 }
 0x332   :  { %v305_v4 = vmul.f32 0.5, %v304_v3 }
 0x334   :  { %v306_v7 = vsub.f32 1.5, %v305_v4 }
 0x336   :  { %v307_v10 = vmul.f32 %v453_v1, %v306_v7 }
 0x338   :  { %v311_v18 = vsel %vm310_vm11, %v453_v1, %v307_v10 }
 0x339   :  { %v312_v19 = vmul.f32 %v311_v18, %v279_v43  ;;  %v313_v20 = vmul.f32 %v311_v18, %v280_v44  ;;  %v314_v21 = vmul.f32 %v311_v18, %v281_v45  ;;  %v315_v22 = vmul.f32 %v311_v18, %v282_v46 }
 0x33a   :  { %v316_v24 = vmul.f32 %v311_v18, %v283_v47 }
 0x33b   :  { %v329_v25 = vmul.f32 %v319_v8, %v312_v19  ;;  %v330_v26 = vmul.f32 %v320_v9, %v313_v20  ;;  %v331_v27 = vmul.f32 %v321_v11, %v314_v21  ;;  %v332_v28 = vmul.f32 %v322_v12, %v315_v22 }
 0x33c   :  { %v333_v29 = vmul.f32 %v323_v13, %v316_v24 }
 0x33d   :  { %v346_v30 = vadd.f32 %v336_v14, %v329_v25  ;;  %v347_v31 = vadd.f32 %v337_v15, %v330_v26  ;;  %v348_v32 = vadd.f32 %v338_v16, %v331_v27  ;;  %v349_v33 = vadd.f32 %v339_v17, %v332_v28 }
 0x33e   :  { %v350_v34 = vadd.f32 %v340_v23, %v333_v29 }
 0x33f   :  { %v352_v35 = vmax.f32 %v347_v31, 0.0  ;;  %v353_v36 = vmax.f32 %v348_v32, 0.0  ;;  %v354_v37 = vmax.f32 %v349_v33, 0.0  ;;  %v351_v39 = vmax.f32 %v346_v30, 0.0 }
 0x340   :  { %v355_v38 = vmax.f32 %v350_v34, 0.0 }
 0x341   :  { %v360_v40 = vrot.slane %v352_v35, 6  ;;  %v361_v41 = vrot.slane %v353_v36, 4  ;;  %v362_v42 = vrot.slane %v354_v37, 2 }
 0x342   :  { %370 = vst.msk [vmem:[%s628_s9 + $0x8] sm:$0x3] %vm266_vm7, %v355_v38 }
 0x343   :  { %v363_v43 = vsel %vm258_vm6, %v351_v39, %v360_v40  ;;  %v365_v44 = vsel %vm364_vm12, %v361_v41, %v362_v42 }
 0x344   :  { %v367_v45 = vsel %vm366_vm13, %v363_v43, %v365_v44 }
 0x345   :  { %369 = vst [vmem:[%s628_s9] sm:$0xff] %v367_v45 }

// kernel: forward.12
= control target key start
LH: loop header
LB: loop body
LE: loop exit
PB: predicated region body
PF: predicated region fallthrough
CT: control target
= control target key end

     0   :  { %vm337_vm0 = vcmask 523264   ;;  %vm405_vm1 = vcmask 254976   ;;  %v738_v59 = vmov 32.0   ;;  %vm467_vm6 = vcmask 261120   ;;  %s933_s1 = inlined_call_operand.vmem [shape: bf16[576,32], index: 1, kind: input, shape index: {}]   ;;  %s934_s0 = inlined_call_operand.vmem [shape: bf16[2,576], index: 0, kind: input, shape index: {}]   ;;  %s935_s2 = inlined_call_operand.vmem [shape: f32[1,32], index: 2, kind: input, shape index: {}]   ;;  %s936_s3 = inlined_call_operand.vmem [shape: f32[1,32], index: 3, kind: input, shape index: {}]   ;;  %s937_s4 = inlined_call_operand.vmem [shape: f32[1,32], index: 4, kind: input, shape index: {}]   ;;  %s938_s6 = inlined_call_operand.vmem [shape: f32[1,16], index: 6, kind: input, shape index: {}]   ;;  %s939_s5 = inlined_call_operand.vmem [shape: bf16[32,16], index: 5, kind: input, shape index: {}]   ;;  %s940_s7 = inlined_call_operand.vmem [shape: f32[1,16], index: 7, kind: input, shape index: {}]   ;;  %s941_s8 = inlined_call_operand.vmem [shape: f32[1,16], index: 8, kind: input, shape index: {}]   ;;  %s942_s9 = inlined_call_operand.vmem [shape: f32[2,16], index: 9, kind: output, shape index: {}]  }
   0x1   :  { %v691_v0 = vld [vmem:[%s933_s1 + $0x38] sm:$0xff]  ;;  %v690_v4 = vld [vmem:[%s933_s1 + $0x30] sm:$0xff]  ;;  %v689_v8 = vld [vmem:[%s933_s1 + $0x28] sm:$0xff]  ;;  %730 = vrcp.f32 %v738_v59  ;;  %vm484_vm7 = vcmask 123904  }
   0x2   :  { %v707_v1 = vld [vmem:[%s933_s1 + $0xb8] sm:$0xff]  ;;  %340 = vmatpush.bf16.msra.mxu0 %v691_v0  ;;  %v706_v5 = vld [vmem:[%s933_s1 + $0xb0] sm:$0xff]  ;;  %v705_v9 = vld [vmem:[%s933_s1 + $0xa8] sm:$0xff] }
   0x3   :  { %v715_v2 = vld [vmem:[%s933_s1 + $0xf8] sm:$0xff]  ;;  %366 = vmatpush.bf16.msra.mxu2 %v707_v1  ;;  %v714_v6 = vld [vmem:[%s933_s1 + $0xf0] sm:$0xff]  ;;  %v713_v10 = vld [vmem:[%s933_s1 + $0xe8] sm:$0xff] }
   0x4   :  { %v699_v3 = vld [vmem:[%s933_s1 + $0x78] sm:$0xff]  ;;  %379 = vmatpush.bf16.msra.mxu3 %v715_v2  ;;  %v698_v7 = vld [vmem:[%s933_s1 + $0x70] sm:$0xff]  ;;  %v697_v11 = vld [vmem:[%s933_s1 + $0x68] sm:$0xff] }
   0x5   :  { %353 = vmatpush.bf16.msra.mxu1 %v699_v3  ;;  %v688_v12 = vld [vmem:[%s933_s1 + $0x20] sm:$0xff]  ;;  %v687_v17 = vld [vmem:[%s933_s1 + $0x18] sm:$0xff]  ;;  %v686_v21 = vld [vmem:[%s933_s1 + $0x10] sm:$0xff] }
   0x6   :  { %341 = vmatpush.bf16.msra.mxu0 %v690_v4  ;;  %v704_v13 = vld [vmem:[%s933_s1 + $0xa0] sm:$0xff]  ;;  %v703_v18 = vld [vmem:[%s933_s1 + $0x98] sm:$0xff]  ;;  %v702_v22 = vld [vmem:[%s933_s1 + $0x90] sm:$0xff] }
   0x7   :  { %367 = vmatpush.bf16.msra.mxu2 %v706_v5  ;;  %v33_v14 = vld [vmem:[%s934_s0] sm:$0x1f]  ;;  %v711_v19 = vld [vmem:[%s933_s1 + $0xd8] sm:$0xff]  ;;  %v710_v23 = vld [vmem:[%s933_s1 + $0xd0] sm:$0xff]  ;;  %v731_v60 = vpop.eup %730 }
   0x8   :  { %380 = vmatpush.bf16.msra.mxu3 %v714_v6  ;;  %v712_v15 = vld [vmem:[%s933_s1 + $0xe0] sm:$0xff]  ;;  %111 = vst [vmem:[#allocation1] ss:$9 sm:$0xff] %v33_v14  ;;  %v695_v20 = vld [vmem:[%s933_s1 + $0x58] sm:$0xff]  ;;  %v694_v24 = vld [vmem:[%s933_s1 + $0x50] sm:$0xff]  ;;  %v410_v61 = vmul.f32 32.0, %v731_v60  ;;  %vm414_vm2 = vweird.f32 %v731_v60 }
   0x9   :  { %354 = vmatpush.bf16.msra.mxu1 %v698_v7  ;;  %v696_v16 = vld [vmem:[%s933_s1 + $0x60] sm:$0xff]  ;;  %v685_v25 = vld [vmem:[%s933_s1 + $0x8] sm:$0xff]  ;;  %v719_v33 = vld [vmem:[%s933_s1 + $0x118] sm:$0xff] }
   0xa   :  { %342 = vmatpush.bf16.msra.mxu0 %v689_v8  ;;  %v701_v26 = vld [vmem:[%s933_s1 + $0x88] sm:$0xff]  ;;  %v684_v29 = vld [vmem:[%s933_s1] sm:$0xff]  ;;  %v718_v38 = vld [vmem:[%s933_s1 + $0x110] sm:$0xff]  ;;  %v411_v62 = vsub.f32 1.0, %v410_v61 }
   0xb   :  { %368 = vmatpush.bf16.msra.mxu2 %v705_v9  ;;  %v709_v27 = vld [vmem:[%s933_s1 + $0xc8] sm:$0xff]  ;;  %v700_v30 = vld [vmem:[%s933_s1 + $0x80] sm:$0xff] }
   0xc   :  { %381 = vmatpush.bf16.msra.mxu3 %v713_v10  ;;  %v693_v28 = vld [vmem:[%s933_s1 + $0x48] sm:$0xff]  ;;  %v708_v31 = vld [vmem:[%s933_s1 + $0xc0] sm:$0xff]  ;;  %v412_v63 = vmul.f32 %v731_v60, %v411_v62 }
   0xd   :  { %355 = vmatpush.bf16.msra.mxu1 %v697_v11  ;;  %v692_v32 = vld [vmem:[%s933_s1 + $0x40] sm:$0xff]  ;;  %v717_v39 = vld [vmem:[%s933_s1 + $0x108] sm:$0xff] }
   0xe   :  { %343 = vmatpush.bf16.msra.mxu0 %v688_v12  ;;  %v716_v40 = vld [vmem:[%s933_s1 + $0x100] sm:$0xff]  ;;  %v413_v0 = vadd.f32 %v731_v60, %v412_v63  ;;  %v721_v7 = vld [vmem:[%s939_s5 + $0x8] sm:$0xff] }
   0xf   :  { %369 = vmatpush.bf16.msra.mxu2 %v704_v13  ;;  %v112_v34 = vld [vmem:[#allocation1] sm:$0xff]  ;;  %v114_v35 = vld [vmem:[#allocation1 + $0x12] sm:$0xff]  ;;  %v113_v37 = vld [vmem:[#allocation1 + $0x9] sm:$0xff] }
  0x10   :  { %382 = vmatpush.bf16.msra.mxu3 %v712_v15  ;;  %v115_v36 = vld [vmem:[#allocation1 + $0x1b] sm:$0xff]  ;;  %v116_v41 = vld [vmem:[#allocation1 + $0x24] sm:$0xff]  ;;  %v415_v1 = vsel %vm414_vm2, %v731_v60, %v413_v0 }
  0x11   :  { %356 = vmatpush.bf16.msra.mxu1 %v696_v16  ;;  %v724_v43 = vld [vmem:[%s935_s2] ss:$0 sm:$0xff] }
  0x12   :  { %344 = vmatpush.bf16.msra.mxu0 %v687_v17  ;;  %v720_v8 = vld [vmem:[%s939_s5] sm:$0xff] }
  0x13   :  { %370 = vmatpush.bf16.msra.mxu2 %v703_v18  ;;  %v725_v18 = vld [vmem:[%s936_s3] ss:$0 sm:$0xff] }
  0x14   :  { %383 = vmatpush.bf16.msra.mxu3 %v711_v19 }
  0x15   :  { %357 = vmatpush.bf16.msra.mxu1 %v695_v20 }
  0x16   :  { %345 = vmatpush.bf16.msra.mxu0 %v686_v21  ;;  %v726_v21 = vld [vmem:[%s937_s4] ss:$0 sm:$0xff] }
  0x17   :  { %371 = vmatpush.bf16.msra.mxu2 %v702_v22 }
  0x18   :  { %384 = vmatpush.bf16.msra.mxu3 %v710_v23 }
  0x19   :  { %358 = vmatpush.bf16.msra.mxu1 %v694_v24 }
  0x1a   :  { %346 = vmatpush.bf16.msra.mxu0 %v685_v25 }
  0x1b   :  { %372 = vmatpush.bf16.msra.mxu2 %v701_v26  ;;  %v727_v26 = vld [vmem:[%s938_s6] ss:$0 sm:$0xff] }
  0x1c   :  { %385 = vmatpush.bf16.msra.mxu3 %v709_v27 }
  0x1d   :  { %359 = vmatpush.bf16.msra.mxu1 %v693_v28 }
  0x1e   :  { %347 = vmatpush.bf16.msra.mxu0 %v684_v29 }
  0x1f   :  { %373 = vmatpush.bf16.msra.mxu2 %v700_v30 }
  0x20   :  { %386 = vmatpush.bf16.msra.mxu3 %v708_v31  ;;  %v739_v31 = vmov 16.0  }
  0x21   :  { %360 = vmatpush.bf16.msra.mxu1 %v692_v32  ;;  %348 = vmatmul.bf16.vlgmr.msra.gmra.mxu0 %v112_v34 }
  0x22   :  { %396 = vmatpush.bf16.msrb.mxu0 %v719_v33  ;;  %374 = vmatmul.bf16.vlgmr.msra.gmra.mxu2 %v114_v35 }
  0x23   :  { %387 = vmatmul.bf16.vlgmr.msra.gmra.mxu3 %v115_v36 }
  0x24   :  { %361 = vmatmul.bf16.vlgmr.msra.gmra.mxu1 %v113_v37 }
  0x25   :  { %477 = vmatpush.bf16.msrb.mxu1 %v721_v7 }
  0x26   :  { %397 = vmatpush.bf16.msrb.mxu0 %v718_v38 }
  0x29   :  { %478 = vmatpush.bf16.msrb.mxu1 %v720_v8 }
  0x2a   :  { %398 = vmatpush.bf16.msrb.mxu0 %v717_v39 }
  0x2e   :  { %399 = vmatpush.bf16.msrb.mxu0 %v716_v40 }
  0x31   :  { %674 = vmatmul.msk.bf16.vlgmr.msrb.gmra.mxu0 %vm337_vm0, %v116_v41 }
  0x9e   :  { %v349_v42 = vpop.f32.mrf.mxu0 }
  0x9f   :  { %v350_v45 = vadd.f32 %v724_v43, %v349_v42 }
  0xa1   :  { %v362_v44 = vpop.f32.mrf.mxu1 }
  0xa2   :  { %v363_v49 = vadd.f32 %v362_v44, %v350_v45 }
  0xa5   :  { %v375_v46 = vpop.f32.mrf.mxu2 }
  0xa6   :  { %v388_v47 = vpop.f32.mrf.mxu3  ;;  %v351_v48 = vpop.f32.mrf.mxu0  ;;  %v376_v51 = vadd.f32 %v375_v46, %v363_v49 }
  0xa8   :  { %v389_v53 = vadd.f32 %v388_v47, %v376_v51 }
  0xa9   :  { %v364_v50 = vpop.f32.mrf.mxu1 }
  0xad   :  { %v377_v52 = vpop.f32.mrf.mxu2 }
  0xae   :  { %v390_v54 = vpop.f32.mrf.mxu3  ;;  %v401_v55 = vpop.f32.mrf.mxu0  ;;  %v728_v52 = vld [vmem:[%s940_s7] ss:$0 sm:$0xff] }
  0xaf   :  { %v402_v56 = vadd.f32 %v401_v55, %v389_v53  ;;  %v729_v54 = vld [vmem:[%s941_s8] ss:$0 sm:$0xff] }
  0xb1   :  { %v406_v57 = vsel %vm405_vm1, %v402_v56, 0.0 }
  0xb2   :  { %407 = vadd.xlane.f32.xlu0 %v406_v57 }
  0xb6   :  { %v403_v58 = vpop.f32.mrf.mxu0 }
 0x125   :  { %v408_v2 = vpop.xlane.xlu0 %407 }
 0x126   :  { %v416_v3 = vmul.f32 %v415_v1, %v408_v2 }
 0x128   :  { %v417_v4 = vsub.f32 %v402_v56, %v416_v3 }
 0x12a   :  { %v418_v5 = vmul.f32 %v417_v4, %v417_v4 }
 0x12c   :  { %v419_v6 = vsel %vm405_vm1, %v418_v5, 0.0 }
 0x12d   :  { %420 = vadd.xlane.f32.xlu0 %v419_v6 }
 0x1a0   :  { %v421_v9 = vpop.xlane.xlu0 %420 }
 0x1a1   :  { %v422_v10 = vmul.f32 %v421_v9, %v415_v1 }
 0x1a3   :  { %v423_v11 = vadd.f32 1e-05, %v422_v10 }
 0x1a5   :  { %732 = vrsqrt.f32 %v423_v11  ;;  %vm430_vm4 = vweird.f32 %v423_v11 }
 0x1a6   :  { %734 = vrcp.f32 %v739_v31 }
 0x1ab   :  { %v733_v12 = vpop.eup %732 }
 0x1ac   :  { %v425_v13 = vmul.f32 %v733_v12, %v423_v11  ;;  %vm431_vm3 = vweird.f32 %v733_v12  ;;  %v735_v32 = vpop.eup %734 }
 0x1ad   :  { %vm432_vm5 = vmor %vm430_vm4, %vm431_vm3  ;;  %v489_v33 = vmul.f32 16.0, %v735_v32  ;;  %vm493_vm8 = vweird.f32 %v735_v32 }
 0x1ae   :  { %v426_v14 = vmul.f32 %v733_v12, %v425_v13 }
 0x1af   :  { %v490_v34 = vsub.f32 1.0, %v489_v33 }
 0x1b0   :  { %v427_v15 = vmul.f32 0.5, %v426_v14 }
 0x1b1   :  { %v491_v35 = vmul.f32 %v735_v32, %v490_v34 }
 0x1b2   :  { %v428_v16 = vsub.f32 1.5, %v427_v15 }
 0x1b3   :  { %v492_v36 = vadd.f32 %v735_v32, %v491_v35 }
 0x1b4   :  { %v429_v17 = vmul.f32 %v733_v12, %v428_v16 }
 0x1b5   :  { %v494_v37 = vsel %vm493_vm8, %v735_v32, %v492_v36 }
 0x1b6   :  { %v433_v19 = vsel %vm432_vm5, %v733_v12, %v429_v17 }
 0x1b7   :  { %v434_v20 = vmul.f32 %v433_v19, %v417_v4 }
 0x1b9   :  { %v439_v22 = vmul.f32 %v725_v18, %v434_v20 }
 0x1bb   :  { %v444_v23 = vadd.f32 %v726_v21, %v439_v22 }
 0x1bd   :  { %v445_v24 = vmax.f32 %v444_v23, 0.0 }
 0x1bf   :  { %v446_v25 = vpack.c.bf16 %v445_v24, %v445_v24 }
 0x1c1   :  { %683 = vmatmul.msk.bf16.vlgmr.msrb.gmra.mxu1 %vm467_vm6, %v446_v25 }
 0x23e   :  { %v480_v27 = vpop.f32.mrf.mxu1 }
 0x23f   :  { %v481_v28 = vadd.f32 %v727_v26, %v480_v27 }
 0x241   :  { %v485_v29 = vsel %vm484_vm7, %v481_v28, 0.0 }
 0x242   :  { %486 = vadd.xlane.f32.xlu1 %v485_v29 }
 0x246   :  { %v482_v30 = vpop.f32.mrf.mxu1 }
 0x2b5   :  { %v487_v38 = vpop.xlane.xlu1 %486 }
 0x2b6   :  { %v495_v39 = vmul.f32 %v494_v37, %v487_v38 }
 0x2b8   :  { %v496_v40 = vsub.f32 %v481_v28, %v495_v39 }
 0x2ba   :  { %v497_v41 = vmul.f32 %v496_v40, %v496_v40 }
 0x2bc   :  { %v498_v42 = vsel %vm484_vm7, %v497_v41, 0.0 }
 0x2bd   :  { %499 = vadd.xlane.f32.xlu1 %v498_v42 }
 0x330   :  { %v500_v43 = vpop.xlane.xlu1 %499 }
 0x331   :  { %v501_v44 = vmul.f32 %v500_v43, %v494_v37 }
 0x333   :  { %v502_v45 = vadd.f32 1e-05, %v501_v44 }
 0x335   :  { %736 = vrsqrt.f32 %v502_v45  ;;  %vm509_vm10 = vweird.f32 %v502_v45 }
 0x33b   :  { %v737_v46 = vpop.eup %736 }
 0x33c   :  { %v504_v47 = vmul.f32 %v737_v46, %v502_v45  ;;  %vm510_vm9 = vweird.f32 %v737_v46 }
 0x33d   :  { %vm511_vm11 = vmor %vm509_vm10, %vm510_vm9 }
 0x33e   :  { %v505_v48 = vmul.f32 %v737_v46, %v504_v47 }
 0x340   :  { %v506_v49 = vmul.f32 0.5, %v505_v48 }
 0x342   :  { %v507_v50 = vsub.f32 1.5, %v506_v49 }
 0x344   :  { %v508_v51 = vmul.f32 %v737_v46, %v507_v50 }
 0x346   :  { %v512_v53 = vsel %vm511_vm11, %v737_v46, %v508_v51 }
 0x347   :  { %v513_v55 = vmul.f32 %v512_v53, %v496_v40 }
 0x349   :  { %v518_v56 = vmul.f32 %v728_v52, %v513_v55 }
 0x34b   :  { %v523_v57 = vadd.f32 %v729_v54, %v518_v56 }
 0x34d   :  { %v524_v58 = vmax.f32 %v523_v57, 0.0 }
 0x34f   :  { %525 = vst.msk [vmem:[%s942_s9] sm:$0x3] %vm484_vm7, %v524_v58 }

// kernel: squeeze.8
= control target key start
LH: loop header
LB: loop body
LE: loop exit
PB: predicated region body
PF: predicated region fallthrough
CT: control target
= control target key end

     0   :  { %s37_s8 = smov 104   ;;  %s38_s9 = smov 112   ;;  %vm7_vm0 = vcmask 64512   ;;  %s55_s0 = inlined_call_operand.vmem [shape: f32[32], index: 0, kind: input, shape index: {}]   ;;  %s56_s1 = inlined_call_operand.vmem [shape: f32[4,8], index: 1, kind: output, shape index: {}]  }
   0x1   :  { %v4_v0 = vld [vmem:[%s55_s0] sm:$0x1]  ;;  %s36_s0 = smov 120  }
   0x2   :  { %5 = vst [vmem:[#allocation1] sm:$0x1] %v4_v0 }
   0x9   :  { %v9_v1 = vld [vmem:[#allocation1] sm:$0x1]  }
   0xa   :  { %v21_v2 = vld [vmem:[#allocation1] sm:$0x1]   ;;  %10 = vrot.lane.b32.xlu0 %v9_v1, %s36_s0 }
   0xb   :  { %22 = vrot.lane.b32.xlu1 %v21_v2, %s37_s8  ;;  %v15_v3 = vld [vmem:[#allocation1] sm:$0x1]  }
   0xc   :  { %v6_v4 = vld [vmem:[#allocation1] sm:$0x1]  }
   0xd   :  { %8 = vst.msk [vmem:[#allocation0] sm:$0x1] %vm7_vm0, %v6_v4  }
  0x12   :  { %16 = vrot.lane.b32.xlu0 %v15_v3, %s38_s9 }
  0x7c   :  { %v11_v5 = vpop.permute.xlu0 %10  }
  0x7d   :  { %v23_v6 = vpop.permute.xlu1 %22   ;;  %14 = vst.msk [vmem:[#allocation0 + $0x1] sm:$0x1] %vm7_vm0, %v11_v5  }
  0x7e   :  { %26 = vst.msk [vmem:[#allocation0 + $0x3] sm:$0x1] %vm7_vm0, %v23_v6  }
  0x84   :  { %v17_v7 = vpop.permute.xlu0 %16  }
  0x85   :  { %20 = vst.msk [vmem:[#allocation0 + $0x2] sm:$0x1] %vm7_vm0, %v17_v7  }
  0x8c   :  { %v29_v8 = vld [vmem:[#allocation0] sm:$0xf] }
  0x8d   :  { %32 = vst [vmem:[%s56_s1] sm:$0xf] %v29_v8 }

// kernel: tile.18
= control target key start
LH: loop header
LB: loop body
LE: loop exit
PB: predicated region body
PF: predicated region fallthrough
CT: control target
= control target key end

     0   :  { %s22_s0 = inlined_call_operand.vmem [shape: f32[8], index: 0, kind: input, shape index: {}]   ;;  %s23_s1 = inlined_call_operand.vmem [shape: f32[4,8], index: 1, kind: output, shape index: {}]  }
   0x1   :  { %v4_v0 = vld [vmem:[%s22_s0] ss:$0 sm:$0xff] }
   0x2   :  { %5 = vst [vmem:[%s23_s1] sm:$0xf] %v4_v0 }

// kernel: tile.19
= control target key start
LH: loop header
LB: loop body
LE: loop exit
PB: predicated region body
PF: predicated region fallthrough
CT: control target
= control target key end

     0   :  { %s37_s8 = smov 8   ;;  %s38_s9 = smov 16   ;;  %vm7_vm0 = vcmask 64512   ;;  %vm13_vm1 = vcmask 261312   ;;  %vm19_vm2 = vcmask 195712   ;;  %vm25_vm3 = vcmask 130112   ;;  %s55_s0 = inlined_call_operand.vmem [shape: f32[4,8], index: 0, kind: input, shape index: {}]   ;;  %s56_s1 = inlined_call_operand.vmem [shape: f32[32], index: 1, kind: output, shape index: {}]  }
   0x1   :  { %v4_v0 = vld [vmem:[%s55_s0] sm:$0xf]  ;;  %s36_s0 = smov 24  }
   0x2   :  { %5 = vst [vmem:[#allocation1] sm:$0xf] %v4_v0 }
   0x9   :  { %v10_v1 = vld [vmem:[#allocation1 + $0x3] sm:$0x1]   ;;  %v22_v2 = vld [vmem:[#allocation1 + $0x1] sm:$0x1]   ;;  %v16_v3 = vld [vmem:[#allocation1 + $0x2] sm:$0x1]  }
   0xa   :  { %11 = vrot.lane.b32.xlu0 %v10_v1, %s36_s0  ;;  %23 = vrot.lane.b32.xlu1 %v22_v2, %s37_s8  ;;  %v6_v4 = vld [vmem:[#allocation1] sm:$0x1]  }
   0xb   :  { %8 = vst.msk [vmem:[#allocation0] sm:$0x1] %vm7_vm0, %v6_v4  }
  0x12   :  { %17 = vrot.lane.b32.xlu0 %v16_v3, %s38_s9 }
  0x7c   :  { %v12_v5 = vpop.permute.xlu0 %11   ;;  %v24_v6 = vpop.permute.xlu1 %23  }
  0x7d   :  { %14 = vst.msk [vmem:[#allocation0] sm:$0x1] %vm13_vm1, %v12_v5  }
  0x84   :  { %v18_v7 = vpop.permute.xlu0 %17  }
  0x85   :  { %20 = vst.msk [vmem:[#allocation0] sm:$0x1] %vm19_vm2, %v18_v7  }
  0x86   :  { %26 = vst.msk [vmem:[#allocation0] sm:$0x1] %vm25_vm3, %v24_v6  }
  0x8d   :  { %v29_v8 = vld [vmem:[#allocation0] sm:$0x1] }
  0x8e   :  { %32 = vst [vmem:[%s56_s1] sm:$0x1] %v29_v8 }

// kernel: forward.15
= control target key start
LH: loop header
LB: loop body
LE: loop exit
PB: predicated region body
PF: predicated region fallthrough
CT: control target
= control target key end

     0   :  { %vm93_vm0 = vcmask 523264   ;;  %v378_v29 = vmov 0.0   ;;  %vm215_vm1 = vcmask 1041408   ;;  %s483_s1 = inlined_call_operand.vmem [shape: bf16[64,128], index: 1, kind: input, shape index: {}]   ;;  %s484_s0 = inlined_call_operand.vmem [shape: bf16[98,64], index: 0, kind: input, shape index: {}]   ;;  %s485_s2 = inlined_call_operand.vmem [shape: bf16[98,128], index: 2, kind: output, shape index: {0}]   ;;  %s486_s3 = inlined_call_operand.vmem [shape: f32[1,128], index: 3, kind: output, shape index: {1}]   ;;  %s487_s4 = inlined_call_operand.vmem [shape: f32[1,128], index: 4, kind: output, shape index: {2}]  }
   0x1   :  { %v329_v0 = vld [vmem:[%s483_s1 + $0x18] sm:$0xff]  ;;  %v328_v1 = vld [vmem:[%s483_s1 + $0x10] sm:$0xff]  ;;  %v327_v2 = vld [vmem:[%s483_s1 + $0x8] sm:$0xff]  ;;  %201 = vst [vmem:[%s486_s3] sm:$0x1] %v378_v29 }
   0x2   :  { %119 = vmatpush.bf16.msra.mxu0 %v329_v0  ;;  %365 = vmatpush.bf16.msra.mxu1 %v329_v0  ;;  %v326_v3 = vld [vmem:[%s483_s1] sm:$0xff]  ;;  %v322_v5 = vld [vmem:[%s484_s0 + $0x10] sm:$0xff]  ;;  %v325_v6 = vld [vmem:[%s484_s0 + $0x28] sm:$0xff]  ;;  %202 = vst [vmem:[%s487_s4] sm:$0x1] %v378_v29 }
   0x3   :  { %367 = vmatpush.bf16.msra.mxu3 %v329_v0  ;;  %366 = vmatpush.bf16.msra.mxu2 %v329_v0  ;;  %v320_v4 = vld [vmem:[%s484_s0] sm:$0xff]  ;;  %v27_v8 = vld [vmem:[%s484_s0 + $0x30] sm:$0x1]  ;;  %v321_v10 = vld [vmem:[%s484_s0 + $0x8] sm:$0xff] }
   0x4   :  { %v324_v7 = vld [vmem:[%s484_s0 + $0x20] sm:$0xff]  ;;  %v61_v9 = vunpack.c.l.b16 %v27_v8  ;;  %v323_v11 = vld [vmem:[%s484_s0 + $0x18] sm:$0xff] }
   0x6   :  { %120 = vmatpush.bf16.msra.mxu0 %v328_v1  ;;  %368 = vmatpush.bf16.msra.mxu1 %v328_v1  ;;  %v68_v12 = vpack.c.b16 %v61_v9, %v61_v9 }
   0x7   :  { %370 = vmatpush.bf16.msra.mxu3 %v328_v1  ;;  %369 = vmatpush.bf16.msra.mxu2 %v328_v1 }
   0xa   :  { %121 = vmatpush.bf16.msra.mxu0 %v327_v2  ;;  %371 = vmatpush.bf16.msra.mxu1 %v327_v2 }
   0xb   :  { %373 = vmatpush.bf16.msra.mxu3 %v327_v2  ;;  %372 = vmatpush.bf16.msra.mxu2 %v327_v2 }
   0xe   :  { %122 = vmatpush.bf16.msra.mxu0 %v326_v3  ;;  %374 = vmatpush.bf16.msra.mxu1 %v326_v3 }
   0xf   :  { %376 = vmatpush.bf16.msra.mxu3 %v326_v3  ;;  %375 = vmatpush.bf16.msra.mxu2 %v326_v3 }
  0x11   :  { %313 = vmatmul.msk.bf16.vlgmr.msra.gmra.mxu0 %vm93_vm0, %v320_v4  ;;  %315 = vmatmul.msk.bf16.vlgmr.msra.gmra.mxu1 %vm93_vm0, %v322_v5 }
  0x12   :  { %318 = vmatmul.msk.bf16.vlgmr.msra.gmra.mxu3 %vm93_vm0, %v325_v6  ;;  %317 = vmatmul.msk.bf16.vlgmr.msra.gmra.mxu2 %vm93_vm0, %v324_v7 }
  0x21   :  { %314 = vmatmul.msk.bf16.gmra.mxu0 %vm93_vm0, %v321_v10  ;;  %316 = vmatmul.msk.bf16.gmra.mxu1 %vm93_vm0, %v323_v11 }
  0x22   :  { %319 = vmatmul.msk.bf16.gmra.mxu3 %vm93_vm0, %v68_v12 }
  0x8e   :  { %v124_v13 = vpop.f32.mrf.mxu0  ;;  %v134_v14 = vpop.f32.mrf.mxu1 }
  0x8f   :  { %v162_v15 = vmax.f32 %v134_v14, 0.0  ;;  %v158_v20 = vmax.f32 %v124_v13, 0.0 }
  0x91   :  { %v227_v38 = vmul.f32 %v158_v20, %v158_v20  ;;  %v231_v56 = vmul.f32 %v162_v15, %v162_v15 }
  0x95   :  { %v149_v16 = vpop.f32.mrf.mxu3  ;;  %v144_v17 = vpop.f32.mrf.mxu2 }
  0x96   :  { %v126_v18 = vpop.f32.mrf.mxu0  ;;  %v136_v19 = vpop.f32.mrf.mxu1  ;;  %v168_v25 = vmax.f32 %v149_v16, 0.0  ;;  %v166_v26 = vmax.f32 %v144_v17, 0.0 }
  0x97   :  { %v159_v21 = vmax.f32 %v126_v18, 0.0  ;;  %v163_v22 = vmax.f32 %v136_v19, 0.0 }
  0x98   :  { %v235_v5 = vmul.f32 %v166_v26, %v166_v26  ;;  %v237_v12 = vmul.f32 %v168_v25, %v168_v25 }
  0x99   :  { %v333_v23 = vpack.c.bf16 %v159_v21, %v158_v20  ;;  %v343_v24 = vpack.c.bf16 %v163_v22, %v162_v15  ;;  %v228_v37 = vmul.f32 %v159_v21, %v159_v21  ;;  %v204_v40 = vadd.f32 %v159_v21, %v158_v20 }
  0x9a   :  { %v232_v59 = vmul.f32 %v163_v22, %v163_v22 }
  0x9b   :  { %334 = vst [vmem:[%s485_s2] sm:$0xff] %v333_v23   ;;  %v240_v43 = vadd.f32 %v228_v37, %v227_v38 }
  0x9c   :  { %361 = vst [vmem:[%s485_s2 + $0x10] sm:$0xff] %v343_v24  }
  0x9d   :  { %v151_v27 = vpop.f32.mrf.mxu3  ;;  %v146_v28 = vpop.f32.mrf.mxu2 }
  0x9e   :  { %v129_v30 = vpop.f32.mrf.mxu0  ;;  %v139_v31 = vpop.f32.mrf.mxu1  ;;  %v169_v32 = vmax.f32 %v151_v27, 0.0  ;;  %v167_v33 = vmax.f32 %v146_v28, 0.0 }
  0x9f   :  { %v160_v34 = vmax.f32 %v129_v30, 0.0  ;;  %v164_v41 = vmax.f32 %v139_v31, 0.0 }
  0xa0   :  { %v358_v35 = vpack.c.bf16 %v169_v32, %v168_v25  ;;  %v353_v36 = vpack.c.bf16 %v167_v33, %v166_v26  ;;  %v236_v9 = vmul.f32 %v167_v33, %v167_v33  ;;  %v238_v16 = vmul.f32 %v169_v32, %v169_v32 }
  0xa1   :  { %v229_v39 = vmul.f32 %v160_v34, %v160_v34  ;;  %v205_v47 = vadd.f32 %v204_v40, %v160_v34  ;;  %v233_v63 = vmul.f32 %v164_v41, %v164_v41 }
  0xa2   :  { %364 = vst [vmem:[%s485_s2 + $0x28] sm:$0xff] %v358_v35  }
  0xa3   :  { %363 = vst [vmem:[%s485_s2 + $0x20] sm:$0xff] %v353_v36   ;;  %v241_v50 = vadd.f32 %v240_v43, %v229_v39 }
  0xa5   :  { %v154_v42 = vpop.f32.mrf.mxu3 }
  0xa6   :  { %v131_v44 = vpop.f32.mrf.mxu0  ;;  %v141_v45 = vpop.f32.mrf.mxu1  ;;  %v170_v46 = vmax.f32 %v154_v42, 0.0 }
  0xa7   :  { %v161_v48 = vmax.f32 %v131_v44, 0.0  ;;  %v165_v49 = vmax.f32 %v141_v45, 0.0 }
  0xa8   :  { %v183_v51 = vpack.c.bf16 %v170_v46, %v170_v46  ;;  %v239_v11 = vmul.f32 %v170_v46, %v170_v46 }
  0xa9   :  { %v338_v52 = vpack.c.bf16 %v161_v48, %v160_v34  ;;  %v206_v53 = vadd.f32 %v205_v47, %v161_v48  ;;  %v230_v54 = vmul.f32 %v161_v48, %v161_v48  ;;  %v348_v55 = vpack.c.bf16 %v165_v49, %v164_v41 }
  0xaa   :  { %196 = vst [vmem:[%s485_s2 + $0x30] sm:$0x1] %v183_v51  ;;  %v234_v3 = vmul.f32 %v165_v49, %v165_v49  ;;  %v251_v19 = vsel %vm215_vm1, %v239_v11, 0.0 }
  0xab   :  { %360 = vst [vmem:[%s485_s2 + $0x8] sm:$0xff] %v338_v52   ;;  %v207_v57 = vadd.f32 %v206_v53, %v162_v15  ;;  %v242_v58 = vadd.f32 %v241_v50, %v230_v54  ;;  %v216_v15 = vsel %vm215_vm1, %v170_v46, 0.0 }
  0xac   :  { %362 = vst [vmem:[%s485_s2 + $0x18] sm:$0xff] %v348_v55  }
  0xad   :  { %v243_v60 = vadd.f32 %v242_v58, %v231_v56  ;;  %v208_v61 = vadd.f32 %v207_v57, %v163_v22  ;;  %v156_v62 = vpop.f32.mrf.mxu3 }
  0xaf   :  { %v209_v0 = vadd.f32 %v208_v61, %v164_v41  ;;  %v244_v1 = vadd.f32 %v243_v60, %v232_v59 }
  0xb1   :  { %v210_v2 = vadd.f32 %v209_v0, %v165_v49  ;;  %v245_v4 = vadd.f32 %v244_v1, %v233_v63 }
  0xb3   :  { %v246_v6 = vadd.f32 %v245_v4, %v234_v3  ;;  %v211_v7 = vadd.f32 %v210_v2, %v166_v26 }
  0xb5   :  { %v212_v8 = vadd.f32 %v211_v7, %v167_v33  ;;  %v247_v10 = vadd.f32 %v246_v6, %v235_v5 }
  0xb7   :  { %v213_v13 = vadd.f32 %v212_v8, %v168_v25  ;;  %v248_v14 = vadd.f32 %v247_v10, %v236_v9  ;;  %v203_v25 = vld [vmem:[%s486_s3] sm:$0x1] }
  0xb9   :  { %v249_v17 = vadd.f32 %v248_v14, %v237_v12  ;;  %v214_v18 = vadd.f32 %v213_v13, %v169_v32  ;;  %v226_v32 = vld [vmem:[%s487_s4] sm:$0x1] }
  0xbb   :  { %v217_v20 = vadd.f32 %v216_v15, %v214_v18  ;;  %v250_v21 = vadd.f32 %v249_v17, %v238_v16 }
  0xbd   :  { %v218_v22 = vrot.slane %v217_v20, 4  ;;  %v252_v23 = vadd.f32 %v251_v19, %v250_v21 }
  0xbf   :  { %v219_v24 = vadd.f32 %v218_v22, %v217_v20  ;;  %v253_v27 = vrot.slane %v252_v23, 4 }
  0xc1   :  { %v220_v26 = vrot.slane %v219_v24, 2  ;;  %v254_v28 = vadd.f32 %v253_v27, %v252_v23 }
  0xc3   :  { %v221_v29 = vadd.f32 %v220_v26, %v219_v24  ;;  %v255_v30 = vrot.slane %v254_v28, 2 }
  0xc5   :  { %v222_v31 = vrot.slane %v221_v29, 1  ;;  %v256_v33 = vadd.f32 %v255_v30, %v254_v28 }
  0xc7   :  { %v223_v34 = vadd.f32 %v222_v31, %v221_v29  ;;  %v257_v35 = vrot.slane %v256_v33, 1 }
  0xc9   :  { %v224_v36 = vadd.f32 %v223_v34, %v203_v25  ;;  %v258_v37 = vadd.f32 %v257_v35, %v256_v33 }
  0xcb   :  { %225 = vst [vmem:[%s486_s3] sm:$0x1] %v224_v36  ;;  %v259_v38 = vadd.f32 %v258_v37, %v226_v32 }
  0xcd   :  { %260 = vst [vmem:[%s487_s4] sm:$0x1] %v259_v38 }

// kernel: forward.16
= control target key start
LH: loop header
LB: loop body
LE: loop exit
PB: predicated region body
PF: predicated region fallthrough
CT: control target
= control target key end

     0   :  { %s238_s0 = inlined_call_operand.vmem [shape: bf16[98,128], index: 0, kind: input, shape index: {}]   ;;  %s239_s1 = inlined_call_operand.vmem [shape: f32[1,128], index: 1, kind: input, shape index: {}]   ;;  %s240_s2 = inlined_call_operand.vmem [shape: f32[1,128], index: 2, kind: input, shape index: {}]   ;;  %s241_s3 = inlined_call_operand.vmem [shape: bf16[98,128], index: 3, kind: output, shape index: {}]  }
   0x1   :  { %v105_v0 = vld [vmem:[%s238_s0] sm:$0xff]   ;;  %v158_v5 = vld [vmem:[%s238_s0 + $0x8] sm:$0xff]   ;;  %v159_v8 = vld [vmem:[%s238_s0 + $0x10] sm:$0xff]  }
   0x2   :  { %v168_v1 = vld [vmem:[%s239_s1] ss:$0 sm:$0xff]  ;;  %v106_v2 = vunpack.c.l.bf16 %v105_v0  ;;  %v107_v3 = vunpack.c.h.bf16 %v105_v0  ;;  %v110_v6 = vunpack.c.l.bf16 %v158_v5  ;;  %v111_v7 = vunpack.c.h.bf16 %v158_v5  ;;  %v160_v9 = vld [vmem:[%s238_s0 + $0x18] sm:$0xff]   ;;  %v162_v27 = vld [vmem:[%s238_s0 + $0x28] sm:$0xff]  }
   0x3   :  { %v169_v4 = vld [vmem:[%s240_s2] ss:$0 sm:$0xff]  ;;  %v114_v12 = vunpack.c.l.bf16 %v159_v8  ;;  %v115_v13 = vunpack.c.h.bf16 %v159_v8  ;;  %v118_v16 = vunpack.c.l.bf16 %v160_v9  ;;  %v119_v17 = vunpack.c.h.bf16 %v160_v9  ;;  %v26_v32 = vld [vmem:[%s238_s0 + $0x30] sm:$0x1] }
   0x4   :  { %v44_v10 = vmul.f32 %v168_v1, %v106_v2  ;;  %v45_v11 = vmul.f32 %v168_v1, %v107_v3  ;;  %v46_v14 = vmul.f32 %v168_v1, %v110_v6  ;;  %v47_v15 = vmul.f32 %v168_v1, %v111_v7  ;;  %v161_v18 = vld [vmem:[%s238_s0 + $0x20] sm:$0xff]  }
   0x5   :  { %v48_v21 = vmul.f32 %v168_v1, %v114_v12  ;;  %v49_v22 = vmul.f32 %v168_v1, %v115_v13  ;;  %v50_v25 = vmul.f32 %v168_v1, %v118_v16  ;;  %v51_v26 = vmul.f32 %v168_v1, %v119_v17 }
   0x6   :  { %v61_v19 = vadd.f32 %v169_v4, %v44_v10  ;;  %v62_v20 = vadd.f32 %v169_v4, %v45_v11  ;;  %v63_v23 = vadd.f32 %v169_v4, %v46_v14  ;;  %v64_v24 = vadd.f32 %v169_v4, %v47_v15 }
   0x7   :  { %v65_v29 = vadd.f32 %v169_v4, %v48_v21  ;;  %v66_v30 = vadd.f32 %v169_v4, %v49_v22  ;;  %v122_v31 = vunpack.c.l.bf16 %v161_v18  ;;  %v67_v34 = vadd.f32 %v169_v4, %v50_v25 }
   0x8   :  { %v131_v28 = vpack.c.bf16 %v62_v20, %v61_v19  ;;  %v136_v33 = vpack.c.bf16 %v64_v24, %v63_v23  ;;  %v68_v35 = vadd.f32 %v169_v4, %v51_v26  ;;  %v123_v36 = vunpack.c.h.bf16 %v161_v18 }
   0x9   :  { %v141_v37 = vpack.c.bf16 %v66_v30, %v65_v29  ;;  %v52_v38 = vmul.f32 %v168_v1, %v122_v31  ;;  %v126_v39 = vunpack.c.l.bf16 %v162_v27  ;;  %v127_v40 = vunpack.c.h.bf16 %v162_v27 }
   0xa   :  { %132 = vst [vmem:[%s241_s3] sm:$0xff] %v131_v28   ;;  %v146_v41 = vpack.c.bf16 %v68_v35, %v67_v34  ;;  %v53_v42 = vmul.f32 %v168_v1, %v123_v36  ;;  %v39_v43 = vunpack.c.l.bf16 %v26_v32 }
   0xb   :  { %163 = vst [vmem:[%s241_s3 + $0x8] sm:$0xff] %v136_v33   ;;  %v69_v44 = vadd.f32 %v169_v4, %v52_v38  ;;  %v54_v45 = vmul.f32 %v168_v1, %v126_v39  ;;  %v55_v46 = vmul.f32 %v168_v1, %v127_v40 }
   0xc   :  { %164 = vst [vmem:[%s241_s3 + $0x10] sm:$0xff] %v141_v37   ;;  %v70_v47 = vadd.f32 %v169_v4, %v53_v42  ;;  %v56_v48 = vmul.f32 %v168_v1, %v39_v43 }
   0xd   :  { %165 = vst [vmem:[%s241_s3 + $0x18] sm:$0xff] %v146_v41   ;;  %v71_v49 = vadd.f32 %v169_v4, %v54_v45  ;;  %v72_v50 = vadd.f32 %v169_v4, %v55_v46 }
   0xe   :  { %v151_v51 = vpack.c.bf16 %v70_v47, %v69_v44  ;;  %v73_v52 = vadd.f32 %v169_v4, %v56_v48 }
   0xf   :  { %v156_v53 = vpack.c.bf16 %v72_v50, %v71_v49 }
  0x10   :  { %166 = vst [vmem:[%s241_s3 + $0x20] sm:$0xff] %v151_v51   ;;  %v86_v54 = vpack.c.bf16 %v73_v52, %v73_v52 }
  0x11   :  { %167 = vst [vmem:[%s241_s3 + $0x28] sm:$0xff] %v156_v53  }
  0x12   :  { %99 = vst [vmem:[%s241_s3 + $0x30] sm:$0x1] %v86_v54 }

// kernel: forward.17
= control target key start
LH: loop header
LB: loop body
LE: loop exit
PB: predicated region body
PF: predicated region fallthrough
CT: control target
= control target key end

     0   :  { %vm228_vm0 = vcmask 261120   ;;  %s3772_s1 = inlined_call_operand.vmem [shape: bf16[32,128], index: 1, kind: input, shape index: {}]   ;;  %s3773_s0 = inlined_call_operand.vmem [shape: bf16[450,32], index: 0, kind: input, shape index: {}]   ;;  %s3774_s2 = inlined_call_operand.vmem [shape: bf16[450,128], index: 2, kind: output, shape index: {}]  }
   0x1   :  { %v1905_v0 = vld [vmem:[%s3772_s1 + $0x8] sm:$0xff]  ;;  %v1904_v1 = vld [vmem:[%s3772_s1] sm:$0xff]  ;;  %v1883_v2 = vld [vmem:[%s3773_s0 + $0x38] sm:$0xff] }
   0x2   :  { %2073 = vmatpush.bf16.msra.mxu1 %v1905_v0  ;;  %2074 = vmatpush.bf16.msra.mxu2 %v1905_v0  ;;  %v1891_v3 = vld [vmem:[%s3773_s0 + $0x78] sm:$0xff]  ;;  %v1876_v4 = vld [vmem:[%s3773_s0] sm:$0xff]  ;;  %v1877_v8 = vld [vmem:[%s3773_s0 + $0x8] sm:$0xff] }
   0x3   :  { %322 = vmatpush.bf16.msra.mxu0 %v1905_v0  ;;  %2075 = vmatpush.bf16.msra.mxu3 %v1905_v0  ;;  %v1899_v5 = vld [vmem:[%s3773_s0 + $0xb8] sm:$0xff]  ;;  %v1884_v6 = vld [vmem:[%s3773_s0 + $0x40] sm:$0xff]  ;;  %v1885_v10 = vld [vmem:[%s3773_s0 + $0x48] sm:$0xff] }
   0x4   :  { %v1892_v7 = vld [vmem:[%s3773_s0 + $0x80] sm:$0xff]  ;;  %v1893_v11 = vld [vmem:[%s3773_s0 + $0x88] sm:$0xff]  ;;  %v1878_v12 = vld [vmem:[%s3773_s0 + $0x10] sm:$0xff] }
   0x5   :  { %v1900_v9 = vld [vmem:[%s3773_s0 + $0xc0] sm:$0xff]  ;;  %v1901_v13 = vld [vmem:[%s3773_s0 + $0xc8] sm:$0xff]  ;;  %v1886_v14 = vld [vmem:[%s3773_s0 + $0x50] sm:$0xff] }
   0x6   :  { %2076 = vmatpush.bf16.msra.mxu1 %v1904_v1  ;;  %2077 = vmatpush.bf16.msra.mxu2 %v1904_v1  ;;  %v1894_v15 = vld [vmem:[%s3773_s0 + $0x90] sm:$0xff]  ;;  %v1879_v16 = vld [vmem:[%s3773_s0 + $0x18] sm:$0xff]  ;;  %v1880_v20 = vld [vmem:[%s3773_s0 + $0x20] sm:$0xff] }
   0x7   :  { %323 = vmatpush.bf16.msra.mxu0 %v1904_v1  ;;  %2078 = vmatpush.bf16.msra.mxu3 %v1904_v1  ;;  %v1902_v17 = vld [vmem:[%s3773_s0 + $0xd0] sm:$0xff]  ;;  %v1887_v18 = vld [vmem:[%s3773_s0 + $0x58] sm:$0xff]  ;;  %v68_v22 = vld [vmem:[%s3773_s0 + $0xe0] sm:$0x1] }
   0x8   :  { %v1895_v19 = vld [vmem:[%s3773_s0 + $0x98] sm:$0xff]  ;;  %v186_v23 = vunpack.c.l.b16 %v68_v22  ;;  %v1888_v24 = vld [vmem:[%s3773_s0 + $0x60] sm:$0xff]  ;;  %v1881_v26 = vld [vmem:[%s3773_s0 + $0x28] sm:$0xff] }
   0x9   :  { %1797 = vmatmul.msk.bf16.vlgmr.msra.gmra.mxu1 %vm228_vm0, %v1883_v2  ;;  %1805 = vmatmul.msk.bf16.vlgmr.msra.gmra.mxu2 %vm228_vm0, %v1891_v3  ;;  %v1903_v21 = vld [vmem:[%s3773_s0 + $0xd8] sm:$0xff]  ;;  %v1896_v25 = vld [vmem:[%s3773_s0 + $0xa0] sm:$0xff]  ;;  %v1889_v28 = vld [vmem:[%s3773_s0 + $0x68] sm:$0xff] }
   0xa   :  { %1790 = vmatmul.msk.bf16.vlgmr.msra.gmra.mxu0 %vm228_vm0, %v1876_v4  ;;  %1813 = vmatmul.msk.bf16.vlgmr.msra.gmra.mxu3 %vm228_vm0, %v1899_v5  ;;  %v215_v27 = vpack.c.b16 %v186_v23, %v186_v23  ;;  %v1897_v29 = vld [vmem:[%s3773_s0 + $0xa8] sm:$0xff]  ;;  %v1882_v30 = vld [vmem:[%s3773_s0 + $0x30] sm:$0xff] }
   0xb   :  { %v1890_v31 = vld [vmem:[%s3773_s0 + $0x70] sm:$0xff] }
   0xc   :  { %v1898_v32 = vld [vmem:[%s3773_s0 + $0xb0] sm:$0xff] }
  0x19   :  { %1798 = vmatmul.msk.bf16.gmra.mxu1 %vm228_vm0, %v1884_v6  ;;  %1806 = vmatmul.msk.bf16.gmra.mxu2 %vm228_vm0, %v1892_v7 }
  0x1a   :  { %1791 = vmatmul.msk.bf16.gmra.mxu0 %vm228_vm0, %v1877_v8  ;;  %1814 = vmatmul.msk.bf16.gmra.mxu3 %vm228_vm0, %v1900_v9 }
  0x29   :  { %1799 = vmatmul.msk.bf16.gmra.mxu1 %vm228_vm0, %v1885_v10  ;;  %1807 = vmatmul.msk.bf16.gmra.mxu2 %vm228_vm0, %v1893_v11 }
  0x2a   :  { %1792 = vmatmul.msk.bf16.gmra.mxu0 %vm228_vm0, %v1878_v12  ;;  %1815 = vmatmul.msk.bf16.gmra.mxu3 %vm228_vm0, %v1901_v13 }
  0x39   :  { %1800 = vmatmul.msk.bf16.gmra.mxu1 %vm228_vm0, %v1886_v14  ;;  %1808 = vmatmul.msk.bf16.gmra.mxu2 %vm228_vm0, %v1894_v15 }
  0x3a   :  { %1793 = vmatmul.msk.bf16.gmra.mxu0 %vm228_vm0, %v1879_v16  ;;  %1816 = vmatmul.msk.bf16.gmra.mxu3 %vm228_vm0, %v1902_v17 }
  0x49   :  { %1801 = vmatmul.msk.bf16.gmra.mxu1 %vm228_vm0, %v1887_v18  ;;  %1809 = vmatmul.msk.bf16.gmra.mxu2 %vm228_vm0, %v1895_v19 }
  0x4a   :  { %1794 = vmatmul.msk.bf16.gmra.mxu0 %vm228_vm0, %v1880_v20  ;;  %1817 = vmatmul.msk.bf16.gmra.mxu3 %vm228_vm0, %v1903_v21 }
  0x59   :  { %1802 = vmatmul.msk.bf16.gmra.mxu1 %vm228_vm0, %v1888_v24  ;;  %1810 = vmatmul.msk.bf16.gmra.mxu2 %vm228_vm0, %v1896_v25 }
  0x5a   :  { %1795 = vmatmul.msk.bf16.gmra.mxu0 %vm228_vm0, %v1881_v26  ;;  %1818 = vmatmul.msk.bf16.gmra.mxu3 %vm228_vm0, %v215_v27 }
  0x69   :  { %1803 = vmatmul.msk.bf16.gmra.mxu1 %vm228_vm0, %v1889_v28  ;;  %1811 = vmatmul.msk.bf16.gmra.mxu2 %vm228_vm0, %v1897_v29 }
  0x6a   :  { %1796 = vmatmul.msk.bf16.gmra.mxu0 %vm228_vm0, %v1882_v30 }
  0x79   :  { %1804 = vmatmul.msk.bf16.gmra.mxu1 %vm228_vm0, %v1890_v31  ;;  %1812 = vmatmul.msk.bf16.gmra.mxu2 %vm228_vm0, %v1898_v32 }
  0x86   :  { %v360_v33 = vpop.f32.mrf.mxu1 }
  0x87   :  { %v1833_v34 = vmul.f32 -1.442695, %v360_v33  ;;  %v325_v35 = vpop.f32.mrf.mxu0 }
  0x88   :  { %v1819_v36 = vmul.f32 -1.442695, %v325_v35 }
  0x89   :  { %2079 = vpow2.f32 %v1833_v34 }
  0x8a   :  { %2081 = vpow2.f32 %v1819_v36 }
  0x8c   :  { %v400_v37 = vpop.f32.mrf.mxu2 }
  0x8d   :  { %v1849_v38 = vmul.f32 -1.442695, %v400_v37  ;;  %v440_v9 = vpop.f32.mrf.mxu3 }
  0x8e   :  { %v362_v39 = vpop.f32.mrf.mxu1  ;;  %v1865_v14 = vmul.f32 -1.442695, %v440_v9 }
  0x8f   :  { %v2080_v40 = vpop.eup %2079  ;;  %2083 = vpow2.f32 %v1849_v38  ;;  %v1834_v41 = vmul.f32 -1.442695, %v362_v39  ;;  %v327_v42 = vpop.f32.mrf.mxu0 }
  0x90   :  { %v2082_v43 = vpop.eup %2081  ;;  %v2444_v44 = vadd.f32 1.0, %v2080_v40  ;;  %v1820_v45 = vmul.f32 -1.442695, %v327_v42 }
  0x91   :  { %v2446_v46 = vadd.f32 1.0, %v2082_v43  ;;  %2085 = vpow2.f32 %v1834_v41 }
  0x92   :  { %2087 = vrcp.f32 %v2444_v44  ;;  %v918_v59 = vand.u32 2147483648, %v2444_v44  ;;  %v916_v63 = vand.u32 2147483647, %v2444_v44  ;;  %vm912_vm1 = vweird.f32 %v2444_v44 }
  0x93   :  { %2089 = vrcp.f32 %v2446_v46  ;;  %v708_v62 = vand.u32 2147483648, %v2446_v46  ;;  %v706_v1 = vand.u32 2147483647, %v2446_v46  ;;  %vm702_vm2 = vweird.f32 %v2446_v46 }
  0x94   :  { %2091 = vpow2.f32 %v1820_v45  ;;  %v402_v47 = vpop.f32.mrf.mxu2  ;;  %v919_v8 = vor.u32 1.1754944e-38, %v918_v59  ;;  %vm2480_vm3 = vcmp.eq.f32.partialorder %v916_v63, 8.507059e+37 }
  0x95   :  { %v2084_v48 = vpop.eup %2083  ;;  %v1850_v49 = vmul.f32 -1.442695, %v402_v47  ;;  %v2477_v12 = vor.u32 1.1754944e-38, %v708_v62  ;;  %vm2484_vm4 = vcmp.eq.f32.partialorder %v706_v1, 8.507059e+37 }
  0x96   :  { %v2450_v50 = vadd.f32 1.0, %v2084_v48  ;;  %v365_v51 = vpop.f32.mrf.mxu1 }
  0x97   :  { %v2086_v52 = vpop.eup %2085  ;;  %2093 = vpow2.f32 %v1850_v49  ;;  %v1835_v53 = vmul.f32 -1.442695, %v365_v51  ;;  %v330_v3 = vpop.f32.mrf.mxu0 }
  0x98   :  { %v2452_v54 = vpop.eup %2087  ;;  %2095 = vrcp.f32 %v2450_v50  ;;  %v2459_v57 = vadd.f32 1.0, %v2086_v52  ;;  %v1821_v5 = vmul.f32 -1.442695, %v330_v3  ;;  %v1156_v18 = vand.u32 2147483647, %v2450_v50  ;;  %v442_v52 = vpop.f32.mrf.mxu3 }
  0x99   :  { %v2455_v55 = vpop.eup %2089  ;;  %v908_v56 = vmul.f32 %v2452_v54, %v2444_v44  ;;  %2097 = vpow2.f32 %v1835_v53  ;;  %v1158_v23 = vand.u32 2147483648, %v2450_v50  ;;  %vm913_vm6 = vweird.f32 %v2452_v54 }
  0x9a   :  { %v2092_v58 = vpop.eup %2091  ;;  %v698_v60 = vmul.f32 %v2455_v55, %v2446_v46  ;;  %2099 = vrcp.f32 %v2459_v57  ;;  %v931_v13 = vand.u32 2147483647, %v2459_v57  ;;  %v933_v19 = vand.u32 2147483648, %v2459_v57  ;;  %vm2516_vm10 = vmor %vm912_vm1, %vm913_vm6 }
  0x9b   :  { %v909_v61 = vsub.f32 1.0, %v908_v56  ;;  %v2468_v2 = vadd.f32 1.0, %v2092_v58  ;;  %vm703_vm5 = vweird.f32 %v2455_v55  ;;  %vm927_vm7 = vweird.f32 %v2459_v57 }
  0x9c   :  { %v699_v0 = vsub.f32 1.0, %v698_v60  ;;  %v405_v21 = vpop.f32.mrf.mxu2  ;;  %vm2503_vm8 = vcmp.eq.f32.partialorder %v931_v13, 8.507059e+37  ;;  %vm2510_vm9 = vmor %vm702_vm2, %vm703_vm5  ;;  %v934_v34 = vor.u32 1.1754944e-38, %v933_v19  ;;  %vm1152_vm12 = vweird.f32 %v2450_v50 }
  0x9d   :  { %v2094_v4 = vpop.eup %2093  ;;  %v910_v7 = vmul.f32 %v2452_v54, %v909_v61  ;;  %2101 = vrcp.f32 %v2468_v2  ;;  %v1851_v29 = vmul.f32 -1.442695, %v405_v21  ;;  %vm717_vm11 = vweird.f32 %v2468_v2 }
  0x9e   :  { %v2471_v6 = vpop.eup %2095  ;;  %v700_v11 = vmul.f32 %v2455_v55, %v699_v0  ;;  %v2492_v20 = vadd.f32 1.0, %v2094_v4  ;;  %2103 = vpow2.f32 %v1821_v5  ;;  %v721_v37 = vand.u32 2147483647, %v2468_v2  ;;  %v367_v41 = vpop.f32.mrf.mxu1 }
  0x9f   :  { %v2098_v10 = vpop.eup %2097  ;;  %v1148_v17 = vmul.f32 %v2471_v6, %v2450_v50  ;;  %v911_v25 = vadd.f32 %v2452_v54, %v910_v7  ;;  %v723_v40 = vand.u32 2147483648, %v2468_v2  ;;  %vm1153_vm14 = vweird.f32 %v2471_v6  ;;  %v332_v0 = vpop.f32.mrf.mxu0 }
  0xa0   :  { %v2100_v22 = vpop.eup %2099  ;;  %v2496_v24 = vadd.f32 1.0, %v2098_v10  ;;  %v701_v27 = vadd.f32 %v2455_v55, %v700_v11  ;;  %2105 = vrcp.f32 %v2492_v20  ;;  %vm2540_vm1 = vcmp.eq.f32.partialorder %v721_v37, 8.507059e+37 }
  0xa1   :  { %v923_v26 = vmul.f32 %v2100_v22, %v2459_v57  ;;  %v1149_v32 = vsub.f32 1.0, %v1148_v17  ;;  %2107 = vpow2.f32 %v1865_v14  ;;  %v915_v38 = vsel %vm2516_vm10, %v2452_v54, %v911_v25 }
  0xa2   :  { %2109 = vrcp.f32 %v2496_v24  ;;  %vm928_vm13 = vweird.f32 %v2100_v22  ;;  %v705_v43 = vsel %vm2510_vm9, %v2455_v55, %v701_v27  ;;  %v920_v49 = vsel %vm2480_vm3, %v919_v8, %v915_v38 }
  0xa3   :  { %v2102_v30 = vpop.eup %2101  ;;  %v924_v33 = vsub.f32 1.0, %v923_v26  ;;  %v1150_v45 = vmul.f32 %v2471_v6, %v1149_v32  ;;  %2111 = vpow2.f32 %v1851_v29  ;;  %vm929_vm0 = vmor %vm927_vm7, %vm928_vm13  ;;  %v1836_v53 = vmul.f32 -1.442695, %v367_v41 }
  0xa4   :  { %v713_v36 = vmul.f32 %v2102_v30, %v2468_v2  ;;  %v2104_v42 = vpop.eup %2103  ;;  %vm718_vm15 = vweird.f32 %v2102_v30  ;;  %v724_v58 = vor.u32 1.1754944e-38, %v723_v40  ;;  %v710_v60 = vsel %vm2484_vm4, %v2477_v12, %v705_v43  ;;  %vm2575_vm4 = vmor %vm1152_vm12, %vm1153_vm14  ;;  %v407_v19 = vpop.f32.mrf.mxu2 }
  0xa5   :  { %v925_v39 = vmul.f32 %v2100_v22, %v924_v33  ;;  %v2534_v47 = vadd.f32 1.0, %v2104_v42  ;;  %vm2546_vm2 = vmor %vm717_vm11, %vm718_vm15  ;;  %v1171_v63 = vand.u32 2147483647, %v2492_v20  ;;  %v1151_v1 = vadd.f32 %v2471_v6, %v1150_v45 }
  0xa6   :  { %v714_v44 = vsub.f32 1.0, %v713_v36  ;;  %v2106_v48 = vpop.eup %2105  ;;  %v1173_v7 = vand.u32 2147483648, %v2492_v20  ;;  %v1822_v12 = vmul.f32 -1.442695, %v332_v0  ;;  %vm2581_vm5 = vcmp.eq.f32.partialorder %v1156_v18, 8.507059e+37  ;;  %v370_v36 = vpop.f32.mrf.mxu1 }
  0xa7   :  { %v926_v46 = vadd.f32 %v2100_v22, %v925_v39  ;;  %v2108_v54 = vpop.eup %2107  ;;  %v1163_v59 = vmul.f32 %v2106_v48, %v2492_v20  ;;  %2113 = vrcp.f32 %v2534_v47  ;;  %vm1168_vm3 = vweird.f32 %v2106_v48 }
  0xa8   :  { %v715_v51 = vmul.f32 %v2102_v30, %v714_v44  ;;  %v2552_v57 = vpop.eup %2109  ;;  %2115 = vpow2.f32 %v1836_v53  ;;  %v2587_v17 = vadd.f32 1.0, %v2108_v54  ;;  %vm1167_vm6 = vweird.f32 %v2492_v20 }
  0xa9   :  { %v930_v55 = vsel %vm929_vm0, %v2100_v22, %v926_v46  ;;  %v1164_v3 = vsub.f32 1.0, %v1163_v59  ;;  %v938_v4 = vmul.f32 %v2552_v57, %v2496_v24  ;;  %v2112_v8 = vpop.eup %2111  ;;  %v1155_v22 = vsel %vm2575_vm4, %v2471_v6, %v1151_v1  ;;  %vm1169_vm7 = vmor %vm1167_vm6, %vm1168_vm3 }
  0xaa   :  { %v935_v61 = vsel %vm2503_vm8, %v934_v34, %v930_v55  ;;  %v716_v62 = vadd.f32 %v2102_v30, %v715_v51  ;;  %v2585_v16 = vadd.f32 1.0, %v2112_v8  ;;  %2117 = vpow2.f32 %v1822_v12  ;;  %v335_v51 = vpop.f32.mrf.mxu0 }
  0xab   :  { %v1944_v2 = vpack.c.bf16 %v935_v61, %v920_v49  ;;  %v1165_v10 = vmul.f32 %v2106_v48, %v1164_v3  ;;  %v939_v11 = vsub.f32 1.0, %v938_v4  ;;  %v1159_v18 = vor.u32 1.1754944e-38, %v1158_v23 }
  0xac   :  { %v720_v5 = vsel %vm2546_vm2, %v2102_v30, %v716_v62  ;;  %v1174_v26 = vor.u32 1.1754944e-38, %v1173_v7  ;;  %2119 = vrcp.f32 %v2585_v16  ;;  %vm1172_vm8 = vcmp.eq.f32.partialorder %v1171_v63, 8.507059e+37 }
  0xad   :  { %2052 = vst [vmem:[%s3774_s2 + $0x38] sm:$0xff] %v1944_v2   ;;  %v725_v9 = vsel %vm2540_vm1, %v724_v58, %v720_v5  ;;  %v2589_v21 = vpop.eup %2113  ;;  %v1166_v25 = vadd.f32 %v2106_v48, %v1165_v10  ;;  %v940_v20 = vmul.f32 %v2552_v57, %v939_v11  ;;  %v1852_v28 = vmul.f32 -1.442695, %v407_v19  ;;  %v410_v10 = vpop.f32.mrf.mxu2 }
  0xae   :  { %v1909_v15 = vpack.c.bf16 %v725_v9, %v710_v60  ;;  %v728_v27 = vmul.f32 %v2589_v21, %v2534_v47  ;;  %v2116_v29 = vpop.eup %2115  ;;  %v1160_v50 = vsel %vm2581_vm5, %v1159_v18, %v1155_v22  ;;  %2121 = vrcp.f32 %v2587_v17 }
  0xaf   :  { %v1170_v6 = vsel %vm1169_vm7, %v2106_v48, %v1166_v25  ;;  %vm942_vm9 = vweird.f32 %v2496_v24  ;;  %v946_v32 = vand.u32 2147483647, %v2496_v24  ;;  %v948_v33 = vand.u32 2147483648, %v2496_v24 }
  0xb0   :  { %1910 = vst [vmem:[%s3774_s2] sm:$0xff] %v1909_v15   ;;  %v1175_v23 = vsel %vm1172_vm8, %v1174_v26, %v1170_v6  ;;  %v729_v30 = vsub.f32 1.0, %v728_v27  ;;  %v2612_v35 = vadd.f32 1.0, %v2116_v29  ;;  %v2118_v37 = vpop.eup %2117  ;;  %v941_v38 = vadd.f32 %v2552_v57, %v940_v20 }
  0xb1   :  { %v1984_v31 = vpack.c.bf16 %v1175_v23, %v1160_v50  ;;  %vm943_vm10 = vweird.f32 %v2552_v57  ;;  %vm732_vm11 = vweird.f32 %v2534_v47  ;;  %2123 = vpow2.f32 %v1852_v28 }
  0xb2   :  { %v730_v34 = vmul.f32 %v2589_v21, %v729_v30  ;;  %v2620_v39 = vpop.eup %2119  ;;  %vm733_vm12 = vweird.f32 %v2589_v21  ;;  %v736_v40 = vand.u32 2147483647, %v2534_v47  ;;  %v738_v41 = vand.u32 2147483648, %v2534_v47  ;;  %vm2632_vm13 = vmor %vm942_vm9, %vm943_vm10 }
  0xb3   :  { %2060 = vst [vmem:[%s3774_s2 + $0x78] sm:$0xff] %v1984_v31   ;;  %2125 = vrcp.f32 %v2612_v35  ;;  %v2626_v42 = vadd.f32 1.0, %v2118_v37  ;;  %v1837_v43 = vmul.f32 -1.442695, %v370_v36  ;;  %vm2636_vm14 = vcmp.eq.f32.partialorder %v946_v32, 8.507059e+37  ;;  %vm2646_vm15 = vmor %vm732_vm11, %vm733_vm12 }
  0xb4   :  { %v2628_v44 = vpop.eup %2121  ;;  %v949_v48 = vor.u32 1.1754944e-38, %v948_v33  ;;  %v731_v49 = vadd.f32 %v2589_v21, %v730_v34  ;;  %v945_v53 = vsel %vm2632_vm13, %v2552_v57, %v941_v38  ;;  %v1178_v54 = vmul.f32 %v2620_v39, %v2585_v16 }
  0xb5   :  { %2127 = vrcp.f32 %v2626_v42  ;;  %v1823_v55 = vmul.f32 -1.442695, %v335_v51  ;;  %vm2653_vm0 = vcmp.eq.f32.partialorder %v736_v40, 8.507059e+37  ;;  %v739_v58 = vor.u32 1.1754944e-38, %v738_v41  ;;  %v372_v41 = vpop.f32.mrf.mxu1 }
  0xb6   :  { %v1186_v59 = vand.u32 2147483647, %v2585_v16  ;;  %v961_v57 = vand.u32 2147483647, %v2612_v35  ;;  %v1188_v60 = vand.u32 2147483648, %v2585_v16  ;;  %v1388_v61 = vmul.f32 %v2628_v44, %v2587_v17 }
  0xb7   :  { %v2124_v47 = vpop.eup %2123  ;;  %2129 = vpow2.f32 %v1837_v43  ;;  %v1866_v62 = vmul.f32 -1.442695, %v442_v52  ;;  %v2664_v0 = vsel %vm2636_vm14, %v949_v48, %v945_v53  ;;  %v735_v1 = vsel %vm2646_vm15, %v2589_v21, %v731_v49  ;;  %v337_v43 = vpop.f32.mrf.mxu0 }
  0xb8   :  { %v963_v2 = vand.u32 2147483648, %v2612_v35  ;;  %v2670_v3 = vadd.f32 1.0, %v2124_v47  ;;  %v1179_v4 = vsub.f32 1.0, %v1178_v54  ;;  %vm1392_vm1 = vweird.f32 %v2587_v17 }
  0xb9   :  { %v2126_v63 = vpop.eup %2125  ;;  %v1396_v7 = vand.u32 2147483647, %v2587_v17  ;;  %2131 = vpow2.f32 %v1823_v55  ;;  %vm957_vm2 = vweird.f32 %v2612_v35  ;;  %vm2676_vm3 = vcmp.eq.f32.partialorder %v961_v57, 8.507059e+37 }
  0xba   :  { %v953_v5 = vmul.f32 %v2126_v63, %v2612_v35  ;;  %v1398_v9 = vand.u32 2147483648, %v2587_v17  ;;  %2133 = vrcp.f32 %v2670_v3  ;;  %v2684_v12 = vsel %vm2653_vm0, %v739_v58, %v735_v1 }
  0xbb   :  { %v2128_v11 = vpop.eup %2127  ;;  %vm1183_vm4 = vweird.f32 %v2620_v39  ;;  %v1389_v14 = vsub.f32 1.0, %v1388_v61  ;;  %2135 = vpow2.f32 %v1866_v62  ;;  %v964_v15 = vor.u32 1.1754944e-38, %v963_v2 }
  0xbc   :  { %v954_v13 = vsub.f32 1.0, %v953_v5  ;;  %v743_v19 = vmul.f32 %v2128_v11, %v2626_v42  ;;  %v751_v21 = vand.u32 2147483647, %v2626_v42  ;;  %v753_v22 = vand.u32 2147483648, %v2626_v42 }
  0xbd   :  { %v2130_v25 = vpop.eup %2129  ;;  %v1180_v18 = vmul.f32 %v2620_v39, %v1179_v4  ;;  %vm1182_vm5 = vweird.f32 %v2585_v16  ;;  %vm958_vm6 = vweird.f32 %v2126_v63  ;;  %v1853_v27 = vmul.f32 -1.442695, %v410_v10 }
  0xbe   :  { %v955_v26 = vmul.f32 %v2126_v63, %v954_v13  ;;  %v744_v6 = vsub.f32 1.0, %v743_v19  ;;  %vm747_vm7 = vweird.f32 %v2626_v42  ;;  %vm748_vm8 = vweird.f32 %v2128_v11  ;;  %vm959_vm10 = vmor %vm957_vm2, %vm958_vm6  ;;  %v375_v19 = vpop.f32.mrf.mxu1 }
  0xbf   :  { %v2693_v20 = vadd.f32 1.0, %v2130_v25  ;;  %v2132_v28 = vpop.eup %2131  ;;  %v1390_v50 = vmul.f32 %v2628_v44, %v1389_v14  ;;  %vm1393_vm9 = vweird.f32 %v2628_v44  ;;  %2137 = vpow2.f32 %v1853_v27  ;;  %vm2712_vm13 = vmor %vm747_vm7, %vm748_vm8 }
  0xc0   :  { %v956_v29 = vadd.f32 %v2126_v63, %v955_v26  ;;  %v2134_v23 = vpop.eup %2133  ;;  %v745_v30 = vmul.f32 %v2128_v11, %v744_v6  ;;  %vm2699_vm11 = vcmp.eq.f32.partialorder %v751_v21, 8.507059e+37  ;;  %v754_v32 = vor.u32 1.1754944e-38, %v753_v22  ;;  %vm2733_vm14 = vmor %vm1392_vm1, %vm1393_vm9 }
  0xc1   :  { %2139 = vrcp.f32 %v2693_v20  ;;  %v2136_v33 = vpop.eup %2135  ;;  %v1181_v34 = vadd.f32 %v2620_v39, %v1180_v18  ;;  %vm2705_vm12 = vcmp.eq.f32.partialorder %v1186_v59, 8.507059e+37  ;;  %v1193_v38 = vmul.f32 %v2134_v23, %v2670_v3  ;;  %vm2750_vm0 = vmor %vm1182_vm5, %vm1183_vm4 }
  0xc2   :  { %v960_v37 = vsel %vm959_vm10, %v2126_v63, %v956_v29  ;;  %v1201_v40 = vand.u32 2147483647, %v2670_v3  ;;  %v746_v46 = vadd.f32 %v2128_v11, %v745_v30  ;;  %v1203_v48 = vand.u32 2147483648, %v2670_v3 }
  0xc3   :  { %v965_v45 = vsel %vm2676_vm3, %v964_v15, %v960_v37  ;;  %v2721_v49 = vadd.f32 1.0, %v2132_v28  ;;  %v1391_v51 = vadd.f32 %v2628_v44, %v1390_v50  ;;  %v1194_v52 = vsub.f32 1.0, %v1193_v38 }
  0xc4   :  { %v1949_v42 = vpack.c.bf16 %v965_v45, %v2664_v0  ;;  %v2725_v53 = vadd.f32 1.0, %v2136_v33  ;;  %v750_v24 = vsel %vm2712_vm13, %v2128_v11, %v746_v46  ;;  %v1838_v55 = vmul.f32 -1.442695, %v372_v41  ;;  %v412_v11 = vpop.f32.mrf.mxu2 }
  0xc5   :  { %2141 = vrcp.f32 %v2721_v49  ;;  %v1824_v56 = vmul.f32 -1.442695, %v337_v43  ;;  %v2138_v58 = vpop.eup %2137  ;;  %v755_v59 = vsel %vm2699_vm11, %v754_v32, %v750_v24  ;;  %v1195_v57 = vmul.f32 %v2134_v23, %v1194_v52 }
  0xc6   :  { %2053 = vst [vmem:[%s3774_s2 + $0x40] sm:$0xff] %v1949_v42   ;;  %vm1198_vm15 = vweird.f32 %v2134_v23  ;;  %2143 = vrcp.f32 %v2725_v53  ;;  %v1914_v62 = vpack.c.bf16 %v755_v59, %v2684_v12  ;;  %vm2757_vm1 = vcmp.eq.f32.partialorder %v1396_v7, 8.507059e+37 }
  0xc7   :  { %v2744_v47 = vpop.eup %2139  ;;  %v1399_v0 = vor.u32 1.1754944e-38, %v1398_v9  ;;  %vm1197_vm2 = vweird.f32 %v2670_v3  ;;  %v1185_v1 = vsel %vm2750_vm0, %v2620_v39, %v1181_v34  ;;  %v1395_v2 = vsel %vm2733_vm14, %v2628_v44, %v1391_v51  ;;  %v445_v39 = vpop.f32.mrf.mxu3 }
  0xc8   :  { %v1196_v4 = vadd.f32 %v2134_v23, %v1195_v57  ;;  %v968_v5 = vmul.f32 %v2744_v47, %v2693_v20  ;;  %v1189_v7 = vor.u32 1.1754944e-38, %v1188_v60  ;;  %2046 = vst [vmem:[%s3774_s2 + $0x8] sm:$0xff] %v1914_v62   ;;  %vm1199_vm3 = vmor %vm1197_vm2, %vm1198_vm15  ;;  %v1204_v17 = vor.u32 1.1754944e-38, %v1203_v48 }
  0xc9   :  { %v2777_v3 = vadd.f32 1.0, %v2138_v58  ;;  %2145 = vpow2.f32 %v1838_v55  ;;  %vm1202_vm4 = vcmp.eq.f32.partialorder %v1201_v40, 8.507059e+37  ;;  %v1867_v44 = vmul.f32 -1.442695, %v445_v39 }
  0xca   :  { %v1200_v8 = vsel %vm1199_vm3, %v2134_v23, %v1196_v4  ;;  %2147 = vpow2.f32 %v1824_v56  ;;  %v1190_v16 = vsel %vm2705_vm12, %v1189_v7, %v1185_v1  ;;  %v2785_v60 = vsel %vm2757_vm1, %v1399_v0, %v1395_v2 }
  0xcb   :  { %v2779_v9 = vpop.eup %2141  ;;  %v1205_v10 = vsel %vm1202_vm4, %v1204_v17, %v1200_v8  ;;  %2149 = vrcp.f32 %v2777_v3  ;;  %v969_v14 = vsub.f32 1.0, %v968_v5  ;;  %vm972_vm5 = vweird.f32 %v2693_v20  ;;  %v340_v5 = vpop.f32.mrf.mxu0 }
  0xcc   :  { %v2144_v12 = vpop.eup %2143  ;;  %v1989_v13 = vpack.c.bf16 %v1205_v10, %v1190_v16  ;;  %v758_v15 = vmul.f32 %v2779_v9, %v2721_v49  ;;  %v976_v21 = vand.u32 2147483647, %v2693_v20  ;;  %v978_v22 = vand.u32 2147483648, %v2693_v20 }
  0xcd   :  { %v1403_v25 = vmul.f32 %v2144_v12, %v2725_v53  ;;  %vm1407_vm6 = vweird.f32 %v2725_v53  ;;  %v1413_v26 = vand.u32 2147483648, %v2725_v53  ;;  %2151 = vpow2.f32 %v1867_v44 }
  0xce   :  { %2061 = vst [vmem:[%s3774_s2 + $0x80] sm:$0xff] %v1989_v13   ;;  %v759_v18 = vsub.f32 1.0, %v758_v15  ;;  %v1854_v27 = vmul.f32 -1.442695, %v412_v11  ;;  %vm1408_vm7 = vweird.f32 %v2144_v12  ;;  %v1411_v29 = vand.u32 2147483647, %v2725_v53 }
  0xcf   :  { %v2146_v6 = vpop.eup %2145  ;;  %v1404_v28 = vsub.f32 1.0, %v1403_v25  ;;  %v1839_v50 = vmul.f32 -1.442695, %v375_v19  ;;  %v970_v30 = vmul.f32 %v2744_v47, %v969_v14  ;;  %vm762_vm8 = vweird.f32 %v2721_v49  ;;  %vm2812_vm9 = vmor %vm1407_vm6, %vm1408_vm7  ;;  %v447_v11 = vpop.f32.mrf.mxu3 }
  0xd0   :  { %v2148_v23 = vpop.eup %2147  ;;  %v2802_v31 = vadd.f32 1.0, %v2146_v6  ;;  %2153 = vpow2.f32 %v1854_v27  ;;  %v766_v33 = vand.u32 2147483647, %v2721_v49  ;;  %v760_v37 = vmul.f32 %v2779_v9, %v759_v18 }
  0xd1   :  { %v2804_v32 = vpop.eup %2149  ;;  %v1405_v34 = vmul.f32 %v2144_v12, %v1404_v28  ;;  %v2807_v36 = vadd.f32 1.0, %v2148_v23  ;;  %2155 = vpow2.f32 %v1839_v50  ;;  %v1414_v38 = vor.u32 1.1754944e-38, %v1413_v26 }
  0xd2   :  { %v1208_v40 = vmul.f32 %v2804_v32, %v2777_v3  ;;  %2157 = vrcp.f32 %v2802_v31  ;;  %vm973_vm10 = vweird.f32 %v2744_v47  ;;  %v768_v41 = vand.u32 2147483648, %v2721_v49 }
  0xd3   :  { %v1406_v43 = vadd.f32 %v2144_v12, %v1405_v34  ;;  %vm1412_vm11 = vcmp.eq.f32.partialorder %v1411_v29, 8.507059e+37  ;;  %v2152_v45 = vpop.eup %2151  ;;  %v971_v46 = vadd.f32 %v2744_v47, %v970_v30  ;;  %vm763_vm12 = vweird.f32 %v2779_v9  ;;  %vm2832_vm14 = vmor %vm972_vm5, %vm973_vm10 }
  0xd4   :  { %v1209_v48 = vsub.f32 1.0, %v1208_v40  ;;  %2159 = vrcp.f32 %v2807_v36  ;;  %vm2824_vm13 = vcmp.eq.f32.partialorder %v976_v21, 8.507059e+37  ;;  %v979_v24 = vor.u32 1.1754944e-38, %v978_v22  ;;  %vm2843_vm0 = vmor %vm762_vm8, %vm763_vm12  ;;  %v415_v22 = vpop.f32.mrf.mxu2 }
  0xd5   :  { %v1410_v51 = vsel %vm2812_vm9, %v2144_v12, %v1406_v43  ;;  %v761_v54 = vadd.f32 %v2779_v9, %v760_v37  ;;  %vm2837_vm15 = vcmp.eq.f32.partialorder %v766_v33, 8.507059e+37  ;;  %v769_v20 = vor.u32 1.1754944e-38, %v768_v41 }
  0xd6   :  { %v2154_v52 = vpop.eup %2153  ;;  %v1415_v56 = vsel %vm1412_vm11, %v1414_v38, %v1410_v51  ;;  %v2848_v61 = vadd.f32 1.0, %v2152_v45  ;;  %v975_v0 = vsel %vm2832_vm14, %v2744_v47, %v971_v46  ;;  %v1210_v1 = vmul.f32 %v2804_v32, %v1209_v48  ;;  %v342_v48 = vpop.f32.mrf.mxu0 }
  0xd7   :  { %v2156_v58 = vpop.eup %2155  ;;  %v2024_v57 = vpack.c.bf16 %v1415_v56, %v2785_v60  ;;  %v2850_v62 = vadd.f32 1.0, %v2154_v52  ;;  %vm1212_vm1 = vweird.f32 %v2777_v3  ;;  %v1216_v49 = vand.u32 2147483647, %v2777_v3 }
  0xd8   :  { %v2158_v63 = vpop.eup %2157  ;;  %vm1213_vm2 = vweird.f32 %v2804_v32  ;;  %2161 = vrcp.f32 %v2848_v61  ;;  %v2864_v4 = vadd.f32 1.0, %v2156_v58  ;;  %v765_v7 = vsel %vm2843_vm0, %v2779_v9, %v761_v54 }
  0xd9   :  { %2068 = vst [vmem:[%s3774_s2 + $0xb8] sm:$0xff] %v2024_v57   ;;  %v983_v2 = vmul.f32 %v2158_v63, %v2802_v31  ;;  %v991_v17 = vand.u32 2147483647, %v2802_v31  ;;  %v993_v39 = vand.u32 2147483648, %v2802_v31  ;;  %2163 = vrcp.f32 %v2850_v62  ;;  %vm2888_vm6 = vmor %vm1212_vm1, %vm1213_vm2 }
  0xda   :  { %v2160_v47 = vpop.eup %2159  ;;  %vm777_vm3 = vweird.f32 %v2807_v36  ;;  %v1825_v16 = vmul.f32 -1.442695, %v340_v5  ;;  %v2875_v60 = vadd.f32 %v2804_v32, %v1210_v1  ;;  %vm988_vm4 = vweird.f32 %v2158_v63 }
  0xdb   :  { %v984_v8 = vsub.f32 1.0, %v983_v2  ;;  %v773_v44 = vmul.f32 %v2160_v47, %v2807_v36  ;;  %v781_v10 = vand.u32 2147483647, %v2807_v36  ;;  %v783_v9 = vand.u32 2147483648, %v2807_v36 }
  0xdc   :  { %vm778_vm5 = vweird.f32 %v2160_v47  ;;  %2165 = vrcp.f32 %v2864_v4  ;;  %v980_v14 = vsel %vm2824_vm13, %v979_v24, %v975_v0  ;;  %v770_v15 = vsel %vm2837_vm15, %v769_v20, %v765_v7  ;;  %v450_v20 = vpop.f32.mrf.mxu3  ;;  %v417_v5 = vpop.f32.mrf.mxu2 }
  0xdd   :  { %v985_v12 = vmul.f32 %v2158_v63, %v984_v8  ;;  %v774_v13 = vsub.f32 1.0, %v773_v44  ;;  %v1218_v21 = vand.u32 2147483648, %v2777_v3  ;;  %vm987_vm7 = vweird.f32 %v2802_v31  ;;  %vm2908_vm10 = vmor %vm777_vm3, %vm778_vm5  ;;  %v377_v31 = vpop.f32.mrf.mxu1 }
  0xde   :  { %v2894_v25 = vpop.eup %2161  ;;  %vm2897_vm8 = vmor %vm987_vm7, %vm988_vm4  ;;  %vm992_vm9 = vcmp.eq.f32.partialorder %v991_v17, 8.507059e+37  ;;  %2167 = vpow2.f32 %v1825_v16  ;;  %v1215_v28 = vsel %vm2888_vm6, %v2804_v32, %v2875_v60  ;;  %v994_v29 = vor.u32 1.1754944e-38, %v993_v39 }
  0xdf   :  { %v986_v18 = vadd.f32 %v2158_v63, %v985_v12  ;;  %v775_v27 = vmul.f32 %v2160_v47, %v774_v13  ;;  %v2164_v6 = vpop.eup %2163  ;;  %vm2912_vm11 = vcmp.eq.f32.partialorder %v781_v10, 8.507059e+37  ;;  %v784_v30 = vor.u32 1.1754944e-38, %v783_v9 }
  0xe0   :  { %v1223_v32 = vmul.f32 %v2164_v6, %v2850_v62  ;;  %vm1227_vm12 = vweird.f32 %v2850_v62  ;;  %v1418_v36 = vmul.f32 %v2894_v25, %v2848_v61  ;;  %v1868_v35 = vmul.f32 -1.442695, %v447_v11 }
  0xe1   :  { %v990_v33 = vsel %vm2897_vm8, %v2158_v63, %v986_v18  ;;  %v776_v34 = vadd.f32 %v2160_v47, %v775_v27  ;;  %v1855_v38 = vmul.f32 -1.442695, %v415_v22  ;;  %v1840_v46 = vmul.f32 -1.442695, %v377_v31 }
  0xe2   :  { %v995_v37 = vsel %vm992_vm9, %v994_v29, %v990_v33  ;;  %v2922_v40 = vpop.eup %2165  ;;  %v1224_v45 = vsub.f32 1.0, %v1223_v32  ;;  %v1231_v51 = vand.u32 2147483647, %v2850_v62  ;;  %v1233_v52 = vand.u32 2147483648, %v2850_v62 }
  0xe3   :  { %v1954_v41 = vpack.c.bf16 %v995_v37, %v980_v14  ;;  %v780_v43 = vsel %vm2908_vm10, %v2160_v47, %v776_v34  ;;  %v998_v53 = vmul.f32 %v2922_v40, %v2864_v4  ;;  %vm1228_vm13 = vweird.f32 %v2164_v6 }
  0xe4   :  { %v785_v42 = vsel %vm2912_vm11, %v784_v30, %v780_v43  ;;  %v2168_v24 = vpop.eup %2167  ;;  %v1225_v55 = vmul.f32 %v2164_v6, %v1224_v45  ;;  %2169 = vpow2.f32 %v1868_v35  ;;  %v1419_v56 = vsub.f32 1.0, %v1418_v36  ;;  %vm1229_vm14 = vmor %vm1227_vm12, %vm1228_vm13  ;;  %v345_v43 = vpop.f32.mrf.mxu0 }
  0xe5   :  { %2054 = vst [vmem:[%s3774_s2 + $0x48] sm:$0xff] %v1954_v41   ;;  %v1919_v54 = vpack.c.bf16 %v785_v42, %v770_v15  ;;  %v2935_v58 = vadd.f32 1.0, %v2168_v24  ;;  %2171 = vpow2.f32 %v1855_v38  ;;  %v1826_v59 = vmul.f32 -1.442695, %v342_v48  ;;  %v380_v18 = vpop.f32.mrf.mxu1 }
  0xe6   :  { %v1226_v57 = vadd.f32 %v2164_v6, %v1225_v55  ;;  %v999_v63 = vsub.f32 1.0, %v998_v53  ;;  %2173 = vpow2.f32 %v1840_v46  ;;  %v1869_v0 = vmul.f32 -1.442695, %v450_v20 }
  0xe7   :  { %2047 = vst [vmem:[%s3774_s2 + $0x10] sm:$0xff] %v1919_v54   ;;  %v1219_v1 = vor.u32 1.1754944e-38, %v1218_v21  ;;  %v1234_v2 = vor.u32 1.1754944e-38, %v1233_v52  ;;  %2175 = vrcp.f32 %v2935_v58  ;;  %vm1217_vm15 = vcmp.eq.f32.partialorder %v1216_v49, 8.507059e+37 }
  0xe8   :  { %vm1422_vm0 = vweird.f32 %v2848_v61  ;;  %v1230_v47 = vsel %vm1229_vm14, %v2164_v6, %v1226_v57  ;;  %vm1232_vm1 = vcmp.eq.f32.partialorder %v1231_v51, 8.507059e+37  ;;  %v1420_v17 = vmul.f32 %v2894_v25, %v1419_v56 }
  0xe9   :  { %v1220_v7 = vsel %vm1217_vm15, %v1219_v1, %v1215_v28  ;;  %v1235_v39 = vsel %vm1232_vm1, %v1234_v2, %v1230_v47  ;;  %2177 = vpow2.f32 %v1826_v59  ;;  %v1000_v62 = vmul.f32 %v2922_v40, %v999_v63 }
  0xea   :  { %v2170_v8 = vpop.eup %2169  ;;  %v1994_v44 = vpack.c.bf16 %v1235_v39, %v1220_v7  ;;  %2179 = vpow2.f32 %v1869_v0  ;;  %v1856_v16 = vmul.f32 -1.442695, %v417_v5  ;;  %vm1423_vm2 = vweird.f32 %v2894_v25 }
  0xeb   :  { %v2172_v60 = vpop.eup %2171  ;;  %v1426_v3 = vand.u32 2147483647, %v2848_v61  ;;  %v1428_v49 = vand.u32 2147483648, %v2848_v61  ;;  %v2951_v10 = vadd.f32 1.0, %v2170_v8  ;;  %v1006_v11 = vand.u32 2147483647, %v2864_v4  ;;  %vm2967_vm4 = vmor %vm1422_vm0, %vm1423_vm2 }
  0xec   :  { %v2174_v9 = vpop.eup %2173  ;;  %2062 = vst [vmem:[%s3774_s2 + $0x88] sm:$0xff] %v1994_v44   ;;  %v2957_v12 = vadd.f32 1.0, %v2172_v60  ;;  %v1421_v14 = vadd.f32 %v2894_v25, %v1420_v17  ;;  %vm1002_vm3 = vweird.f32 %v2864_v4  ;;  %v1008_v15 = vand.u32 2147483648, %v2864_v4 }
  0xed   :  { %v2959_v13 = vpop.eup %2175  ;;  %2181 = vrcp.f32 %v2951_v10  ;;  %v1001_v21 = vadd.f32 %v2922_v40, %v1000_v62  ;;  %vm1003_vm5 = vweird.f32 %v2922_v40  ;;  %vm2975_vm6 = vcmp.eq.f32.partialorder %v1426_v3, 8.507059e+37 }
  0xee   :  { %v788_v22 = vmul.f32 %v2959_v13, %v2935_v58  ;;  %2183 = vpow2.f32 %v1856_v16  ;;  %v1429_v6 = vor.u32 1.1754944e-38, %v1428_v49  ;;  %vm2980_vm7 = vcmp.eq.f32.partialorder %v1006_v11, 8.507059e+37  ;;  %vm2994_vm8 = vmor %vm1002_vm3, %vm1003_vm5 }
  0xef   :  { %v2178_v26 = vpop.eup %2177  ;;  %2185 = vrcp.f32 %v2957_v12  ;;  %v798_v29 = vand.u32 2147483648, %v2935_v58  ;;  %v2985_v50 = vadd.f32 1.0, %v2174_v9  ;;  %v1425_v30 = vsel %vm2967_vm4, %v2894_v25, %v1421_v14  ;;  %v452_v25 = vpop.f32.mrf.mxu3 }
  0xf0   :  { %v2180_v61 = vpop.eup %2179  ;;  %v2987_v23 = vadd.f32 1.0, %v2178_v26  ;;  %v1009_v33 = vor.u32 1.1754944e-38, %v1008_v15  ;;  %v796_v34 = vand.u32 2147483647, %v2935_v58  ;;  %v1841_v32 = vmul.f32 -1.442695, %v380_v18 }
  0xf1   :  { %v1005_v37 = vsel %vm2994_vm8, %v2922_v40, %v1001_v21  ;;  %v789_v36 = vsub.f32 1.0, %v788_v22  ;;  %2187 = vrcp.f32 %v2985_v50  ;;  %v3003_v35 = vadd.f32 1.0, %v2180_v61 }
  0xf2   :  { %vm792_vm9 = vweird.f32 %v2935_v58  ;;  %v1441_v4 = vand.u32 2147483647, %v2951_v10  ;;  %v1443_v41 = vand.u32 2147483648, %v2951_v10  ;;  %2189 = vrcp.f32 %v2987_v23 }
  0xf3   :  { %v2182_v38 = vpop.eup %2181  ;;  %v1430_v40 = vsel %vm2975_vm6, %v1429_v6, %v1425_v30  ;;  %v3011_v46 = vor.u32 1.1754944e-38, %v798_v29  ;;  %v1827_v42 = vmul.f32 -1.442695, %v345_v43  ;;  %v3018_v52 = vsel %vm2980_vm7, %v1009_v33, %v1005_v37  ;;  %v420_v33 = vpop.f32.mrf.mxu2 }
  0xf4   :  { %v2184_v45 = vpop.eup %2183  ;;  %v1433_v48 = vmul.f32 %v2182_v38, %v2951_v10  ;;  %vm1437_vm10 = vweird.f32 %v2951_v10  ;;  %2191 = vpow2.f32 %v1841_v32  ;;  %v1870_v53 = vmul.f32 -1.442695, %v452_v25 }
  0xf5   :  { %v3014_v51 = vpop.eup %2185  ;;  %v790_v24 = vmul.f32 %v2959_v13, %v789_v36  ;;  %vm3022_vm11 = vcmp.eq.f32.partialorder %v796_v34, 8.507059e+37  ;;  %vm1438_vm12 = vweird.f32 %v2182_v38  ;;  %2193 = vrcp.f32 %v3003_v35 }
  0xf6   :  { %v1434_v55 = vsub.f32 1.0, %v1433_v48  ;;  %vm793_vm13 = vweird.f32 %v2959_v13  ;;  %vm3028_vm14 = vcmp.eq.f32.partialorder %v1441_v4, 8.507059e+37  ;;  %v1444_v59 = vor.u32 1.1754944e-38, %v1443_v41  ;;  %vm3039_vm15 = vmor %vm1437_vm10, %vm1438_vm12 }
  0xf7   :  { %v1246_v20 = vand.u32 2147483647, %v2957_v12  ;;  %v2188_v57 = vpop.eup %2187  ;;  %v1238_v0 = vmul.f32 %v3014_v51, %v2957_v12  ;;  %v3035_v1 = vadd.f32 1.0, %v2184_v45  ;;  %2195 = vpow2.f32 %v1827_v42  ;;  %vm3053_vm1 = vmor %vm792_vm9, %vm793_vm13  ;;  %v382_v42 = vpop.f32.mrf.mxu1 }
  0xf8   :  { %v1435_v63 = vmul.f32 %v2182_v38, %v1434_v55  ;;  %v2190_v2 = vpop.eup %2189  ;;  %v1248_v47 = vand.u32 2147483648, %v2957_v12  ;;  %v1013_v7 = vmul.f32 %v2188_v57, %v2985_v50  ;;  %v1023_v17 = vand.u32 2147483648, %v2985_v50 }
  0xf9   :  { %2197 = vpow2.f32 %v1870_v53  ;;  %v791_v39 = vadd.f32 %v2959_v13, %v790_v24  ;;  %v803_v44 = vmul.f32 %v2190_v2, %v2987_v23  ;;  %vm807_vm0 = vweird.f32 %v2987_v23  ;;  %v347_v53 = vpop.f32.mrf.mxu0 }
  0xfa   :  { %v1436_v8 = vadd.f32 %v2182_v38, %v1435_v63  ;;  %v2192_v62 = vpop.eup %2191  ;;  %v1014_v60 = vsub.f32 1.0, %v1013_v7  ;;  %v811_v3 = vand.u32 2147483647, %v2987_v23  ;;  %v813_v49 = vand.u32 2147483648, %v2987_v23 }
  0xfb   :  { %2199 = vrcp.f32 %v3035_v1  ;;  %v3060_v10 = vpop.eup %2193  ;;  %v1239_v11 = vsub.f32 1.0, %v1238_v0  ;;  %v804_v14 = vsub.f32 1.0, %v803_v44  ;;  %vm808_vm2 = vweird.f32 %v2190_v2  ;;  %v422_v44 = vpop.f32.mrf.mxu2 }
  0xfc   :  { %v1440_v9 = vsel %vm3039_vm15, %v2182_v38, %v1436_v8  ;;  %v1015_v15 = vmul.f32 %v2188_v57, %v1014_v60  ;;  %vm1018_vm3 = vweird.f32 %v2188_v57  ;;  %v1021_v19 = vand.u32 2147483647, %v2985_v50  ;;  %vm3077_vm6 = vmor %vm807_vm0, %vm808_vm2 }
  0xfd   :  { %v1445_v58 = vsel %vm3028_vm14, %v1444_v59, %v1440_v9  ;;  %v2196_v21 = vpop.eup %2195  ;;  %v795_v22 = vsel %vm3053_vm1, %v2959_v13, %v791_v39  ;;  %vm1242_vm4 = vweird.f32 %v2957_v12  ;;  %v805_v26 = vmul.f32 %v2190_v2, %v804_v14 }
  0xfe   :  { %v2029_v18 = vpack.c.bf16 %v1445_v58, %v1430_v40  ;;  %v1448_v27 = vmul.f32 %v3060_v10, %v3003_v35  ;;  %v1016_v61 = vadd.f32 %v2188_v57, %v1015_v15  ;;  %vm1017_vm5 = vweird.f32 %v2985_v50 }
  0xff   :  { %v2198_v6 = vpop.eup %2197  ;;  %v1024_v28 = vor.u32 1.1754944e-38, %v1023_v17  ;;  %v814_v13 = vor.u32 1.1754944e-38, %v813_v49  ;;  %v1240_v30 = vmul.f32 %v3014_v51, %v1239_v11  ;;  %vm1019_vm7 = vmor %vm1017_vm5, %vm1018_vm3  ;;  %v806_v31 = vadd.f32 %v2190_v2, %v805_v26 }
 0x100   :  { %2069 = vst [vmem:[%s3774_s2 + $0xc0] sm:$0xff] %v2029_v18   ;;  %vm812_vm8 = vcmp.eq.f32.partialorder %v811_v3, 8.507059e+37  ;;  %v3086_v50 = vadd.f32 1.0, %v2192_v62  ;;  %v800_v23 = vsel %vm3022_vm11, %v3011_v46, %v795_v22  ;;  %v1020_v32 = vsel %vm1019_vm7, %v2188_v57, %v1016_v61  ;;  %v455_v3 = vpop.f32.mrf.mxu3  ;;  %v385_v18 = vpop.f32.mrf.mxu1 }
 0x101   :  { %v2200_v34 = vpop.eup %2199  ;;  %vm1022_vm9 = vcmp.eq.f32.partialorder %v1021_v19, 8.507059e+37  ;;  %v3091_v37 = vadd.f32 1.0, %v2196_v21  ;;  %v810_v25 = vsel %vm3077_vm6, %v2190_v2, %v806_v31  ;;  %v1449_v38 = vsub.f32 1.0, %v1448_v27  ;;  %v350_v26 = vpop.f32.mrf.mxu0 }
 0x102   :  { %v1025_v36 = vsel %vm1022_vm9, %v1024_v28, %v1020_v32  ;;  %v1253_v4 = vmul.f32 %v2200_v34, %v3035_v1  ;;  %v815_v43 = vsel %vm812_vm8, %v814_v13, %v810_v25  ;;  %2201 = vrcp.f32 %v3086_v50 }
 0x103   :  { %v1959_v41 = vpack.c.bf16 %v1025_v36, %v3018_v52  ;;  %v3098_v45 = vadd.f32 1.0, %v2198_v6  ;;  %v1241_v40 = vadd.f32 %v3014_v51, %v1240_v30  ;;  %vm1243_vm10 = vweird.f32 %v3014_v51 }
 0x104   :  { %v1924_v46 = vpack.c.bf16 %v815_v43, %v800_v23  ;;  %v1254_v48 = vsub.f32 1.0, %v1253_v4  ;;  %v1249_v24 = vor.u32 1.1754944e-38, %v1248_v47  ;;  %v1263_v52 = vand.u32 2147483648, %v3035_v1  ;;  %vm3116_vm13 = vmor %vm1242_vm4, %vm1243_vm10 }
 0x105   :  { %2055 = vst [vmem:[%s3774_s2 + $0x50] sm:$0xff] %v1959_v41   ;;  %2203 = vrcp.f32 %v3091_v37  ;;  %v1857_v54 = vmul.f32 -1.442695, %v420_v33  ;;  %vm1452_vm11 = vweird.f32 %v3003_v35  ;;  %vm1258_vm12 = vweird.f32 %v2200_v34 }
 0x106   :  { %2048 = vst [vmem:[%s3774_s2 + $0x18] sm:$0xff] %v1924_v46   ;;  %v1255_v55 = vmul.f32 %v2200_v34, %v1254_v48  ;;  %v1261_v56 = vand.u32 2147483647, %v3035_v1  ;;  %v1450_v57 = vmul.f32 %v3060_v10, %v1449_v38  ;;  %v1456_v63 = vand.u32 2147483647, %v3003_v35 }
 0x107   :  { %2205 = vrcp.f32 %v3098_v45  ;;  %v1842_v0 = vmul.f32 -1.442695, %v382_v42  ;;  %v1245_v2 = vsel %vm3116_vm13, %v3014_v51, %v1241_v40  ;;  %v1458_v5 = vand.u32 2147483648, %v3003_v35 }
 0x108   :  { %v1256_v47 = vadd.f32 %v2200_v34, %v1255_v55  ;;  %vm1257_vm14 = vweird.f32 %v3035_v1  ;;  %v3128_v7 = vpop.eup %2201  ;;  %vm1453_vm15 = vweird.f32 %v3060_v10  ;;  %v1264_v17 = vor.u32 1.1754944e-38, %v1263_v52 }
 0x109   :  { %vm1259_vm0 = vmor %vm1257_vm14, %vm1258_vm12  ;;  %2207 = vpow2.f32 %v1857_v54  ;;  %v1828_v39 = vmul.f32 -1.442695, %v347_v53  ;;  %vm1247_vm1 = vcmp.eq.f32.partialorder %v1246_v20, 8.507059e+37  ;;  %vm1262_vm2 = vcmp.eq.f32.partialorder %v1261_v56, 8.507059e+37 }
 0x10a   :  { %v1260_v8 = vsel %vm1259_vm0, %v2200_v34, %v1256_v47  ;;  %v1028_v51 = vmul.f32 %v3128_v7, %v3086_v50  ;;  %v1250_v1 = vsel %vm1247_vm1, %v1249_v24, %v1245_v2  ;;  %v1451_v16 = vadd.f32 %v3060_v10, %v1450_v57  ;;  %vm3142_vm3 = vmor %vm1452_vm11, %vm1453_vm15  ;;  %v457_v57 = vpop.f32.mrf.mxu3 }
 0x10b   :  { %v3135_v62 = vpop.eup %2203  ;;  %v1265_v60 = vsel %vm1262_vm2, %v1264_v17, %v1260_v8  ;;  %2209 = vpow2.f32 %v1842_v0  ;;  %vm3146_vm4 = vcmp.eq.f32.partialorder %v1456_v63, 8.507059e+37  ;;  %v1871_v11 = vmul.f32 -1.442695, %v455_v3  ;;  %v425_v63 = vpop.f32.mrf.mxu2 }
 0x10c   :  { %v1999_v49 = vpack.c.bf16 %v1265_v60, %v1250_v1  ;;  %v818_v9 = vmul.f32 %v3135_v62, %v3091_v37  ;;  %v1459_v58 = vor.u32 1.1754944e-38, %v1458_v5  ;;  %v1029_v15 = vsub.f32 1.0, %v1028_v51  ;;  %v352_v8 = vpop.f32.mrf.mxu0 }
 0x10d   :  { %v2206_v14 = vpop.eup %2205  ;;  %2211 = vpow2.f32 %v1828_v39  ;;  %v1858_v19 = vmul.f32 -1.442695, %v422_v44  ;;  %vm1032_vm5 = vweird.f32 %v3086_v50  ;;  %v1036_v35 = vand.u32 2147483647, %v3086_v50  ;;  %v387_v39 = vpop.f32.mrf.mxu1 }
 0x10e   :  { %2063 = vst [vmem:[%s3774_s2 + $0x90] sm:$0xff] %v1999_v49   ;;  %v819_v21 = vsub.f32 1.0, %v818_v9  ;;  %v1463_v22 = vmul.f32 %v2206_v14, %v3098_v45  ;;  %v1455_v6 = vsel %vm3142_vm3, %v3060_v10, %v1451_v16  ;;  %vm1467_vm6 = vweird.f32 %v3098_v45 }
 0x10f   :  { %v2208_v27 = vpop.eup %2207  ;;  %v1471_v61 = vand.u32 2147483647, %v3098_v45  ;;  %v1473_v28 = vand.u32 2147483648, %v3098_v45  ;;  %vm1468_vm7 = vweird.f32 %v2206_v14  ;;  %2213 = vpow2.f32 %v1871_v11 }
 0x110   :  { %v1464_v29 = vsub.f32 1.0, %v1463_v22  ;;  %v3164_v13 = vadd.f32 1.0, %v2208_v27  ;;  %v1030_v31 = vmul.f32 %v3128_v7, %v1029_v15  ;;  %v1038_v33 = vand.u32 2147483648, %v3086_v50  ;;  %vm3176_vm9 = vmor %vm1467_vm6, %vm1468_vm7 }
 0x111   :  { %v2210_v30 = vpop.eup %2209  ;;  %2215 = vpow2.f32 %v1858_v19  ;;  %v1843_v34 = vmul.f32 -1.442695, %v385_v18  ;;  %v820_v10 = vmul.f32 %v3135_v62, %v819_v21  ;;  %vm822_vm8 = vweird.f32 %v3091_v37 }
 0x112   :  { %v1465_v23 = vmul.f32 %v2206_v14, %v1464_v29  ;;  %2217 = vrcp.f32 %v3164_v13  ;;  %v826_v36 = vand.u32 2147483647, %v3091_v37  ;;  %v828_v25 = vand.u32 2147483648, %v3091_v37 }
 0x113   :  { %v2212_v32 = vpop.eup %2211  ;;  %vm3180_vm10 = vcmp.eq.f32.partialorder %v1471_v61, 8.507059e+37  ;;  %v1474_v41 = vor.u32 1.1754944e-38, %v1473_v28  ;;  %vm823_vm11 = vweird.f32 %v3135_v62  ;;  %v3185_v40 = vadd.f32 1.0, %v2210_v30 }
 0x114   :  { %v1466_v43 = vadd.f32 %v2206_v14, %v1465_v23  ;;  %v3187_v46 = vadd.f32 1.0, %v2212_v32  ;;  %v1460_v48 = vsel %vm3146_vm4, %v1459_v58, %v1455_v6  ;;  %v1031_v45 = vadd.f32 %v3128_v7, %v1030_v31  ;;  %vm3205_vm14 = vmor %vm822_vm8, %vm823_vm11 }
 0x115   :  { %vm1033_vm12 = vweird.f32 %v3128_v7  ;;  %2219 = vpow2.f32 %v1843_v34  ;;  %v2214_v42 = vpop.eup %2213  ;;  %v821_v53 = vadd.f32 %v3135_v62, %v820_v10  ;;  %v1829_v52 = vmul.f32 -1.442695, %v350_v26 }
 0x116   :  { %v1470_v24 = vsel %vm3176_vm9, %v2206_v14, %v1466_v43  ;;  %2221 = vrcp.f32 %v3185_v40  ;;  %vm3197_vm13 = vcmp.eq.f32.partialorder %v1036_v35, 8.507059e+37  ;;  %vm3218_vm15 = vmor %vm1032_vm5, %vm1033_vm12  ;;  %v1039_v37 = vor.u32 1.1754944e-38, %v1038_v33 }
 0x117   :  { %v2216_v54 = vpop.eup %2215  ;;  %v1475_v59 = vsel %vm3180_vm10, %v1474_v41, %v1470_v24  ;;  %2223 = vrcp.f32 %v3187_v46  ;;  %vm3222_vm0 = vcmp.eq.f32.partialorder %v826_v36, 8.507059e+37  ;;  %v829_v47 = vor.u32 1.1754944e-38, %v828_v25 }
 0x118   :  { %v3212_v0 = vpop.eup %2217  ;;  %v2034_v17 = vpack.c.bf16 %v1475_v59, %v1460_v48  ;;  %v1035_v51 = vsel %vm3218_vm15, %v3128_v7, %v1031_v45  ;;  %v1278_v44 = vand.u32 2147483648, %v3164_v13  ;;  %v3232_v1 = vadd.f32 1.0, %v2214_v42 }
 0x119   :  { %v1268_v50 = vmul.f32 %v3212_v0, %v3164_v13  ;;  %v825_v16 = vsel %vm3205_vm14, %v3135_v62, %v821_v53  ;;  %v3240_v60 = vadd.f32 1.0, %v2216_v54  ;;  %2225 = vpow2.f32 %v1829_v52  ;;  %v460_v54 = vpop.f32.mrf.mxu3 }
 0x11a   :  { %2070 = vst [vmem:[%s3774_s2 + $0xc8] sm:$0xff] %v2034_v17   ;;  %v1872_v3 = vmul.f32 -1.442695, %v457_v57  ;;  %2227 = vrcp.f32 %v3232_v1  ;;  %v1859_v12 = vmul.f32 -1.442695, %v425_v63  ;;  %v3249_v62 = vsel %vm3197_vm13, %v1039_v37, %v1035_v51 }
 0x11b   :  { %v2220_v7 = vpop.eup %2219  ;;  %v3243_v20 = vmul.f32 -1.442695, %v387_v39  ;;  %v3245_v49 = vmul.f32 -1.442695, %v352_v8  ;;  %v1269_v11 = vsub.f32 1.0, %v1268_v50  ;;  %2229 = vrcp.f32 %v3240_v60 }
 0x11c   :  { %v2222_v9 = vpop.eup %2221  ;;  %v1276_v14 = vand.u32 2147483647, %v3164_v13  ;;  %v3255_v15 = vsel %vm3222_vm0, %v829_v47, %v825_v16  ;;  %v3257_v19 = vor.u32 1.1754944e-38, %v1278_v44  ;;  %v1051_v21 = vand.u32 2147483647, %v3185_v40 }
 0x11d   :  { %v2224_v58 = vpop.eup %2223  ;;  %v1043_v35 = vmul.f32 %v2222_v9, %v3185_v40  ;;  %vm1272_vm1 = vweird.f32 %v3164_v13  ;;  %vm1047_vm2 = vweird.f32 %v3185_v40  ;;  %v1053_v22 = vand.u32 2147483648, %v3185_v40 }
 0x11e   :  { %v833_v18 = vmul.f32 %v2224_v58, %v3187_v46  ;;  %vm837_vm3 = vweird.f32 %v3187_v46  ;;  %v841_v27 = vand.u32 2147483647, %v3187_v46  ;;  %v843_v6 = vand.u32 2147483648, %v3187_v46 }
 0x11f   :  { %v1044_v26 = vsub.f32 1.0, %v1043_v35  ;;  %v3268_v61 = vadd.f32 1.0, %v2220_v7  ;;  %v2226_v28 = vpop.eup %2225  ;;  %v1270_v29 = vmul.f32 %v3212_v0, %v1269_v11  ;;  %vm838_vm4 = vweird.f32 %v2224_v58  ;;  %v427_v11 = vpop.f32.mrf.mxu2 }
 0x120   :  { %v834_v30 = vsub.f32 1.0, %v833_v18  ;;  %2231 = vpow2.f32 %v1872_v3  ;;  %v3271_v31 = vpop.eup %2227  ;;  %vm1048_vm5 = vweird.f32 %v2222_v9  ;;  %vm3273_vm6 = vcmp.eq.f32.partialorder %v1051_v21, 8.507059e+37  ;;  %vm3287_vm9 = vmor %vm837_vm3, %vm838_vm4 }
 0x121   :  { %v1045_v33 = vmul.f32 %v2222_v9, %v1044_v26  ;;  %2233 = vrcp.f32 %v3268_v61  ;;  %v2230_v10 = vpop.eup %2229  ;;  %vm1273_vm7 = vweird.f32 %v3212_v0  ;;  %vm3279_vm8 = vcmp.eq.f32.partialorder %v1276_v14, 8.507059e+37  ;;  %vm1049_vm11 = vmor %vm1047_vm2, %vm1048_vm5 }
 0x122   :  { %v1054_v32 = vor.u32 1.1754944e-38, %v1053_v22  ;;  %v835_v36 = vmul.f32 %v2224_v58, %v834_v30  ;;  %v1478_v25 = vmul.f32 %v3271_v31, %v3232_v1  ;;  %vm3291_vm10 = vcmp.eq.f32.partialorder %v841_v27, 8.507059e+37  ;;  %vm3315_vm13 = vmor %vm1272_vm1, %vm1273_vm7 }
 0x123   :  { %v1046_v38 = vadd.f32 %v2222_v9, %v1045_v33  ;;  %v844_v43 = vor.u32 1.1754944e-38, %v843_v6  ;;  %v1283_v48 = vmul.f32 %v2230_v10, %v3240_v60  ;;  %v1271_v45 = vadd.f32 %v3212_v0, %v1270_v29 }
 0x124   :  { %v836_v42 = vadd.f32 %v2224_v58, %v835_v36  ;;  %vm1482_vm12 = vweird.f32 %v3232_v1  ;;  %v1291_v46 = vand.u32 2147483647, %v3240_v60  ;;  %v3302_v52 = vadd.f32 1.0, %v2226_v28 }
 0x125   :  { %v1050_v53 = vsel %vm1049_vm11, %v2222_v9, %v1046_v38  ;;  %v1284_v24 = vsub.f32 1.0, %v1283_v48  ;;  %2235 = vpow2.f32 %v1859_v12  ;;  %v1479_v40 = vsub.f32 1.0, %v1478_v25 }
 0x126   :  { %v2232_v55 = vpop.eup %2231  ;;  %v1055_v56 = vsel %vm3273_vm6, %v1054_v32, %v1050_v53  ;;  %v840_v59 = vsel %vm3287_vm9, %v2224_v58, %v836_v42  ;;  %v1293_v57 = vand.u32 2147483648, %v3240_v60  ;;  %vm1288_vm14 = vweird.f32 %v2230_v10  ;;  %v355_v32 = vpop.f32.mrf.mxu0 }
 0x127   :  { %v3309_v63 = vpop.eup %2233  ;;  %v1964_v37 = vpack.c.bf16 %v1055_v56, %v3249_v62  ;;  %v845_v5 = vsel %vm3291_vm10, %v844_v43, %v840_v59  ;;  %v1285_v47 = vmul.f32 %v2230_v10, %v1284_v24  ;;  %v1275_v17 = vsel %vm3315_vm13, %v3212_v0, %v1271_v45 }
 0x128   :  { %v1929_v39 = vpack.c.bf16 %v845_v5, %v3255_v15  ;;  %v1486_v8 = vand.u32 2147483647, %v3232_v1  ;;  %v1058_v13 = vmul.f32 %v3309_v63, %v3268_v61  ;;  %v1488_v51 = vand.u32 2147483648, %v3232_v1 }
 0x129   :  { %2056 = vst [vmem:[%s3774_s2 + $0x58] sm:$0xff] %v1964_v37   ;;  %v1286_v50 = vadd.f32 %v2230_v10, %v1285_v47  ;;  %vm1287_vm15 = vweird.f32 %v3240_v60  ;;  %2237 = vrcp.f32 %v3302_v52  ;;  %v1480_v0 = vmul.f32 %v3271_v31, %v1479_v40 }
 0x12a   :  { %2049 = vst [vmem:[%s3774_s2 + $0x20] sm:$0xff] %v1929_v39   ;;  %vm1289_vm0 = vmor %vm1287_vm15, %vm1288_vm14  ;;  %vm1292_vm1 = vcmp.eq.f32.partialorder %v1291_v46, 8.507059e+37  ;;  %v1294_v44 = vor.u32 1.1754944e-38, %v1293_v57  ;;  %v3339_v16 = vadd.f32 1.0, %v2232_v55  ;;  %v1280_v7 = vsel %vm3279_vm8, %v3257_v19, %v1275_v17  ;;  %v390_v19 = vpop.f32.mrf.mxu1 }
 0x12b   :  { %v2236_v3 = vpop.eup %2235  ;;  %v1290_v12 = vsel %vm1289_vm0, %v2230_v10, %v1286_v50  ;;  %2239 = vpow2.f32 %v3243_v20  ;;  %v1873_v60 = vmul.f32 -1.442695, %v460_v54  ;;  %vm1483_vm2 = vweird.f32 %v3271_v31 }
 0x12c   :  { %v1295_v9 = vsel %vm1292_vm1, %v1294_v44, %v1290_v12  ;;  %v1059_v62 = vsub.f32 1.0, %v1058_v13  ;;  %2241 = vrcp.f32 %v3339_v16  ;;  %v1068_v58 = vand.u32 2147483648, %v3268_v61  ;;  %vm3356_vm3 = vmor %vm1482_vm12, %vm1483_vm2 }
 0x12d   :  { %v2004_v14 = vpack.c.bf16 %v1295_v9, %v1280_v7  ;;  %v1481_v15 = vadd.f32 %v3271_v31, %v1480_v0  ;;  %v3349_v35 = vadd.f32 1.0, %v2236_v3  ;;  %2243 = vpow2.f32 %v3245_v49  ;;  %v462_v49 = vpop.f32.mrf.mxu3 }
 0x12e   :  { %vm3360_vm4 = vcmp.eq.f32.partialorder %v1486_v8, 8.507059e+37  ;;  %2245 = vpow2.f32 %v1873_v60  ;;  %v1860_v18 = vmul.f32 -1.442695, %v427_v11  ;;  %v1489_v26 = vor.u32 1.1754944e-38, %v1488_v51 }
 0x12f   :  { %v3352_v21 = vpop.eup %2237  ;;  %2064 = vst [vmem:[%s3774_s2 + $0x98] sm:$0xff] %v2004_v14   ;;  %v1060_v27 = vmul.f32 %v3309_v63, %v1059_v62  ;;  %vm1062_vm5 = vweird.f32 %v3268_v61  ;;  %2247 = vrcp.f32 %v3349_v35  ;;  %vm1063_vm6 = vweird.f32 %v3309_v63  ;;  %v3452_v62 = vpop.f32.mrf.mxu2 }
 0x130   :  { %v1066_v6 = vand.u32 2147483647, %v3268_v61  ;;  %v3372_v28 = vor.u32 1.1754944e-38, %v1068_v58  ;;  %v1845_v29 = vmul.f32 -1.442695, %v390_v19  ;;  %v1485_v33 = vsel %vm3356_vm3, %v3271_v31, %v1481_v15  ;;  %vm3404_vm10 = vmor %vm1062_vm5, %vm1063_vm6 }
 0x131   :  { %v2240_v1 = vpop.eup %2239  ;;  %v848_v34 = vmul.f32 %v3352_v21, %v3302_v52  ;;  %v858_v10 = vand.u32 2147483648, %v3302_v52  ;;  %vm1497_vm7 = vweird.f32 %v3339_v16  ;;  %2249 = vpow2.f32 %v1860_v18 }
 0x132   :  { %v2242_v30 = vpop.eup %2241  ;;  %v3380_v23 = vadd.f32 1.0, %v2240_v1  ;;  %v1831_v25 = vmul.f32 -1.442695, %v355_v32  ;;  %v3385_v4 = vadd.f32 %v3309_v63, %v1060_v27  ;;  %v1501_v31 = vand.u32 2147483647, %v3339_v16 }
 0x133   :  { %v1493_v36 = vmul.f32 %v2242_v30, %v3339_v16  ;;  %v2244_v38 = vpop.eup %2243  ;;  %v1503_v41 = vand.u32 2147483648, %v3339_v16  ;;  %vm1498_vm8 = vweird.f32 %v2242_v30  ;;  %v849_v46 = vsub.f32 1.0, %v848_v34 }
 0x134   :  { %2251 = vrcp.f32 %v3380_v23  ;;  %v2246_v43 = vpop.eup %2245  ;;  %v3390_v45 = vadd.f32 1.0, %v2244_v38  ;;  %vm852_vm9 = vweird.f32 %v3302_v52  ;;  %v856_v53 = vand.u32 2147483647, %v3302_v52  ;;  %vm3417_vm11 = vmor %vm1497_vm7, %vm1498_vm8 }
 0x135   :  { %v1494_v48 = vsub.f32 1.0, %v1493_v36  ;;  %2253 = vpow2.f32 %v1845_v29  ;;  %v3392_v42 = vpop.eup %2247  ;;  %v3396_v24 = vadd.f32 1.0, %v2246_v43  ;;  %v1490_v54 = vsel %vm3360_vm4, %v1489_v26, %v1485_v33  ;;  %v3410_v40 = vpop.f32.mrf.mxu3 }
 0x136   :  { %v1298_v59 = vmul.f32 %v3392_v42, %v3349_v35  ;;  %2255 = vpow2.f32 %v1831_v25  ;;  %v3412_v57 = vor.u32 1.1754944e-38, %v858_v10  ;;  %vm3421_vm12 = vcmp.eq.f32.partialorder %v1501_v31, 8.507059e+37 }
 0x137   :  { %v1495_v56 = vmul.f32 %v2242_v30, %v1494_v48  ;;  %v1504_v37 = vor.u32 1.1754944e-38, %v1503_v41  ;;  %2257 = vrcp.f32 %v3390_v45  ;;  %v2250_v5 = vpop.eup %2249  ;;  %v1065_v47 = vsel %vm3404_vm10, %v3309_v63, %v3385_v4  ;;  %v392_v41 = vpop.f32.mrf.mxu1 }
 0x138   :  { %vm853_vm13 = vweird.f32 %v3352_v21  ;;  %v1299_v39 = vsub.f32 1.0, %v1298_v59  ;;  %v850_v13 = vmul.f32 %v3352_v21, %v849_v46  ;;  %vm1302_vm14 = vweird.f32 %v3349_v35  ;;  %v432_v61 = vpop.f32.mrf.mxu2 }
 0x139   :  { %v1496_v17 = vadd.f32 %v2242_v30, %v1495_v56  ;;  %v1306_v51 = vand.u32 2147483647, %v3349_v35  ;;  %2259 = vrcp.f32 %v3396_v24  ;;  %vm3435_vm15 = vcmp.eq.f32.partialorder %v1066_v6, 8.507059e+37  ;;  %vm3472_vm5 = vmor %vm852_vm9, %vm853_vm13 }
 0x13a   :  { %v2252_v8 = vpop.eup %2251  ;;  %vm3439_vm0 = vcmp.eq.f32.partialorder %v856_v53, 8.507059e+37  ;;  %v1308_v16 = vand.u32 2147483648, %v3349_v35  ;;  %v1874_v7 = vmul.f32 -1.442695, %v462_v49  ;;  %vm1077_vm1 = vweird.f32 %v3380_v23 }
 0x13b   :  { %v2254_v50 = vpop.eup %2253  ;;  %v1500_v44 = vsel %vm3417_vm11, %v2242_v30, %v1496_v17  ;;  %v1073_v3 = vmul.f32 %v2252_v8, %v3380_v23  ;;  %v1081_v60 = vand.u32 2147483647, %v3380_v23  ;;  %v1083_v9 = vand.u32 2147483648, %v3380_v23 }
 0x13c   :  { %v1505_v12 = vsel %vm3421_vm12, %v1504_v37, %v1500_v44  ;;  %v2256_v11 = vpop.eup %2255  ;;  %v1300_v58 = vmul.f32 %v3392_v42, %v1299_v39  ;;  %v3455_v19 = vadd.f32 1.0, %v2250_v5  ;;  %v851_v22 = vadd.f32 %v3352_v21, %v850_v13 }
 0x13d   :  { %v2039_v14 = vpack.c.bf16 %v1505_v12, %v1490_v54  ;;  %v1074_v15 = vsub.f32 1.0, %v1073_v3  ;;  %v2258_v20 = vpop.eup %2257  ;;  %vm1303_vm2 = vweird.f32 %v3392_v42  ;;  %vm867_vm3 = vweird.f32 %v3390_v45  ;;  %v467_v27 = vpop.f32.mrf.mxu3 }
 0x13e   :  { %v3460_v18 = vadd.f32 1.0, %v2254_v50  ;;  %vm1078_vm4 = vweird.f32 %v2252_v8  ;;  %v863_v26 = vmul.f32 %v2258_v20, %v3390_v45  ;;  %2261 = vpow2.f32 %v1874_v7  ;;  %vm3494_vm9 = vmor %vm1302_vm14, %vm1303_vm2  ;;  %v357_v12 = vpop.f32.mrf.mxu0 }
 0x13f   :  { %2071 = vst [vmem:[%s3774_s2 + $0xd0] sm:$0xff] %v2039_v14   ;;  %v1075_v49 = vmul.f32 %v2252_v8, %v1074_v15  ;;  %v3466_v1 = vpop.eup %2259  ;;  %v871_v29 = vand.u32 2147483647, %v3390_v45  ;;  %v873_v30 = vand.u32 2147483648, %v3390_v45  ;;  %2263 = vrcp.f32 %v3455_v19  ;;  %vm1079_vm7 = vmor %vm1077_vm1, %vm1078_vm4 }
 0x140   :  { %v3479_v33 = vadd.f32 1.0, %v2256_v11  ;;  %v1301_v34 = vadd.f32 %v3392_v42, %v1300_v58  ;;  %v864_v32 = vsub.f32 1.0, %v863_v26  ;;  %vm868_vm6 = vweird.f32 %v2258_v20 }
 0x141   :  { %v1076_v10 = vadd.f32 %v2252_v8, %v1075_v49  ;;  %vm1082_vm8 = vcmp.eq.f32.partialorder %v1081_v60, 8.507059e+37  ;;  %v1084_v52 = vor.u32 1.1754944e-38, %v1083_v9  ;;  %v1508_v36 = vmul.f32 %v3466_v1, %v3396_v24  ;;  %vm3504_vm10 = vmor %vm867_vm3, %vm868_vm6  ;;  %v395_v49 = vpop.f32.mrf.mxu1 }
 0x142   :  { %2265 = vrcp.f32 %v3460_v18  ;;  %v855_v25 = vsel %vm3472_vm5, %v3352_v21, %v851_v22  ;;  %v865_v4 = vmul.f32 %v2258_v20, %v864_v32  ;;  %v1518_v31 = vand.u32 2147483648, %v3396_v24  ;;  %v435_v32 = vpop.f32.mrf.mxu2 }
 0x143   :  { %v1080_v23 = vsel %vm1079_vm7, %v2252_v8, %v1076_v10  ;;  %v1070_v43 = vsel %vm3435_vm15, %v3372_v28, %v1065_v47  ;;  %v874_v46 = vor.u32 1.1754944e-38, %v873_v30  ;;  %2267 = vrcp.f32 %v3479_v33 }
 0x144   :  { %v1085_v48 = vsel %vm1082_vm8, %v1084_v52, %v1080_v23  ;;  %v2262_v53 = vpop.eup %2261  ;;  %v1305_v54 = vsel %vm3494_vm9, %v3392_v42, %v1301_v34  ;;  %v866_v56 = vadd.f32 %v2258_v20, %v865_v4  ;;  %vm872_vm11 = vcmp.eq.f32.partialorder %v871_v29, 8.507059e+37 }
 0x145   :  { %v1969_v55 = vpack.c.bf16 %v1085_v48, %v1070_v43  ;;  %v2264_v59 = vpop.eup %2263  ;;  %v860_v28 = vsel %vm3439_vm0, %v3412_v57, %v855_v25  ;;  %vm1307_vm12 = vcmp.eq.f32.partialorder %v1306_v51, 8.507059e+37  ;;  %v1309_v45 = vor.u32 1.1754944e-38, %v1308_v16 }
 0x146   :  { %v1509_v2 = vsub.f32 1.0, %v1508_v36  ;;  %v870_v42 = vsel %vm3504_vm10, %v2258_v20, %v866_v56  ;;  %vm1512_vm13 = vweird.f32 %v3396_v24  ;;  %v1516_v37 = vand.u32 2147483647, %v3396_v24 }
 0x147   :  { %2057 = vst [vmem:[%s3774_s2 + $0x60] sm:$0xff] %v1969_v55   ;;  %v3524_v5 = vor.u32 1.1754944e-38, %v1518_v31  ;;  %v1313_v57 = vmul.f32 %v2264_v59, %v3455_v19  ;;  %v1310_v47 = vsel %vm1307_vm12, %v1309_v45, %v1305_v54  ;;  %v875_v17 = vsel %vm872_vm11, %v874_v46, %v870_v42 }
 0x148   :  { %v3527_v35 = vpop.eup %2265  ;;  %v1321_v39 = vand.u32 2147483647, %v3455_v19  ;;  %v3530_v8 = vadd.f32 1.0, %v2262_v53  ;;  %v1934_v13 = vpack.c.bf16 %v875_v17, %v860_v28  ;;  %v1323_v50 = vand.u32 2147483648, %v3455_v19 }
 0x149   :  { %v1314_v51 = vsub.f32 1.0, %v1313_v57  ;;  %v1088_v0 = vmul.f32 %v3527_v35, %v3460_v18  ;;  %v3535_v63 = vpop.eup %2267  ;;  %v1510_v44 = vmul.f32 %v3466_v1, %v1509_v2  ;;  %vm1513_vm14 = vweird.f32 %v3466_v1 }
 0x14a   :  { %vm1317_vm15 = vweird.f32 %v3455_v19  ;;  %2269 = vrcp.f32 %v3530_v8  ;;  %2050 = vst [vmem:[%s3774_s2 + $0x28] sm:$0xff] %v1934_v13   ;;  %vm1318_vm0 = vweird.f32 %v2264_v59  ;;  %v878_v7 = vmul.f32 %v3535_v63, %v3479_v33  ;;  %vm3572_vm7 = vmor %vm1512_vm13, %vm1513_vm14 }
 0x14b   :  { %v1315_v16 = vmul.f32 %v2264_v59, %v1314_v51  ;;  %v1089_v3 = vsub.f32 1.0, %v1088_v0  ;;  %vm3546_vm1 = vcmp.eq.f32.partialorder %v1321_v39, 8.507059e+37  ;;  %vm1092_vm2 = vweird.f32 %v3460_v18  ;;  %vm1319_vm4 = vmor %vm1317_vm15, %vm1318_vm0 }
 0x14c   :  { %v1096_v9 = vand.u32 2147483647, %v3460_v18  ;;  %v1861_v11 = vmul.f32 -1.442695, %v3452_v62  ;;  %vm3553_vm3 = vcmp.eq.f32.partialorder %v1516_v37, 8.507059e+37  ;;  %v1324_v15 = vor.u32 1.1754944e-38, %v1323_v50  ;;  %v397_v37 = vpop.f32.mrf.mxu1 }
 0x14d   :  { %v1316_v58 = vadd.f32 %v2264_v59, %v1315_v16  ;;  %v879_v20 = vsub.f32 1.0, %v878_v7  ;;  %v1846_v22 = vmul.f32 -1.442695, %v392_v41  ;;  %vm882_vm5 = vweird.f32 %v3479_v33 }
 0x14e   :  { %v886_v26 = vand.u32 2147483647, %v3479_v33  ;;  %2271 = vpow2.f32 %v1861_v11  ;;  %v1832_v27 = vmul.f32 -1.442695, %v357_v12  ;;  %v1511_v62 = vadd.f32 %v3466_v1, %v1510_v44 }
 0x14f   :  { %v1320_v6 = vsel %vm1319_vm4, %v2264_v59, %v1316_v58  ;;  %v1090_v29 = vmul.f32 %v3527_v35, %v1089_v3  ;;  %2273 = vpow2.f32 %v1846_v22  ;;  %v1862_v10 = vmul.f32 -1.442695, %v432_v61  ;;  %v437_v3 = vpop.f32.mrf.mxu2 }
 0x150   :  { %v2270_v30 = vpop.eup %2269  ;;  %v1325_v34 = vsel %vm3546_vm1, %v1324_v15, %v1320_v6  ;;  %2275 = vpow2.f32 %v1832_v27  ;;  %v1847_v19 = vmul.f32 -1.442695, %v395_v49  ;;  %v880_v36 = vmul.f32 %v3535_v63, %v879_v20 }
 0x151   :  { %v2009_v52 = vpack.c.bf16 %v1325_v34, %v1310_v47  ;;  %v1523_v25 = vmul.f32 %v2270_v30, %v3530_v8  ;;  %vm1527_vm6 = vweird.f32 %v3530_v8  ;;  %vm883_vm8 = vweird.f32 %v3535_v63 }
 0x152   :  { %v1533_v23 = vand.u32 2147483648, %v3530_v8  ;;  %2277 = vpow2.f32 %v1862_v10  ;;  %v1875_v4 = vmul.f32 -1.442695, %v3410_v40  ;;  %vm1528_vm9 = vweird.f32 %v2270_v30  ;;  %vm3594_vm11 = vmor %vm882_vm5, %vm883_vm8 }
 0x153   :  { %2065 = vst [vmem:[%s3774_s2 + $0xa0] sm:$0xff] %v2009_v52   ;;  %v1524_v31 = vsub.f32 1.0, %v1523_v25  ;;  %v1531_v41 = vand.u32 2147483647, %v3530_v8  ;;  %2279 = vpow2.f32 %v1847_v19  ;;  %v1091_v43 = vadd.f32 %v3527_v35, %v1090_v29  ;;  %vm3608_vm13 = vmor %vm1527_vm6, %vm1528_vm9 }
 0x154   :  { %v2272_v24 = vpop.eup %2271  ;;  %vm1093_vm10 = vweird.f32 %v3527_v35  ;;  %v888_v48 = vand.u32 2147483648, %v3479_v33  ;;  %2281 = vpow2.f32 %v1875_v4  ;;  %v1515_v40 = vsel %vm3572_vm7, %v3466_v1, %v1511_v62 }
 0x155   :  { %v2274_v21 = vpop.eup %2273  ;;  %v881_v46 = vadd.f32 %v3535_v63, %v880_v36  ;;  %v1525_v54 = vmul.f32 %v2270_v30, %v1524_v31  ;;  %v3598_v55 = vadd.f32 1.0, %v2272_v24  ;;  %vm3600_vm12 = vcmp.eq.f32.partialorder %v1096_v9, 8.507059e+37  ;;  %vm3618_vm14 = vmor %vm1092_vm2, %vm1093_vm10 }
 0x156   :  { %v2276_v56 = vpop.eup %2275  ;;  %v1098_v1 = vand.u32 2147483648, %v3460_v18  ;;  %v1534_v33 = vor.u32 1.1754944e-38, %v1533_v23  ;;  %v3612_v45 = vadd.f32 1.0, %v2274_v21  ;;  %vm3622_vm15 = vcmp.eq.f32.partialorder %v886_v26, 8.507059e+37 }
 0x157   :  { %v1526_v42 = vadd.f32 %v2270_v30, %v1525_v54  ;;  %vm1532_vm0 = vcmp.eq.f32.partialorder %v1531_v41, 8.507059e+37  ;;  %2283 = vrcp.f32 %v3598_v55  ;;  %v1520_v47 = vsel %vm3553_vm3, %v3524_v5, %v1515_v40 }
 0x158   :  { %v2278_v57 = vpop.eup %2277  ;;  %v1095_v18 = vsel %vm3618_vm14, %v3527_v35, %v1091_v43  ;;  %v889_v17 = vor.u32 1.1754944e-38, %v888_v48  ;;  %2285 = vrcp.f32 %v3612_v45  ;;  %v885_v8 = vsel %vm3594_vm11, %v3535_v63, %v881_v46 }
 0x159   :  { %v2280_v39 = vpop.eup %2279  ;;  %v1530_v13 = vsel %vm3608_vm13, %v2270_v30, %v1526_v42  ;;  %v3639_v51 = vadd.f32 1.0, %v2276_v56  ;;  %v1863_v50 = vmul.f32 -1.442695, %v435_v32  ;;  %v1099_v5 = vor.u32 1.1754944e-38, %v1098_v1 }
 0x15a   :  { %v2282_v0 = vpop.eup %2281  ;;  %v1535_v44 = vsel %vm1532_vm0, %v1534_v33, %v1530_v13  ;;  %v3641_v16 = vadd.f32 1.0, %v2278_v57  ;;  %v1848_v35 = vmul.f32 -1.442695, %v397_v37  ;;  %v1338_v12 = vand.u32 2147483648, %v3598_v55 }
 0x15b   :  { %v2044_v7 = vpack.c.bf16 %v1535_v44, %v1520_v47  ;;  %v1111_v60 = vand.u32 2147483647, %v3612_v45  ;;  %2287 = vrcp.f32 %v3639_v51  ;;  %v3648_v63 = vsel %vm3600_vm12, %v1099_v5, %v1095_v18 }
 0x15c   :  { %v3652_v9 = vsel %vm3622_vm15, %v889_v17, %v885_v8  ;;  %v1113_v11 = vand.u32 2147483648, %v3612_v45  ;;  %2289 = vrcp.f32 %v3641_v16  ;;  %v3661_v58 = vadd.f32 1.0, %v2280_v39 }
 0x15d   :  { %v3656_v14 = vpop.eup %2283  ;;  %2072 = vst [vmem:[%s3774_s2 + $0xd8] sm:$0xff] %v2044_v7   ;;  %v3663_v15 = vadd.f32 1.0, %v2282_v0  ;;  %2291 = vpow2.f32 %v1863_v50  ;;  %v3665_v20 = vmul.f32 -1.442695, %v437_v3  ;;  %vm1332_vm1 = vweird.f32 %v3598_v55 }
 0x15e   :  { %v2286_v22 = vpop.eup %2285  ;;  %v1328_v49 = vmul.f32 %v3656_v14, %v3598_v55  ;;  %v1336_v26 = vand.u32 2147483647, %v3598_v55  ;;  %2293 = vpow2.f32 %v1848_v35  ;;  %v1339_v27 = vor.u32 1.1754944e-38, %v1338_v12 }
 0x15f   :  { %v1103_v62 = vmul.f32 %v2286_v22, %v3612_v45  ;;  %vm1107_vm2 = vweird.f32 %v3612_v45  ;;  %vm3673_vm3 = vcmp.eq.f32.partialorder %v1111_v60, 8.507059e+37  ;;  %v1114_v30 = vor.u32 1.1754944e-38, %v1113_v11 }
 0x160   :  { %v1329_v29 = vsub.f32 1.0, %v1328_v49  ;;  %vm897_vm4 = vweird.f32 %v3639_v51  ;;  %2295 = vrcp.f32 %v3661_v58  ;;  %v901_v19 = vand.u32 2147483647, %v3639_v51 }
 0x161   :  { %v2288_v34 = vpop.eup %2287  ;;  %v1104_v10 = vsub.f32 1.0, %v1103_v62  ;;  %v903_v32 = vand.u32 2147483648, %v3639_v51  ;;  %2297 = vrcp.f32 %v3663_v15  ;;  %vm1333_vm5 = vweird.f32 %v3656_v14 }
 0x162   :  { %v2290_v52 = vpop.eup %2289  ;;  %v1330_v36 = vmul.f32 %v3656_v14, %v1329_v29  ;;  %vm3684_vm6 = vcmp.eq.f32.partialorder %v1336_v26, 8.507059e+37  ;;  %v893_v38 = vmul.f32 %v2288_v34, %v3639_v51  ;;  %v1353_v23 = vand.u32 2147483648, %v3641_v16  ;;  %vm3696_vm10 = vmor %vm1332_vm1, %vm1333_vm5 }
 0x163   :  { %v2292_v4 = vpop.eup %2291  ;;  %v1105_v31 = vmul.f32 %v2286_v22, %v1104_v10  ;;  %vm1108_vm7 = vweird.f32 %v2286_v22  ;;  %v1343_v41 = vmul.f32 %v2290_v52, %v3641_v16  ;;  %vm1347_vm8 = vweird.f32 %v3641_v16 }
 0x164   :  { %v2294_v24 = vpop.eup %2293  ;;  %v1331_v43 = vadd.f32 %v3656_v14, %v1330_v36  ;;  %v894_v48 = vsub.f32 1.0, %v893_v38  ;;  %vm898_vm9 = vweird.f32 %v2288_v34  ;;  %v1351_v21 = vand.u32 2147483647, %v3641_v16  ;;  %vm1109_vm12 = vmor %vm1107_vm2, %vm1108_vm7 }
 0x165   :  { %v1106_v46 = vadd.f32 %v2286_v22, %v1105_v31  ;;  %vm3700_vm11 = vcmp.eq.f32.partialorder %v901_v19, 8.507059e+37  ;;  %v904_v54 = vor.u32 1.1754944e-38, %v903_v32  ;;  %v1344_v56 = vsub.f32 1.0, %v1343_v41  ;;  %vm3712_vm15 = vmor %vm897_vm4, %vm898_vm9 }
 0x166   :  { %v3704_v59 = vpop.eup %2295  ;;  %v895_v1 = vmul.f32 %v2288_v34, %v894_v48  ;;  %vm1348_vm13 = vweird.f32 %v2290_v52  ;;  %v1354_v28 = vor.u32 1.1754944e-38, %v1353_v23  ;;  %vm1542_vm14 = vweird.f32 %v3663_v15 }
 0x167   :  { %v2298_v55 = vpop.eup %2297  ;;  %v1110_v33 = vsel %vm1109_vm12, %v2286_v22, %v1106_v46  ;;  %v1345_v61 = vmul.f32 %v2290_v52, %v1344_v56  ;;  %v1546_v42 = vand.u32 2147483647, %v3663_v15  ;;  %v3717_v37 = vadd.f32 1.0, %v2292_v4  ;;  %vm1349_vm0 = vmor %vm1347_vm8, %vm1348_vm13 }
 0x168   :  { %v1335_v45 = vsel %vm3696_vm10, %v3656_v14, %v1331_v43  ;;  %v1115_v57 = vsel %vm3673_vm3, %v1114_v30, %v1110_v33  ;;  %v896_v47 = vadd.f32 %v2288_v34, %v895_v1  ;;  %v1538_v18 = vmul.f32 %v2298_v55, %v3663_v15 }
 0x169   :  { %v1974_v17 = vpack.c.bf16 %v1115_v57, %v3648_v63  ;;  %v1346_v39 = vadd.f32 %v2290_v52, %v1345_v61  ;;  %v1548_v8 = vand.u32 2147483648, %v3663_v15  ;;  %v669_v13 = vadd.f32 1.0, %v2294_v24 }
 0x16a   :  { %v900_v51 = vsel %vm3712_vm15, %v2288_v34, %v896_v47  ;;  %v1118_v50 = vmul.f32 %v3704_v59, %v3661_v58  ;;  %v1539_v0 = vsub.f32 1.0, %v1538_v18  ;;  %vm1543_vm1 = vweird.f32 %v2298_v55 }
 0x16b   :  { %v1340_v5 = vsel %vm3684_vm6, %v1339_v27, %v1335_v45  ;;  %2058 = vst [vmem:[%s3774_s2 + $0x68] sm:$0xff] %v1974_v17   ;;  %v905_v44 = vsel %vm3700_vm11, %v904_v54, %v900_v51  ;;  %v1350_v35 = vsel %vm1349_vm0, %v2290_v52, %v1346_v39  ;;  %vm1352_vm2 = vcmp.eq.f32.partialorder %v1351_v21, 8.507059e+37  ;;  %vm1544_vm3 = vmor %vm1542_vm14, %vm1543_vm1 }
 0x16c   :  { %v1939_v16 = vpack.c.bf16 %v905_v44, %v3652_v9  ;;  %v1355_v3 = vsel %vm1352_vm2, %v1354_v28, %v1350_v35  ;;  %v1540_v7 = vmul.f32 %v2298_v55, %v1539_v0  ;;  %2299 = vrcp.f32 %v3717_v37 }
 0x16d   :  { %v2014_v12 = vpack.c.bf16 %v1355_v3, %v1340_v5  ;;  %v1549_v60 = vor.u32 1.1754944e-38, %v1548_v8  ;;  %2301 = vrcp.f32 %v669_v13  ;;  %v1119_v63 = vsub.f32 1.0, %v1118_v50 }
 0x16e   :  { %2051 = vst [vmem:[%s3774_s2 + $0x30] sm:$0xff] %v1939_v16   ;;  %v1541_v11 = vadd.f32 %v2298_v55, %v1540_v7  ;;  %vm1547_vm4 = vcmp.eq.f32.partialorder %v1546_v42, 8.507059e+37  ;;  %2303 = vpow2.f32 %v3665_v20  ;;  %vm1122_vm5 = vweird.f32 %v3661_v58 }
 0x16f   :  { %2066 = vst [vmem:[%s3774_s2 + $0xa8] sm:$0xff] %v2014_v12   ;;  %v1120_v15 = vmul.f32 %v3704_v59, %v1119_v63  ;;  %vm1123_vm6 = vweird.f32 %v3704_v59  ;;  %v1126_v34 = vand.u32 2147483647, %v3661_v58  ;;  %v1128_v10 = vand.u32 2147483648, %v3661_v58 }
 0x170   :  { %v1545_v9 = vsel %vm1544_vm3, %v2298_v55, %v1541_v11  ;;  %v1143_v19 = vand.u32 2147483648, %v669_v13  ;;  %v1141_v52 = vand.u32 2147483647, %v669_v13  ;;  %vm1124_vm8 = vmor %vm1122_vm5, %vm1123_vm6  ;;  %vm1137_vm9 = vweird.f32 %v669_v13 }
 0x171   :  { %v1550_v14 = vsel %vm1547_vm4, %v1549_v60, %v1545_v9  ;;  %v1121_v29 = vadd.f32 %v3704_v59, %v1120_v15  ;;  %v1129_v23 = vor.u32 1.1754944e-38, %v1128_v10  ;;  %vm1127_vm11 = vcmp.eq.f32.partialorder %v1126_v34, 8.507059e+37 }
 0x172   :  { %v2300_v22 = vpop.eup %2299  ;;  %v1608_v49 = vpack.c.bf16 %v1550_v14, %v1550_v14  ;;  %v1144_v4 = vor.u32 1.1754944e-38, %v1143_v19  ;;  %vm1142_vm12 = vcmp.eq.f32.partialorder %v1141_v52, 8.507059e+37  ;;  %vm1362_vm14 = vweird.f32 %v3717_v37 }
 0x173   :  { %v2302_v26 = vpop.eup %2301  ;;  %v1358_v6 = vmul.f32 %v2300_v22, %v3717_v37  ;;  %v1125_v25 = vsel %vm1124_vm8, %v3704_v59, %v1121_v29  ;;  %vm1363_vm13 = vweird.f32 %v2300_v22  ;;  %v1368_v53 = vand.u32 2147483648, %v3717_v37 }
 0x174   :  { %1665 = vst [vmem:[%s3774_s2 + $0xe0] sm:$0x1] %v1608_v49  ;;  %v1133_v27 = vmul.f32 %v2302_v26, %v669_v13  ;;  %v2304_v62 = vpop.eup %2303  ;;  %vm1138_vm7 = vweird.f32 %v2302_v26  ;;  %v1130_v41 = vsel %vm1127_vm11, %v1129_v23, %v1125_v25  ;;  %v1366_v56 = vand.u32 2147483647, %v3717_v37  ;;  %vm1364_vm0 = vmor %vm1362_vm14, %vm1363_vm13 }
 0x175   :  { %v685_v30 = vadd.f32 1.0, %v2304_v62  ;;  %v1359_v36 = vsub.f32 1.0, %v1358_v6  ;;  %vm1139_vm10 = vmor %vm1137_vm9, %vm1138_vm7  ;;  %v1369_v33 = vor.u32 1.1754944e-38, %v1368_v53 }
 0x176   :  { %v1134_v20 = vsub.f32 1.0, %v1133_v27  ;;  %vm1367_vm3 = vcmp.eq.f32.partialorder %v1366_v56, 8.507059e+37 }
 0x177   :  { %2305 = vrcp.f32 %v685_v30  ;;  %v1360_v24 = vmul.f32 %v2300_v22, %v1359_v36  ;;  %v1383_v54 = vand.u32 2147483648, %v685_v30  ;;  %v1381_v1 = vand.u32 2147483647, %v685_v30 }
 0x178   :  { %v1135_v32 = vmul.f32 %v2302_v26, %v1134_v20  ;;  %vm1377_vm1 = vweird.f32 %v685_v30 }
 0x179   :  { %v1361_v40 = vadd.f32 %v2300_v22, %v1360_v24  ;;  %v1384_v2 = vor.u32 1.1754944e-38, %v1383_v54  ;;  %vm1382_vm4 = vcmp.eq.f32.partialorder %v1381_v1, 8.507059e+37 }
 0x17a   :  { %v1136_v38 = vadd.f32 %v2302_v26, %v1135_v32 }
 0x17b   :  { %v1365_v28 = vsel %vm1364_vm0, %v2300_v22, %v1361_v40 }
 0x17c   :  { %v1140_v31 = vsel %vm1139_vm10, %v2302_v26, %v1136_v38  ;;  %v1370_v42 = vsel %vm1367_vm3, %v1369_v33, %v1365_v28 }
 0x17d   :  { %v1145_v58 = vsel %vm1142_vm12, %v1144_v4, %v1140_v31  ;;  %v2306_v43 = vpop.eup %2305 }
 0x17e   :  { %v1979_v48 = vpack.c.bf16 %v1145_v58, %v1130_v41  ;;  %v1373_v21 = vmul.f32 %v2306_v43, %v685_v30  ;;  %vm1378_vm15 = vweird.f32 %v2306_v43 }
 0x17f   :  { %vm1379_vm2 = vmor %vm1377_vm1, %vm1378_vm15 }
 0x180   :  { %2059 = vst [vmem:[%s3774_s2 + $0x70] sm:$0xff] %v1979_v48   ;;  %v1374_v46 = vsub.f32 1.0, %v1373_v21 }
 0x182   :  { %v1375_v59 = vmul.f32 %v2306_v43, %v1374_v46 }
 0x184   :  { %v1376_v55 = vadd.f32 %v2306_v43, %v1375_v59 }
 0x186   :  { %v1380_v61 = vsel %vm1379_vm2, %v2306_v43, %v1376_v55 }
 0x187   :  { %v1385_v45 = vsel %vm1382_vm4, %v1384_v2, %v1380_v61 }
 0x188   :  { %v2019_v57 = vpack.c.bf16 %v1385_v45, %v1370_v42 }
 0x18a   :  { %2067 = vst [vmem:[%s3774_s2 + $0xb0] sm:$0xff] %v2019_v57  }

</bundles_post_ra>
